<compile_context>
chip_gen: v7x
topology: tpu7x:2x2x1
jax: 0.10.0
libtpu: 0.0.40
codegen_flags: <defaults>
</compile_context>

<pallas_src>
import functools

import jax
import jax.numpy as jnp
from jax import lax
from jax.experimental import pallas as pl
from jax.experimental.pallas import tpu as pltpu

EPS = 1e-5     # nn.BatchNorm2d default eps
LANE = 128     # TPU lane width: keep channel dims lane-dense

_CP = pltpu.CompilerParams(
    dimension_semantics=("parallel",),       # row tiles are independent -> megacore
    vmem_limit_bytes=32 * 1024 * 1024,       # explicit scoped-VMEM budget (tiles are small)
)


def _round_up(x, m):
    return (x + m - 1) // m * m


# -----------------------------------------------------------------------------
# Kernels
# -----------------------------------------------------------------------------
def _conv1x1_stats_kernel(x_ref, w_ref, z_ref, s_ref, q_ref):
    """z = x @ w (bf16 MXU, f32 acc); emit per-tile sum / sum-of-squares of z."""
    z = jnp.dot(x_ref[...].astype(jnp.bfloat16), w_ref[...],
                preferred_element_type=jnp.float32)
    z_ref[...] = z
    c = z.shape[-1]
    s_ref[...] = jnp.sum(z, axis=0, keepdims=True).reshape(1, 1, c)
    q_ref[...] = jnp.sum(z * z, axis=0, keepdims=True).reshape(1, 1, c)


def _bn_relu_conv1x1_stats_kernel(z_ref, scale_ref, shift_ref, w_ref,
                                  y_ref, s_ref, q_ref):
    """y = relu(z*scale + shift) @ w; emit per-tile sum / sum-of-squares of y."""
    a = jnp.maximum(z_ref[...] * scale_ref[...] + shift_ref[...], 0.0)
    y = jnp.dot(a.astype(jnp.bfloat16), w_ref[...],
                preferred_element_type=jnp.float32)
    y_ref[...] = y
    c = y.shape[-1]
    s_ref[...] = jnp.sum(y, axis=0, keepdims=True).reshape(1, 1, c)
    q_ref[...] = jnp.sum(y * y, axis=0, keepdims=True).reshape(1, 1, c)


def _bn_relu_conv3x3_stats_kernel(H, W, Cp, z_ref, scale_ref, shift_ref, w_ref,
                                  y_ref, s_ref, q_ref, pad_ref):
    """Per-image: a = relu(bn(z)); y = 3x3 conv of a via a single im2col MXU matmul."""
    a = jnp.maximum(z_ref[...].reshape(H, W, Cp) * scale_ref[...] + shift_ref[...],
                    0.0)                                             # (H, W, Cp) f32

    # 1-pixel zero halo: write only the border strips + the interior exactly once.
    zrow = jnp.zeros((1, W + 2, Cp), jnp.float32)
    zcol = jnp.zeros((H, 1, Cp), jnp.float32)
    pad_ref[0:1, :, :] = zrow
    pad_ref[H + 1:H + 2, :, :] = zrow
    pad_ref[1:H + 1, 0:1, :] = zcol
    pad_ref[1:H + 1, W + 1:W + 2, :] = zcol
    pad_ref[1:H + 1, 1:W + 1, :] = a
    yp = pad_ref[...]                                                # (H+2, W+2, Cp)

    # im2col: one (H*W, 9*Cp) x (9*Cp, Cp) matmul instead of 9 small matmuls + adds.
    patches = jnp.concatenate(
        [yp[dy:dy + H, dx:dx + W, :].reshape(H * W, Cp)
         for dy in range(3) for dx in range(3)], axis=-1)            # (H*W, 9*Cp)
    y = jnp.dot(patches.astype(jnp.bfloat16), w_ref[...],
                preferred_element_type=jnp.float32)                  # (H*W, Cp) f32

    y_ref[...] = y
    s_ref[...] = jnp.sum(y, axis=0, keepdims=True).reshape(1, 1, Cp)
    q_ref[...] = jnp.sum(y * y, axis=0, keepdims=True).reshape(1, 1, Cp)


def _bn_add_relu_kernel(z_ref, scale_ref, shift_ref, x_ref, o_ref):
    """out = relu(bn_3(z) + shortcut)."""
    o_ref[...] = jnp.maximum(
        z_ref[...] * scale_ref[...] + shift_ref[...] + x_ref[...], 0.0)


# -----------------------------------------------------------------------------
# Host-side glue
# -----------------------------------------------------------------------------
def _bn_scale_shift(s_tiles, q_tiles, gamma, beta, count):
    """Fold global one-pass batch stats into a per-channel affine (scale, shift)."""
    s = jnp.sum(s_tiles, axis=(0, 1))[None, :]          # (1, Cp)
    q = jnp.sum(q_tiles, axis=(0, 1))[None, :]          # (1, Cp)
    mu = s / count
    var = jnp.maximum(q / count - mu * mu, 0.0)          # biased (train-mode) variance
    scale = gamma * lax.rsqrt(var + EPS)
    shift = beta - mu * scale
    return scale, shift


def bottleneck_forward(x_nchw, params, *, row_tile=1024):
    """Runs the fused Pallas pipeline.  x_nchw: (N, Cin, H, W), Cin == 4*out_filters."""
    N, Cin, H, W = x_nchw.shape
    C1 = params["w1"].shape[1]
    C3 = 4 * C1
    assert Cin == C3, "identity shortcut requires in_filters == 4 * out_filters"
    M = N * H * W

    Cin_p = _round_up(Cin, LANE)
    C1p = _round_up(C1, LANE)
    C3p = _round_up(C3, LANE)
    assert Cin_p == C3p

    tm = min(row_tile, M)
    assert M % tm == 0 and tm % 8 == 0, "row tile must divide M and be 8-aligned"
    assert (H * W) % 8 == 0
    n_row = M // tm

    # ---- lane-dense, channels-last operands (channel dims padded to 128) ----
    x = jnp.transpose(x_nchw, (0, 2, 3, 1)).astype(jnp.float32).reshape(M, Cin)
    x_pad = jnp.pad(x, ((0, 0), (0, C3p - Cin)))

    w1 = jnp.pad(params["w1"], ((0, Cin_p - Cin), (0, C1p - C1))).astype(jnp.bfloat16)
    w2 = jnp.pad(params["w2"].reshape(3, 3, C1, C1),
                 ((0, 0), (0, 0), (0, C1p - C1), (0, C1p - C1)))
    w2 = w2.reshape(9 * C1p, C1p).astype(jnp.bfloat16)
    w3 = jnp.pad(params["w3"], ((0, C1p - C1), (0, C3p - C3))).astype(jnp.bfloat16)

    def padc(v, cp):
        return jnp.pad(v.astype(jnp.float32), ((0, 0), (0, cp - v.shape[1])))

    g1, be1 = padc(params["g1"], C1p), padc(params["be1"], C1p)
    g2, be2 = padc(params["g2"], C1p), padc(params["be2"], C1p)
    g3, be3 = padc(params["g3"], C3p), padc(params["be3"], C3p)
    # NOTE: conv biases b1/b2/b3 are mathematically cancelled by the per-channel mean
    # subtraction of the following train-mode BatchNorm, so they are not used here.

    row_spec = lambda c: pl.BlockSpec((tm, c), lambda i: (i, 0))
    stat_spec = lambda c: pl.BlockSpec((1, 1, c), lambda i: (i, 0, 0))
    bc_spec = lambda shape: pl.BlockSpec(shape, lambda i: (0,) * len(shape))

    # ---- stage 1: conv_1 (1x1) + batch stats of its output ----
    z1, s1, q1 = pl.pallas_call(
        _conv1x1_stats_kernel,
        out_shape=(jax.ShapeDtypeStruct((M, C1p), jnp.float32),
                   jax.ShapeDtypeStruct((n_row, 1, C1p), jnp.float32),
                   jax.ShapeDtypeStruct((n_row, 1, C1p), jnp.float32)),
        grid_spec=pltpu.PrefetchScalarGridSpec(
            num_scalar_prefetch=0, grid=(n_row,),
            in_specs=[row_spec(Cin_p), bc_spec((Cin_p, C1p))],
            out_specs=(row_spec(C1p), stat_spec(C1p), stat_spec(C1p))),
        compiler_params=_CP,
    )(x_pad, w1)
    sc1, sh1 = _bn_scale_shift(s1, q1, g1, be1, M)

    # ---- stage 2: bn_1 + relu + conv_2 (3x3, single im2col matmul) + stats ----
    z2, s2, q2 = pl.pallas_call(
        functools.partial(_bn_relu_conv3x3_stats_kernel, H, W, C1p),
        out_shape=(jax.ShapeDtypeStruct((M, C1p), jnp.float32),
                   jax.ShapeDtypeStruct((N, 1, C1p), jnp.float32),
                   jax.ShapeDtypeStruct((N, 1, C1p), jnp.float32)),
        grid_spec=pltpu.PrefetchScalarGridSpec(
            num_scalar_prefetch=0, grid=(N,),
            in_specs=[pl.BlockSpec((1, H, W, C1p), lambda i: (i, 0, 0, 0)),
                      bc_spec((1, C1p)), bc_spec((1, C1p)),
                      bc_spec((9 * C1p, C1p))],
            out_specs=(pl.BlockSpec((H * W, C1p), lambda i: (i, 0)),
                       stat_spec(C1p), stat_spec(C1p)),
            scratch_shapes=[pltpu.VMEM((H + 2, W + 2, C1p), jnp.float32)]),
        compiler_params=_CP,
    )(z1.reshape(N, H, W, C1p), sc1, sh1, w2)
    sc2, sh2 = _bn_scale_shift(s2, q2, g2, be2, M)

    # ---- stage 3: bn_2 + relu + conv_3 (1x1) + stats ----
    z3, s3, q3 = pl.pallas_call(
        _bn_relu_conv1x1_stats_kernel,
        out_shape=(jax.ShapeDtypeStruct((M, C3p), jnp.float32),
                   jax.ShapeDtypeStruct((n_row, 1, C3p), jnp.float32),
                   jax.ShapeDtypeStruct((n_row, 1, C3p), jnp.float32)),
        grid_spec=pltpu.PrefetchScalarGridSpec(
            num_scalar_prefetch=0, grid=(n_row,),
            in_specs=[row_spec(C1p), bc_spec((1, C1p)), bc_spec((1, C1p)),
                      bc_spec((C1p, C3p))],
            out_specs=(row_spec(C3p), stat_spec(C3p), stat_spec(C3p))),
        compiler_params=_CP,
    )(z2, sc2, sh2, w3)
    sc3, sh3 = _bn_scale_shift(s3, q3, g3, be3, M)

    # ---- stage 4: bn_3 + identity shortcut + relu ----
    out = pl.pallas_call(
        _bn_add_relu_kernel,
        out_shape=jax.ShapeDtypeStruct((M, C3p), jnp.float32),
        grid_spec=pltpu.PrefetchScalarGridSpec(
            num_scalar_prefetch=0, grid=(n_row,),
            in_specs=[row_spec(C3p), bc_spec((1, C3p)), bc_spec((1, C3p)),
                      row_spec(C3p)],
            out_specs=row_spec(C3p)),
        compiler_params=_CP,
    )(z3, sc3, sh3, x_pad)

    out = out[:, :C3].reshape(N, H, W, C3)
    return jnp.transpose(out, (0, 3, 1, 2))


# -----------------------------------------------------------------------------
# Parameters and pure-JAX reference
# -----------------------------------------------------------------------------
def init_params(key, in_filters, out_filters):
    """Deterministic synthetic parameters (shapes match the nn.Module __init__)."""
    C1, C3, Cin = out_filters, 4 * out_filters, in_filters
    ks = jax.random.split(key, 12)
    return {
        "w1": jax.random.normal(ks[0], (Cin, C1), jnp.float32) * 0.1,
        "b1": jax.random.normal(ks[1], (1, C1), jnp.float32) * 0.1,
        "g1": 1.0 + 0.1 * jax.random.normal(ks[2], (1, C1), jnp.float32),
        "be1": 0.1 * jax.random.normal(ks[3], (1, C1), jnp.float32),
        "w2": jax.random.normal(ks[4], (9, C1, C1), jnp.float32) * 0.1,  # (dy*3+dx, Cin, Cout)
        "b2": jax.random.normal(ks[5], (1, C1), jnp.float32) * 0.1,
        "g2": 1.0 + 0.1 * jax.random.normal(ks[6], (1, C1), jnp.float32),
        "be2": 0.1 * jax.random.normal(ks[7], (1, C1), jnp.float32),
        "w3": jax.random.normal(ks[8], (C1, C3), jnp.float32) * 0.1,
        "b3": jax.random.normal(ks[9], (1, C3), jnp.float32) * 0.1,
        "g3": 1.0 + 0.1 * jax.random.normal(ks[10], (1, C3), jnp.float32),
        "be3": 0.1 * jax.random.normal(ks[11], (1, C3), jnp.float32),
    }


def ref_forward(x_nchw, params):
    """Pure-JAX reference (XLA convs, bf16 MXU inputs / f32 accumulation like the kernel)."""
    x = jnp.transpose(x_nchw, (0, 2, 3, 1)).astype(jnp.float32)  # NHWC
    Cin, C1 = params["w1"].shape
    C3 = 4 * C1
    dn = ("NHWC", "HWIO", "NHWC")

    def conv(a, w, pad):
        return lax.conv_general_dilated(
            a.astype(jnp.bfloat16), w.astype(jnp.bfloat16), (1, 1), pad,
            dimension_numbers=dn, preferred_element_type=jnp.float32)

    def bn(y, g, b):
        mu = jnp.mean(y, axis=(0, 1, 2), keepdims=True)
        var = jnp.mean(jnp.square(y - mu), axis=(0, 1, 2), keepdims=True)
        return (y - mu) * lax.rsqrt(var + EPS) * g.reshape(1, 1, 1, -1) + b.reshape(1, 1, 1, -1)

    w1 = params["w1"].reshape(1, 1, Cin, C1)
    w2 = params["w2"].reshape(3, 3, C1, C1)
    w3 = params["w3"].reshape(1, 1, C1, C3)

    y = conv(x, w1, "VALID") + params["b1"].reshape(1, 1, 1, -1)
    y = jnp.maximum(bn(y, params["g1"], params["be1"]), 0.0)
    y = conv(y, w2, ((1, 1), (1, 1))) + params["b2"].reshape(1, 1, 1, -1)
    y = jnp.maximum(bn(y, params["g2"], params["be2"]), 0.0)
    y = conv(y, w3, "VALID") + params["b3"].reshape(1, 1, 1, -1)
    y = bn(y, params["g3"], params["be3"])
    y = jnp.maximum(y + x, 0.0)
    return jnp.transpose(y, (0, 3, 1, 2))


if __name__ == "__main__":
    key = jax.random.PRNGKey(0)
    in_filters, out_filters = 16, 4          # identity shortcut: in_filters == 4*out_filters
    N, H, W = 2, 16, 16

    k_x, k_p = jax.random.split(key)
    x = jax.random.normal(k_x, (N, in_filters, H, W), jnp.float32)   # NCHW like PyTorch
    params = init_params(k_p, in_filters, out_filters)

    # row_tile=256 -> a 2-step "parallel" grid at this toy size (exercises the tiling).
    fwd = jax.jit(functools.partial(bottleneck_forward, row_tile=256))
    out = jax.block_until_ready(fwd(x, params))
    ref = jax.block_until_ready(ref_forward(x, params))

    err = float(jnp.max(jnp.abs(out - ref)))
    # Tolerance accounts for bf16 MXU inputs (f32 accumulation) on both sides.
    if not (err < 2e-2):
        raise AssertionError(f"Pallas kernel mismatch vs reference: max abs err = {err}")
    print("KERNEL_OK")
</pallas_src>

<mosaic_0001>
module attributes {stable_mosaic.version = 11 : i64} {
  func.func @_bn_relu_conv3x3_stats_kernel(%arg0: i32, %arg1: memref<1x16x16x128xf32, #tpu.memory_space<vmem>>, %arg2: memref<1x128xf32, #tpu.memory_space<vmem>>, %arg3: memref<1x128xf32, #tpu.memory_space<vmem>>, %arg4: memref<1152x128xbf16, #tpu.memory_space<vmem>>, %arg5: memref<256x128xf32, #tpu.memory_space<vmem>>, %arg6: memref<1x1x128xf32, #tpu.memory_space<vmem>>, %arg7: memref<1x1x128xf32, #tpu.memory_space<vmem>>, %arg8: memref<18x18x128xf32, #tpu.memory_space<vmem>>) attributes {dimension_semantics = [#tpu.dimension_semantics<parallel>], iteration_bounds = array<i64: 2>, scalar_prefetch = 0 : i64, scratch_operands = 1 : i64, tpu.core_type = #tpu.core_type<tc>, window_params = [{transform_indices = @transform_0, window_bounds = array<i64: 1, 16, 16, 128>}, {pipeline_mode = #tpu.pipeline_mode<synchronous>, transform_indices = @transform_1, window_bounds = array<i64: 1, 128>}, {pipeline_mode = #tpu.pipeline_mode<synchronous>, transform_indices = @transform_2, window_bounds = array<i64: 1, 128>}, {pipeline_mode = #tpu.pipeline_mode<synchronous>, transform_indices = @transform_3, window_bounds = array<i64: 1152, 128>}, {transform_indices = @transform_4, window_bounds = array<i64: 256, 128>}, {transform_indices = @transform_5, window_bounds = array<i64: 1, 1, 128>}, {transform_indices = @transform_6, window_bounds = array<i64: 1, 1, 128>}]} {
    %c0 = arith.constant 0 : index
    %c0_0 = arith.constant 0 : index
    %c0_1 = arith.constant 0 : index
    %c0_2 = arith.constant 0 : index
    %0 = vector.load %arg1[%c0, %c0_0, %c0_1, %c0_2] : memref<1x16x16x128xf32, #tpu.memory_space<vmem>>, vector<1x16x16x128xf32>
    %1 = vector.shape_cast %0 : vector<1x16x16x128xf32> to vector<16x16x128xf32>
    %c0_3 = arith.constant 0 : index
    %c0_4 = arith.constant 0 : index
    %2 = vector.load %arg2[%c0_3, %c0_4] : memref<1x128xf32, #tpu.memory_space<vmem>>, vector<1x128xf32>
    %3 = vector.shape_cast %2 : vector<1x128xf32> to vector<1x1x128xf32>
    %4 = vector.broadcast %3 : vector<1x1x128xf32> to vector<16x16x128xf32>
    %5 = arith.mulf %1, %4 : vector<16x16x128xf32>
    %c0_5 = arith.constant 0 : index
    %c0_6 = arith.constant 0 : index
    %6 = vector.load %arg3[%c0_5, %c0_6] : memref<1x128xf32, #tpu.memory_space<vmem>>, vector<1x128xf32>
    %7 = vector.shape_cast %6 : vector<1x128xf32> to vector<1x1x128xf32>
    %8 = vector.broadcast %7 : vector<1x1x128xf32> to vector<16x16x128xf32>
    %9 = arith.addf %5, %8 : vector<16x16x128xf32>
    %cst = arith.constant 0.000000e+00 : f32
    %10 = vector.broadcast %cst : f32 to vector<16x16x128xf32>
    %11 = arith.maximumf %9, %10 : vector<16x16x128xf32>
    %cst_7 = arith.constant 0.000000e+00 : f32
    %12 = vector.broadcast %cst_7 : f32 to vector<1x18x128xf32>
    %cst_8 = arith.constant 0.000000e+00 : f32
    %13 = vector.broadcast %cst_8 : f32 to vector<16x1x128xf32>
    %c0_9 = arith.constant 0 : index
    %c0_10 = arith.constant 0 : index
    %c0_11 = arith.constant 0 : index
    %14 = vector.load %arg8[%c0_9, %c0_10, %c0_11] : memref<18x18x128xf32, #tpu.memory_space<vmem>>, vector<1x18x128xf32>
    tpu.vector_store %arg8[%c0_9, %c0_10, %c0_11], %12 {strides = array<i32>} : memref<18x18x128xf32, #tpu.memory_space<vmem>>, vector<1x18x128xf32>,
    %c17 = arith.constant 17 : index
    %c0_12 = arith.constant 0 : index
    %c0_13 = arith.constant 0 : index
    %15 = vector.load %arg8[%c17, %c0_12, %c0_13] : memref<18x18x128xf32, #tpu.memory_space<vmem>>, vector<1x18x128xf32>
    tpu.vector_store %arg8[%c17, %c0_12, %c0_13], %12 {strides = array<i32>} : memref<18x18x128xf32, #tpu.memory_space<vmem>>, vector<1x18x128xf32>,
    %c1 = arith.constant 1 : index
    %c0_14 = arith.constant 0 : index
    %c0_15 = arith.constant 0 : index
    %16 = vector.load %arg8[%c1, %c0_14, %c0_15] : memref<18x18x128xf32, #tpu.memory_space<vmem>>, vector<16x1x128xf32>
    tpu.vector_store %arg8[%c1, %c0_14, %c0_15], %13 {strides = array<i32>} : memref<18x18x128xf32, #tpu.memory_space<vmem>>, vector<16x1x128xf32>,
    %c1_16 = arith.constant 1 : index
    %c17_17 = arith.constant 17 : index
    %c0_18 = arith.constant 0 : index
    %17 = vector.load %arg8[%c1_16, %c17_17, %c0_18] : memref<18x18x128xf32, #tpu.memory_space<vmem>>, vector<16x1x128xf32>
    tpu.vector_store %arg8[%c1_16, %c17_17, %c0_18], %13 {strides = array<i32>} : memref<18x18x128xf32, #tpu.memory_space<vmem>>, vector<16x1x128xf32>,
    %c1_19 = arith.constant 1 : index
    %c1_20 = arith.constant 1 : index
    %c0_21 = arith.constant 0 : index
    %18 = vector.load %arg8[%c1_19, %c1_20, %c0_21] : memref<18x18x128xf32, #tpu.memory_space<vmem>>, vector<16x16x128xf32>
    tpu.vector_store %arg8[%c1_19, %c1_20, %c0_21], %11 {strides = array<i32>} : memref<18x18x128xf32, #tpu.memory_space<vmem>>, vector<16x16x128xf32>,
    %c0_22 = arith.constant 0 : index
    %c0_23 = arith.constant 0 : index
    %c0_24 = arith.constant 0 : index
    %19 = vector.load %arg8[%c0_22, %c0_23, %c0_24] : memref<18x18x128xf32, #tpu.memory_space<vmem>>, vector<18x18x128xf32>
    %20 = vector.extract_strided_slice %19 {offsets = [0, 0, 0], sizes = [16, 16, 128], strides = [1, 1, 1]} : vector<18x18x128xf32> to vector<16x16x128xf32>
    %21 = vector.shape_cast %20 : vector<16x16x128xf32> to vector<256x128xf32>
    %22 = vector.extract_strided_slice %19 {offsets = [0, 1, 0], sizes = [16, 16, 128], strides = [1, 1, 1]} : vector<18x18x128xf32> to vector<16x16x128xf32>
    %23 = vector.shape_cast %22 : vector<16x16x128xf32> to vector<256x128xf32>
    %24 = vector.extract_strided_slice %19 {offsets = [0, 2, 0], sizes = [16, 16, 128], strides = [1, 1, 1]} : vector<18x18x128xf32> to vector<16x16x128xf32>
    %25 = vector.shape_cast %24 : vector<16x16x128xf32> to vector<256x128xf32>
    %26 = vector.extract_strided_slice %19 {offsets = [1, 0, 0], sizes = [16, 16, 128], strides = [1, 1, 1]} : vector<18x18x128xf32> to vector<16x16x128xf32>
    %27 = vector.shape_cast %26 : vector<16x16x128xf32> to vector<256x128xf32>
    %28 = vector.extract_strided_slice %19 {offsets = [1, 1, 0], sizes = [16, 16, 128], strides = [1, 1, 1]} : vector<18x18x128xf32> to vector<16x16x128xf32>
    %29 = vector.shape_cast %28 : vector<16x16x128xf32> to vector<256x128xf32>
    %30 = vector.extract_strided_slice %19 {offsets = [1, 2, 0], sizes = [16, 16, 128], strides = [1, 1, 1]} : vector<18x18x128xf32> to vector<16x16x128xf32>
    %31 = vector.shape_cast %30 : vector<16x16x128xf32> to vector<256x128xf32>
    %32 = vector.extract_strided_slice %19 {offsets = [2, 0, 0], sizes = [16, 16, 128], strides = [1, 1, 1]} : vector<18x18x128xf32> to vector<16x16x128xf32>
    %33 = vector.shape_cast %32 : vector<16x16x128xf32> to vector<256x128xf32>
    %34 = vector.extract_strided_slice %19 {offsets = [2, 1, 0], sizes = [16, 16, 128], strides = [1, 1, 1]} : vector<18x18x128xf32> to vector<16x16x128xf32>
    %35 = vector.shape_cast %34 : vector<16x16x128xf32> to vector<256x128xf32>
    %36 = vector.extract_strided_slice %19 {offsets = [2, 2, 0], sizes = [16, 16, 128], strides = [1, 1, 1]} : vector<18x18x128xf32> to vector<16x16x128xf32>
    %37 = vector.shape_cast %36 : vector<16x16x128xf32> to vector<256x128xf32>
    %38 = tpu.concatenate %21, %23, %25, %27, %29, %31, %33, %35, %37 in 1 : vector<256x128xf32>, vector<256x128xf32>, vector<256x128xf32>, vector<256x128xf32>, vector<256x128xf32>, vector<256x128xf32>, vector<256x128xf32>, vector<256x128xf32>, vector<256x128xf32> -> vector<256x1152xf32>
    %39 = arith.truncf %38 : vector<256x1152xf32> to vector<256x1152xbf16>
    %c0_25 = arith.constant 0 : index
    %c0_26 = arith.constant 0 : index
    %40 = vector.load %arg4[%c0_25, %c0_26] : memref<1152x128xbf16, #tpu.memory_space<vmem>>, vector<1152x128xbf16>
    %cst_27 = arith.constant dense<0.000000e+00> : vector<256x128xf32>
    %41 = tpu.matmul %39, %40, %cst_27 {dimension_numbers = #tpu.dot_dimension_numbers<[1], [0], [0], [1], [0, 0, 1, 1], [], []>} : vector<256x1152xbf16>, vector<1152x128xbf16>, vector<256x128xf32> -> vector<256x128xf32>
    %c0_28 = arith.constant 0 : index
    %c0_29 = arith.constant 0 : index
    %42 = vector.load %arg5[%c0_28, %c0_29] : memref<256x128xf32, #tpu.memory_space<vmem>>, vector<256x128xf32>
    tpu.vector_store %arg5[%c0_28, %c0_29], %41 {strides = array<i32>} : memref<256x128xf32, #tpu.memory_space<vmem>>, vector<256x128xf32>,
    %cst_30 = arith.constant dense<0.000000e+00> : vector<128xf32>
    %43 = vector.multi_reduction <add>, %41, %cst_30 [0] : vector<256x128xf32> to vector<128xf32>
    %44 = vector.shape_cast %43 : vector<128xf32> to vector<1x128xf32>
    %45 = vector.shape_cast %44 : vector<1x128xf32> to vector<1x1x128xf32>
    %c0_31 = arith.constant 0 : index
    %c0_32 = arith.constant 0 : index
    %c0_33 = arith.constant 0 : index
    %46 = vector.load %arg6[%c0_31, %c0_32, %c0_33] : memref<1x1x128xf32, #tpu.memory_space<vmem>>, vector<1x1x128xf32>
    tpu.vector_store %arg6[%c0_31, %c0_32, %c0_33], %45 {strides = array<i32>} : memref<1x1x128xf32, #tpu.memory_space<vmem>>, vector<1x1x128xf32>,
    %47 = arith.mulf %41, %41 : vector<256x128xf32>
    %cst_34 = arith.constant dense<0.000000e+00> : vector<128xf32>
    %48 = vector.multi_reduction <add>, %47, %cst_34 [0] : vector<256x128xf32> to vector<128xf32>
    %49 = vector.shape_cast %48 : vector<128xf32> to vector<1x128xf32>
    %50 = vector.shape_cast %49 : vector<1x128xf32> to vector<1x1x128xf32>
    %c0_35 = arith.constant 0 : index
    %c0_36 = arith.constant 0 : index
    %c0_37 = arith.constant 0 : index
    %51 = vector.load %arg7[%c0_35, %c0_36, %c0_37] : memref<1x1x128xf32, #tpu.memory_space<vmem>>, vector<1x1x128xf32>
    tpu.vector_store %arg7[%c0_35, %c0_36, %c0_37], %50 {strides = array<i32>} : memref<1x1x128xf32, #tpu.memory_space<vmem>>, vector<1x1x128xf32>,
    return
  }
  func.func @transform_0(%arg0: i32) -> (i32, i32, i32, i32) {
    %c0_i32 = arith.constant 0 : i32
    %c0_i32_0 = arith.constant 0 : i32
    %c0_i32_1 = arith.constant 0 : i32
    %c0_i32_2 = arith.constant 0 : i32
    return %arg0, %c0_i32, %c0_i32_0, %c0_i32_1 : i32, i32, i32, i32
  }
  func.func @transform_1(%arg0: i32) -> (i32, i32) {
    %c0_i32 = arith.constant 0 : i32
    %c0_i32_0 = arith.constant 0 : i32
    %c0_i32_1 = arith.constant 0 : i32
    return %c0_i32, %c0_i32_0 : i32, i32
  }
  func.func @transform_2(%arg0: i32) -> (i32, i32) {
    %c0_i32 = arith.constant 0 : i32
    %c0_i32_0 = arith.constant 0 : i32
    %c0_i32_1 = arith.constant 0 : i32
    return %c0_i32, %c0_i32_0 : i32, i32
  }
  func.func @transform_3(%arg0: i32) -> (i32, i32) {
    %c0_i32 = arith.constant 0 : i32
    %c0_i32_0 = arith.constant 0 : i32
    %c0_i32_1 = arith.constant 0 : i32
    return %c0_i32, %c0_i32_0 : i32, i32
  }
  func.func @transform_4(%arg0: i32) -> (i32, i32) {
    %c0_i32 = arith.constant 0 : i32
    %c0_i32_0 = arith.constant 0 : i32
    return %arg0, %c0_i32 : i32, i32
  }
  func.func @transform_5(%arg0: i32) -> (i32, i32, i32) {
    %c0_i32 = arith.constant 0 : i32
    %c0_i32_0 = arith.constant 0 : i32
    %c0_i32_1 = arith.constant 0 : i32
    return %arg0, %c0_i32, %c0_i32_0 : i32, i32, i32
  }
  func.func @transform_6(%arg0: i32) -> (i32, i32, i32) {
    %c0_i32 = arith.constant 0 : i32
    %c0_i32_0 = arith.constant 0 : i32
    %c0_i32_1 = arith.constant 0 : i32
    return %arg0, %c0_i32, %c0_i32_0 : i32, i32, i32
  }
}

module attributes {stable_mosaic.version = 11 : i64} {
  func.func @_conv1x1_stats_kernel(%arg0: i32, %arg1: memref<256x128xf32, #tpu.memory_space<vmem>>, %arg2: memref<128x128xbf16, #tpu.memory_space<vmem>>, %arg3: memref<256x128xf32, #tpu.memory_space<vmem>>, %arg4: memref<1x1x128xf32, #tpu.memory_space<vmem>>, %arg5: memref<1x1x128xf32, #tpu.memory_space<vmem>>) attributes {dimension_semantics = [#tpu.dimension_semantics<parallel>], iteration_bounds = array<i64: 2>, scalar_prefetch = 0 : i64, scratch_operands = 0 : i64, tpu.core_type = #tpu.core_type<tc>, window_params = [{transform_indices = @transform_0, window_bounds = array<i64: 256, 128>}, {pipeline_mode = #tpu.pipeline_mode<synchronous>, transform_indices = @transform_1, window_bounds = array<i64: 128, 128>}, {transform_indices = @transform_2, window_bounds = array<i64: 256, 128>}, {transform_indices = @transform_3, window_bounds = array<i64: 1, 1, 128>}, {transform_indices = @transform_4, window_bounds = array<i64: 1, 1, 128>}]} {
    %c0 = arith.constant 0 : index
    %c0_0 = arith.constant 0 : index
    %0 = vector.load %arg1[%c0, %c0_0] : memref<256x128xf32, #tpu.memory_space<vmem>>, vector<256x128xf32>
    %1 = arith.truncf %0 : vector<256x128xf32> to vector<256x128xbf16>
    %c0_1 = arith.constant 0 : index
    %c0_2 = arith.constant 0 : index
    %2 = vector.load %arg2[%c0_1, %c0_2] : memref<128x128xbf16, #tpu.memory_space<vmem>>, vector<128x128xbf16>
    %cst = arith.constant dense<0.000000e+00> : vector<256x128xf32>
    %3 = tpu.matmul %1, %2, %cst {dimension_numbers = #tpu.dot_dimension_numbers<[1], [0], [0], [1], [0, 0, 1, 1], [], []>} : vector<256x128xbf16>, vector<128x128xbf16>, vector<256x128xf32> -> vector<256x128xf32>
    %c0_3 = arith.constant 0 : index
    %c0_4 = arith.constant 0 : index
    %4 = vector.load %arg3[%c0_3, %c0_4] : memref<256x128xf32, #tpu.memory_space<vmem>>, vector<256x128xf32>
    tpu.vector_store %arg3[%c0_3, %c0_4], %3 {strides = array<i32>} : memref<256x128xf32, #tpu.memory_space<vmem>>, vector<256x128xf32>,
    %cst_5 = arith.constant dense<0.000000e+00> : vector<128xf32>
    %5 = vector.multi_reduction <add>, %3, %cst_5 [0] : vector<256x128xf32> to vector<128xf32>
    %6 = vector.shape_cast %5 : vector<128xf32> to vector<1x128xf32>
    %7 = vector.shape_cast %6 : vector<1x128xf32> to vector<1x1x128xf32>
    %c0_6 = arith.constant 0 : index
    %c0_7 = arith.constant 0 : index
    %c0_8 = arith.constant 0 : index
    %8 = vector.load %arg4[%c0_6, %c0_7, %c0_8] : memref<1x1x128xf32, #tpu.memory_space<vmem>>, vector<1x1x128xf32>
    tpu.vector_store %arg4[%c0_6, %c0_7, %c0_8], %7 {strides = array<i32>} : memref<1x1x128xf32, #tpu.memory_space<vmem>>, vector<1x1x128xf32>,
    %9 = arith.mulf %3, %3 : vector<256x128xf32>
    %cst_9 = arith.constant dense<0.000000e+00> : vector<128xf32>
    %10 = vector.multi_reduction <add>, %9, %cst_9 [0] : vector<256x128xf32> to vector<128xf32>
    %11 = vector.shape_cast %10 : vector<128xf32> to vector<1x128xf32>
    %12 = vector.shape_cast %11 : vector<1x128xf32> to vector<1x1x128xf32>
    %c0_10 = arith.constant 0 : index
    %c0_11 = arith.constant 0 : index
    %c0_12 = arith.constant 0 : index
    %13 = vector.load %arg5[%c0_10, %c0_11, %c0_12] : memref<1x1x128xf32, #tpu.memory_space<vmem>>, vector<1x1x128xf32>
    tpu.vector_store %arg5[%c0_10, %c0_11, %c0_12], %12 {strides = array<i32>} : memref<1x1x128xf32, #tpu.memory_space<vmem>>, vector<1x1x128xf32>,
    return
  }
  func.func @transform_0(%arg0: i32) -> (i32, i32) {
    %c0_i32 = arith.constant 0 : i32
    %c0_i32_0 = arith.constant 0 : i32
    return %arg0, %c0_i32 : i32, i32
  }
  func.func @transform_1(%arg0: i32) -> (i32, i32) {
    %c0_i32 = arith.constant 0 : i32
    %c0_i32_0 = arith.constant 0 : i32
    %c0_i32_1 = arith.constant 0 : i32
    return %c0_i32, %c0_i32_0 : i32, i32
  }
  func.func @transform_2(%arg0: i32) -> (i32, i32) {
    %c0_i32 = arith.constant 0 : i32
    %c0_i32_0 = arith.constant 0 : i32
    return %arg0, %c0_i32 : i32, i32
  }
  func.func @transform_3(%arg0: i32) -> (i32, i32, i32) {
    %c0_i32 = arith.constant 0 : i32
    %c0_i32_0 = arith.constant 0 : i32
    %c0_i32_1 = arith.constant 0 : i32
    return %arg0, %c0_i32, %c0_i32_0 : i32, i32, i32
  }
  func.func @transform_4(%arg0: i32) -> (i32, i32, i32) {
    %c0_i32 = arith.constant 0 : i32
    %c0_i32_0 = arith.constant 0 : i32
    %c0_i32_1 = arith.constant 0 : i32
    return %arg0, %c0_i32, %c0_i32_0 : i32, i32, i32
  }
}

module attributes {stable_mosaic.version = 11 : i64} {
  func.func @_bn_relu_conv1x1_stats_kernel(%arg0: i32, %arg1: memref<256x128xf32, #tpu.memory_space<vmem>>, %arg2: memref<1x128xf32, #tpu.memory_space<vmem>>, %arg3: memref<1x128xf32, #tpu.memory_space<vmem>>, %arg4: memref<128x128xbf16, #tpu.memory_space<vmem>>, %arg5: memref<256x128xf32, #tpu.memory_space<vmem>>, %arg6: memref<1x1x128xf32, #tpu.memory_space<vmem>>, %arg7: memref<1x1x128xf32, #tpu.memory_space<vmem>>) attributes {dimension_semantics = [#tpu.dimension_semantics<parallel>], iteration_bounds = array<i64: 2>, scalar_prefetch = 0 : i64, scratch_operands = 0 : i64, tpu.core_type = #tpu.core_type<tc>, window_params = [{transform_indices = @transform_0, window_bounds = array<i64: 256, 128>}, {pipeline_mode = #tpu.pipeline_mode<synchronous>, transform_indices = @transform_1, window_bounds = array<i64: 1, 128>}, {pipeline_mode = #tpu.pipeline_mode<synchronous>, transform_indices = @transform_2, window_bounds = array<i64: 1, 128>}, {pipeline_mode = #tpu.pipeline_mode<synchronous>, transform_indices = @transform_3, window_bounds = array<i64: 128, 128>}, {transform_indices = @transform_4, window_bounds = array<i64: 256, 128>}, {transform_indices = @transform_5, window_bounds = array<i64: 1, 1, 128>}, {transform_indices = @transform_6, window_bounds = array<i64: 1, 1, 128>}]} {
    %c0 = arith.constant 0 : index
    %c0_0 = arith.constant 0 : index
    %0 = vector.load %arg1[%c0, %c0_0] : memref<256x128xf32, #tpu.memory_space<vmem>>, vector<256x128xf32>
    %c0_1 = arith.constant 0 : index
    %c0_2 = arith.constant 0 : index
    %1 = vector.load %arg2[%c0_1, %c0_2] : memref<1x128xf32, #tpu.memory_space<vmem>>, vector<1x128xf32>
    %2 = vector.broadcast %1 : vector<1x128xf32> to vector<256x128xf32>
    %3 = arith.mulf %0, %2 : vector<256x128xf32>
    %c0_3 = arith.constant 0 : index
    %c0_4 = arith.constant 0 : index
    %4 = vector.load %arg3[%c0_3, %c0_4] : memref<1x128xf32, #tpu.memory_space<vmem>>, vector<1x128xf32>
    %5 = vector.broadcast %4 : vector<1x128xf32> to vector<256x128xf32>
    %6 = arith.addf %3, %5 : vector<256x128xf32>
    %cst = arith.constant 0.000000e+00 : f32
    %7 = vector.broadcast %cst : f32 to vector<256x128xf32>
    %8 = arith.maximumf %6, %7 : vector<256x128xf32>
    %9 = arith.truncf %8 : vector<256x128xf32> to vector<256x128xbf16>
    %c0_5 = arith.constant 0 : index
    %c0_6 = arith.constant 0 : index
    %10 = vector.load %arg4[%c0_5, %c0_6] : memref<128x128xbf16, #tpu.memory_space<vmem>>, vector<128x128xbf16>
    %cst_7 = arith.constant dense<0.000000e+00> : vector<256x128xf32>
    %11 = tpu.matmul %9, %10, %cst_7 {dimension_numbers = #tpu.dot_dimension_numbers<[1], [0], [0], [1], [0, 0, 1, 1], [], []>} : vector<256x128xbf16>, vector<128x128xbf16>, vector<256x128xf32> -> vector<256x128xf32>
    %c0_8 = arith.constant 0 : index
    %c0_9 = arith.constant 0 : index
    %12 = vector.load %arg5[%c0_8, %c0_9] : memref<256x128xf32, #tpu.memory_space<vmem>>, vector<256x128xf32>
    tpu.vector_store %arg5[%c0_8, %c0_9], %11 {strides = array<i32>} : memref<256x128xf32, #tpu.memory_space<vmem>>, vector<256x128xf32>,
    %cst_10 = arith.constant dense<0.000000e+00> : vector<128xf32>
    %13 = vector.multi_reduction <add>, %11, %cst_10 [0] : vector<256x128xf32> to vector<128xf32>
    %14 = vector.shape_cast %13 : vector<128xf32> to vector<1x128xf32>
    %15 = vector.shape_cast %14 : vector<1x128xf32> to vector<1x1x128xf32>
    %c0_11 = arith.constant 0 : index
    %c0_12 = arith.constant 0 : index
    %c0_13 = arith.constant 0 : index
    %16 = vector.load %arg6[%c0_11, %c0_12, %c0_13] : memref<1x1x128xf32, #tpu.memory_space<vmem>>, vector<1x1x128xf32>
    tpu.vector_store %arg6[%c0_11, %c0_12, %c0_13], %15 {strides = array<i32>} : memref<1x1x128xf32, #tpu.memory_space<vmem>>, vector<1x1x128xf32>,
    %17 = arith.mulf %11, %11 : vector<256x128xf32>
    %cst_14 = arith.constant dense<0.000000e+00> : vector<128xf32>
    %18 = vector.multi_reduction <add>, %17, %cst_14 [0] : vector<256x128xf32> to vector<128xf32>
    %19 = vector.shape_cast %18 : vector<128xf32> to vector<1x128xf32>
    %20 = vector.shape_cast %19 : vector<1x128xf32> to vector<1x1x128xf32>
    %c0_15 = arith.constant 0 : index
    %c0_16 = arith.constant 0 : index
    %c0_17 = arith.constant 0 : index
    %21 = vector.load %arg7[%c0_15, %c0_16, %c0_17] : memref<1x1x128xf32, #tpu.memory_space<vmem>>, vector<1x1x128xf32>
    tpu.vector_store %arg7[%c0_15, %c0_16, %c0_17], %20 {strides = array<i32>} : memref<1x1x128xf32, #tpu.memory_space<vmem>>, vector<1x1x128xf32>,
    return
  }
  func.func @transform_0(%arg0: i32) -> (i32, i32) {
    %c0_i32 = arith.constant 0 : i32
    %c0_i32_0 = arith.constant 0 : i32
    return %arg0, %c0_i32 : i32, i32
  }
  func.func @transform_1(%arg0: i32) -> (i32, i32) {
    %c0_i32 = arith.constant 0 : i32
    %c0_i32_0 = arith.constant 0 : i32
    %c0_i32_1 = arith.constant 0 : i32
    return %c0_i32, %c0_i32_0 : i32, i32
  }
  func.func @transform_2(%arg0: i32) -> (i32, i32) {
    %c0_i32 = arith.constant 0 : i32
    %c0_i32_0 = arith.constant 0 : i32
    %c0_i32_1 = arith.constant 0 : i32
    return %c0_i32, %c0_i32_0 : i32, i32
  }
  func.func @transform_3(%arg0: i32) -> (i32, i32) {
    %c0_i32 = arith.constant 0 : i32
    %c0_i32_0 = arith.constant 0 : i32
    %c0_i32_1 = arith.constant 0 : i32
    return %c0_i32, %c0_i32_0 : i32, i32
  }
  func.func @transform_4(%arg0: i32) -> (i32, i32) {
    %c0_i32 = arith.constant 0 : i32
    %c0_i32_0 = arith.constant 0 : i32
    return %arg0, %c0_i32 : i32, i32
  }
  func.func @transform_5(%arg0: i32) -> (i32, i32, i32) {
    %c0_i32 = arith.constant 0 : i32
    %c0_i32_0 = arith.constant 0 : i32
    %c0_i32_1 = arith.constant 0 : i32
    return %arg0, %c0_i32, %c0_i32_0 : i32, i32, i32
  }
  func.func @transform_6(%arg0: i32) -> (i32, i32, i32) {
    %c0_i32 = arith.constant 0 : i32
    %c0_i32_0 = arith.constant 0 : i32
    %c0_i32_1 = arith.constant 0 : i32
    return %arg0, %c0_i32, %c0_i32_0 : i32, i32, i32
  }
}

module attributes {stable_mosaic.version = 11 : i64} {
  func.func @_bn_add_relu_kernel(%arg0: i32, %arg1: memref<256x128xf32, #tpu.memory_space<vmem>>, %arg2: memref<1x128xf32, #tpu.memory_space<vmem>>, %arg3: memref<1x128xf32, #tpu.memory_space<vmem>>, %arg4: memref<256x128xf32, #tpu.memory_space<vmem>>, %arg5: memref<256x128xf32, #tpu.memory_space<vmem>>) attributes {dimension_semantics = [#tpu.dimension_semantics<parallel>], iteration_bounds = array<i64: 2>, scalar_prefetch = 0 : i64, scratch_operands = 0 : i64, tpu.core_type = #tpu.core_type<tc>, window_params = [{transform_indices = @transform_0, window_bounds = array<i64: 256, 128>}, {pipeline_mode = #tpu.pipeline_mode<synchronous>, transform_indices = @transform_1, window_bounds = array<i64: 1, 128>}, {pipeline_mode = #tpu.pipeline_mode<synchronous>, transform_indices = @transform_2, window_bounds = array<i64: 1, 128>}, {transform_indices = @transform_3, window_bounds = array<i64: 256, 128>}, {transform_indices = @transform_4, window_bounds = array<i64: 256, 128>}]} {
    %c0 = arith.constant 0 : index
    %c0_0 = arith.constant 0 : index
    %0 = vector.load %arg1[%c0, %c0_0] : memref<256x128xf32, #tpu.memory_space<vmem>>, vector<256x128xf32>
    %c0_1 = arith.constant 0 : index
    %c0_2 = arith.constant 0 : index
    %1 = vector.load %arg2[%c0_1, %c0_2] : memref<1x128xf32, #tpu.memory_space<vmem>>, vector<1x128xf32>
    %2 = vector.broadcast %1 : vector<1x128xf32> to vector<256x128xf32>
    %3 = arith.mulf %0, %2 : vector<256x128xf32>
    %c0_3 = arith.constant 0 : index
    %c0_4 = arith.constant 0 : index
    %4 = vector.load %arg3[%c0_3, %c0_4] : memref<1x128xf32, #tpu.memory_space<vmem>>, vector<1x128xf32>
    %5 = vector.broadcast %4 : vector<1x128xf32> to vector<256x128xf32>
    %6 = arith.addf %3, %5 : vector<256x128xf32>
    %c0_5 = arith.constant 0 : index
    %c0_6 = arith.constant 0 : index
    %7 = vector.load %arg4[%c0_5, %c0_6] : memref<256x128xf32, #tpu.memory_space<vmem>>, vector<256x128xf32>
    %8 = arith.addf %6, %7 : vector<256x128xf32>
    %cst = arith.constant 0.000000e+00 : f32
    %9 = vector.broadcast %cst : f32 to vector<256x128xf32>
    %10 = arith.maximumf %8, %9 : vector<256x128xf32>
    %c0_7 = arith.constant 0 : index
    %c0_8 = arith.constant 0 : index
    %11 = vector.load %arg5[%c0_7, %c0_8] : memref<256x128xf32, #tpu.memory_space<vmem>>, vector<256x128xf32>
    tpu.vector_store %arg5[%c0_7, %c0_8], %10 {strides = array<i32>} : memref<256x128xf32, #tpu.memory_space<vmem>>, vector<256x128xf32>,
    return
  }
  func.func @transform_0(%arg0: i32) -> (i32, i32) {
    %c0_i32 = arith.constant 0 : i32
    %c0_i32_0 = arith.constant 0 : i32
    return %arg0, %c0_i32 : i32, i32
  }
  func.func @transform_1(%arg0: i32) -> (i32, i32) {
    %c0_i32 = arith.constant 0 : i32
    %c0_i32_0 = arith.constant 0 : i32
    %c0_i32_1 = arith.constant 0 : i32
    return %c0_i32, %c0_i32_0 : i32, i32
  }
  func.func @transform_2(%arg0: i32) -> (i32, i32) {
    %c0_i32 = arith.constant 0 : i32
    %c0_i32_0 = arith.constant 0 : i32
    %c0_i32_1 = arith.constant 0 : i32
    return %c0_i32, %c0_i32_0 : i32, i32
  }
  func.func @transform_3(%arg0: i32) -> (i32, i32) {
    %c0_i32 = arith.constant 0 : i32
    %c0_i32_0 = arith.constant 0 : i32
    return %arg0, %c0_i32 : i32, i32
  }
  func.func @transform_4(%arg0: i32) -> (i32, i32) {
    %c0_i32 = arith.constant 0 : i32
    %c0_i32_0 = arith.constant 0 : i32
    return %arg0, %c0_i32 : i32, i32
  }
}

</mosaic_0001>

<bundles_post_ra>
// kernel: bottleneck_forward.4
= control target key start
LH: loop header
LB: loop body
LE: loop exit
PB: predicated region body
PF: predicated region fallthrough
CT: control target
= control target key end

     0   :  { %s894_s15 = smov 0   ;;  %s1099_s0 = inlined_call_operand.vmem [shape: f32[512,128], index: 0, kind: input, shape index: {}]   ;;  %s1100_s1 = inlined_call_operand.vmem [shape: bf16[128,128], index: 1, kind: input, shape index: {}]   ;;  %s1101_s2 = inlined_call_operand.vmem [shape: f32[512,128], index: 2, kind: output, shape index: {0}]   ;;  %s1102_s3 = inlined_call_operand.vmem [shape: f32[2,1,128], index: 3, kind: output, shape index: {1}]   ;;  %s1103_s4 = inlined_call_operand.vmem [shape: f32[2,1,128], index: 4, kind: output, shape index: {2}]  }
   0x1 LB: > { %s900_s16 = sadd.s32 4294967295, %s867_s15   ;;  %p742_p0 = scmp.ge.s32.totalorder %s867_s15, 1  ;;  %s867_s15 = sphi %s894_s15, %s15_s15  }
   0x2   : > { %p168_p1 = scmp.lt.s32.totalorder %s867_s15, 3 }
   0x4   : > { %p169_p2 = pnand %p742_p0, %p168_p1 }
   0x5   : > { %v853_v0 = vld [vmem:[%s1100_s1] sm:$0xff] (!%p169_p2)   ;;  %s743_s19 = sshll.u32 (!%p169_p2), %s900_s16, 5  ;;  %v854_v1 = vld [vmem:[%s1100_s1 + $0x8] sm:$0xff] (!%p169_p2)   ;;  %v855_v2 = vld [vmem:[%s1100_s1 + $0x10] sm:$0xff] (!%p169_p2)   ;;  %p212_p4 = scmp.lt.s32.totalorder (!%p169_p2), %s900_s16, 1 }
   0x6   : > { %172 = sbr.rel (%p169_p2) target bundleno = 330 (0x14a), region = 28  ;;  %p201_p3 = scmp.lt.s32.totalorder (!%p169_p2), %s743_s19, 63  ;;  %781 = vmatprep.subr.bf16.mxu0 (!%p169_p2), %v853_v0  ;;  %829 = vmatprep.subr.bf16.mxu1 (!%p169_p2), %v853_v0  ;;  %v856_v3 = vld [vmem:[%s1100_s1 + $0x18] sm:$0xff] (!%p169_p2)   ;;  %v857_v7 = vld [vmem:[%s1100_s1 + $0x20] sm:$0xff] (!%p169_p2)   ;;  %v858_v11 = vld [vmem:[%s1100_s1 + $0x28] sm:$0xff] (!%p169_p2)  }
   0x7   : > { %782 = vmatpush3.bf16.msra.mxu0 (!%p169_p2), %v853_v0  ;;  %837 = vmatpush3.bf16.msra.mxu1 (!%p169_p2), %v853_v0  ;;  %v859_v12 = vld [vmem:[%s1100_s1 + $0x30] sm:$0xff] (!%p169_p2)   ;;  %v860_v13 = vld [vmem:[%s1100_s1 + $0x38] sm:$0xff] (!%p169_p2)  }
   0x8   : > { %783 = vmatprep.subr.bf16.mxu0 (!%p169_p2), %v854_v1  ;;  %830 = vmatprep.subr.bf16.mxu1 (!%p169_p2), %v854_v1 }
   0xb   : > { %784 = vmatpush3.bf16.msra.mxu0 (!%p169_p2), %v854_v1  ;;  %838 = vmatpush3.bf16.msra.mxu1 (!%p169_p2), %v854_v1 }
   0xc   : > { %785 = vmatprep.subr.bf16.mxu0 (!%p169_p2), %v855_v2  ;;  %831 = vmatprep.subr.bf16.mxu1 (!%p169_p2), %v855_v2 }
   0xd   : > { %s1105_s19 = smov (!%p201_p3, %s743_s19), 63  ;;  %s1107_s16 = smov (!%p212_p4, %s900_s16), 1 }
   0xe   : > { %s744_s24 = sshll.u32 %s1105_s19, 3  ;;  %s214_s19 = scalar_lea.vmem %s1102_s3, %s1107_s16 }
   0xf   : > { %s922_s27 = scalar_lea.vmem %s1099_s0, %s744_s24  ;;  %786 = vmatpush3.bf16.msra.mxu0 %v855_v2  ;;  %839 = vmatpush3.bf16.msra.mxu1 %v855_v2  ;;  %s976_s14 = scalar_lea.vmem %s1101_s2, %s744_s24 }
  0x10   : > { %v219_v4 = vld [vmem:[%s922_s27] sm:$0xff]  ;;  %v220_v5 = vld [vmem:[%s922_s27 + $0x8] sm:$0xff]  ;;  %787 = vmatprep.subr.bf16.mxu0 %v856_v3  ;;  %832 = vmatprep.subr.bf16.mxu1 %v856_v3  ;;  %v221_v14 = vld [vmem:[%s922_s27 + $0x10] sm:$0xff]  ;;  %s217_s22 = scalar_lea.vmem %s1103_s4, %s1107_s16 }
  0x11   : > { %v251_v6 = vpack.c.bf16 %v220_v5, %v219_v4  ;;  %v235_v8 = vld [vmem:[%s922_s27 + $0x80] sm:$0xff]  ;;  %v236_v9 = vld [vmem:[%s922_s27 + $0x88] sm:$0xff]  ;;  %v222_v15 = vld [vmem:[%s922_s27 + $0x18] sm:$0xff] }
  0x12   : > { %v259_v10 = vpack.c.bf16 %v236_v9, %v235_v8  ;;  %v223_v16 = vld [vmem:[%s922_s27 + $0x20] sm:$0xff]  ;;  %v224_v17 = vld [vmem:[%s922_s27 + $0x28] sm:$0xff]  ;;  %v237_v18 = vld [vmem:[%s922_s27 + $0x90] sm:$0xff]  ;;  %v252_v22 = vpack.c.bf16 %v222_v15, %v221_v14 }
  0x13   : > { %797 = vmatprep.mubr.bf16.mxu0 %v251_v6  ;;  %788 = vmatpush3.bf16.msra.mxu0 %v856_v3  ;;  %v238_v19 = vld [vmem:[%s922_s27 + $0x98] sm:$0xff]  ;;  %v239_v20 = vld [vmem:[%s922_s27 + $0xa0] sm:$0xff]  ;;  %v240_v21 = vld [vmem:[%s922_s27 + $0xa8] sm:$0xff]  ;;  %v253_v23 = vpack.c.bf16 %v224_v17, %v223_v16 }
  0x14   : > { %789 = vmatprep.subr.bf16.mxu0 %v857_v7  ;;  %840 = vmatpush3.bf16.msra.mxu1 %v856_v3  ;;  %v260_v24 = vpack.c.bf16 %v238_v19, %v237_v18  ;;  %v261_v25 = vpack.c.bf16 %v240_v21, %v239_v20  ;;  %v225_v26 = vld [vmem:[%s922_s27 + $0x30] sm:$0xff]  ;;  %v226_v27 = vld [vmem:[%s922_s27 + $0x38] sm:$0xff]  ;;  %v227_v28 = vld [vmem:[%s922_s27 + $0x40] sm:$0xff] }
  0x15   : > { %833 = vmatprep.subr.bf16.mxu1 %v857_v7  ;;  %813 = vmatprep.mubr.bf16.mxu1 %v259_v10  ;;  %v228_v29 = vld [vmem:[%s922_s27 + $0x48] sm:$0xff]  ;;  %v241_v30 = vld [vmem:[%s922_s27 + $0xb0] sm:$0xff]  ;;  %v242_v31 = vld [vmem:[%s922_s27 + $0xb8] sm:$0xff]  ;;  %v254_v34 = vpack.c.bf16 %v226_v27, %v225_v26 }
  0x16   : > { %v243_v32 = vld [vmem:[%s922_s27 + $0xc0] sm:$0xff]  ;;  %v244_v33 = vld [vmem:[%s922_s27 + $0xc8] sm:$0xff]  ;;  %v255_v35 = vpack.c.bf16 %v228_v29, %v227_v28  ;;  %v262_v36 = vpack.c.bf16 %v242_v31, %v241_v30  ;;  %v229_v38 = vld [vmem:[%s922_s27 + $0x50] sm:$0xff] }
  0x17   : > { %790 = vmatpush3.bf16.msra.mxu0 %v857_v7  ;;  %v263_v37 = vpack.c.bf16 %v244_v33, %v243_v32  ;;  %v230_v39 = vld [vmem:[%s922_s27 + $0x58] sm:$0xff]  ;;  %v231_v40 = vld [vmem:[%s922_s27 + $0x60] sm:$0xff]  ;;  %v232_v41 = vld [vmem:[%s922_s27 + $0x68] sm:$0xff] }
  0x18   : > { %791 = vmatprep.subr.bf16.mxu0 %v858_v11  ;;  %841 = vmatpush3.bf16.msra.mxu1 %v857_v7  ;;  %v245_v42 = vld [vmem:[%s922_s27 + $0xd0] sm:$0xff]  ;;  %v246_v43 = vld [vmem:[%s922_s27 + $0xd8] sm:$0xff]  ;;  %v247_v44 = vld [vmem:[%s922_s27 + $0xe0] sm:$0xff]  ;;  %v256_v46 = vpack.c.bf16 %v230_v39, %v229_v38  ;;  %v257_v47 = vpack.c.bf16 %v232_v41, %v231_v40 }
  0x19   : > { %834 = vmatprep.subr.bf16.mxu1 %v858_v11  ;;  %v248_v45 = vld [vmem:[%s922_s27 + $0xe8] sm:$0xff]  ;;  %v264_v48 = vpack.c.bf16 %v246_v43, %v245_v42  ;;  %v233_v50 = vld [vmem:[%s922_s27 + $0x70] sm:$0xff]  ;;  %v234_v51 = vld [vmem:[%s922_s27 + $0x78] sm:$0xff] }
  0x1a   : > { %v265_v49 = vpack.c.bf16 %v248_v45, %v247_v44  ;;  %v249_v52 = vld [vmem:[%s922_s27 + $0xf0] sm:$0xff]  ;;  %v250_v53 = vld [vmem:[%s922_s27 + $0xf8] sm:$0xff]  ;;  %v258_v54 = vpack.c.bf16 %v234_v51, %v233_v50 }
  0x1b   : > { %792 = vmatpush3.bf16.msra.mxu0 %v858_v11  ;;  %v266_v55 = vpack.c.bf16 %v250_v53, %v249_v52 }
  0x1c   : > { %793 = vmatprep.subr.bf16.mxu0 %v859_v12  ;;  %842 = vmatpush3.bf16.msra.mxu1 %v858_v11 }
  0x1d   : > { %835 = vmatprep.subr.bf16.mxu1 %v859_v12 }
  0x1f   : > { %794 = vmatpush3.bf16.msra.mxu0 %v859_v12 }
  0x20   : > { %795 = vmatprep.subr.bf16.mxu0 %v860_v13  ;;  %843 = vmatpush3.bf16.msra.mxu1 %v859_v12 }
  0x21   : > { %836 = vmatprep.subr.bf16.mxu1 %v860_v13 }
  0x23   : > { %796 = vmatpush3.bf16.msra.mxu0 %v860_v13 }
  0x24   : > { %844 = vmatpush3.bf16.msra.mxu1 %v860_v13 }
  0x26   : > { %798 = vmatmul.mubr.bf16.vlgmr.msra.gmra.mrb[0].mxu0 %v252_v22 }
  0x27   : > { %801 = vmatprep.mubr.bf16.mxu0 %v253_v23  ;;  %814 = vmatmul.mubr.bf16.vlgmr.msra.gmra.mrb[0].mxu1 %v260_v24 }
  0x28   : > { %817 = vmatprep.mubr.bf16.mxu1 %v261_v25 }
  0x2e   : > { %802 = vmatmul.mubr.bf16.gmra.mrb[4].mxu0 %v254_v34 }
  0x2f   : > { %805 = vmatprep.mubr.bf16.mxu0 %v255_v35  ;;  %818 = vmatmul.mubr.bf16.gmra.mrb[4].mxu1 %v262_v36 }
  0x30   : > { %821 = vmatprep.mubr.bf16.mxu1 %v263_v37 }
  0x36   : > { %806 = vmatmul.mubr.bf16.gmra.mrb[8].mxu0 %v256_v46 }
  0x37   : > { %809 = vmatprep.mubr.bf16.mxu0 %v257_v47  ;;  %822 = vmatmul.mubr.bf16.gmra.mrb[8].mxu1 %v264_v48 }
  0x38   : > { %825 = vmatprep.mubr.bf16.mxu1 %v265_v49 }
  0x3e   : > { %810 = vmatmul.mubr.bf16.gmra.mrb[12].mxu0 %v258_v54 }
  0x3f   : > { %826 = vmatmul.mubr.bf16.gmra.mrb[12].mxu1 %v266_v55 }
  0xf9   : > { %v799_v56 = vpop.f32.mrb[0].mxu0 }
  0xfa   : > { %494 = vst [vmem:[%s976_s14 + $0x10] sm:$0xff] %v799_v56  ;;  %v365_v57 = vpop.f32.mrb[1].mxu0  ;;  %v979_v58 = vpop.f32.mrb[0].mxu1  ;;  %v564_v3 = vmul.f32 %v799_v56, %v799_v56 }
  0xfb   : > { %492 = vst [vmem:[%s976_s14] sm:$0xff] %v365_v57  ;;  %v800_v59 = vpop.f32.mrb[2].mxu0  ;;  %510 = vst [vmem:[%s976_s14 + $0x90] sm:$0xff] %v979_v58  ;;  %v984_v60 = vpop.f32.mrb[1].mxu1  ;;  %v562_v63 = vmul.f32 %v365_v57, %v365_v57 }
  0xfc   : > { %495 = vst [vmem:[%s976_s14 + $0x18] sm:$0xff] %v800_v59  ;;  %v368_v61 = vpop.f32.mrb[3].mxu0  ;;  %508 = vst [vmem:[%s976_s14 + $0x80] sm:$0xff] %v984_v60  ;;  %v989_v62 = vpop.f32.mrb[2].mxu1  ;;  %v565_v6 = vmul.f32 %v800_v59, %v800_v59 }
  0xfd   : > { %493 = vst [vmem:[%s976_s14 + $0x8] sm:$0xff] %v368_v61  ;;  %v524_v0 = vadd.f32 %v368_v61, %v365_v57  ;;  %v563_v1 = vmul.f32 %v368_v61, %v368_v61  ;;  %511 = vst [vmem:[%s976_s14 + $0x98] sm:$0xff] %v989_v62  ;;  %v994_v2 = vpop.f32.mrb[3].mxu1 }
  0xfe   : > { %509 = vst [vmem:[%s976_s14 + $0x88] sm:$0xff] %v994_v2 }
  0xff   : > { %v525_v4 = vadd.f32 %v799_v56, %v524_v0  ;;  %v594_v5 = vadd.f32 %v563_v1, %v562_v63 }
 0x101   : > { %v595_v7 = vadd.f32 %v594_v5, %v564_v3  ;;  %v803_v8 = vpop.f32.mrb[4].mxu0  ;;  %v526_v9 = vadd.f32 %v800_v59, %v525_v4 }
 0x102   : > { %498 = vst [vmem:[%s976_s14 + $0x30] sm:$0xff] %v803_v8  ;;  %v381_v10 = vpop.f32.mrb[5].mxu0  ;;  %v999_v11 = vpop.f32.mrb[4].mxu1  ;;  %v568_v23 = vmul.f32 %v803_v8, %v803_v8 }
 0x103   : > { %496 = vst [vmem:[%s976_s14 + $0x20] sm:$0xff] %v381_v10  ;;  %v527_v12 = vadd.f32 %v526_v9, %v381_v10  ;;  %v566_v13 = vmul.f32 %v381_v10, %v381_v10  ;;  %v596_v14 = vadd.f32 %v595_v7, %v565_v6  ;;  %v804_v15 = vpop.f32.mrb[6].mxu0  ;;  %514 = vst [vmem:[%s976_s14 + $0xb0] sm:$0xff] %v999_v11  ;;  %v1004_v16 = vpop.f32.mrb[5].mxu1 }
 0x104   : > { %499 = vst [vmem:[%s976_s14 + $0x38] sm:$0xff] %v804_v15  ;;  %v384_v17 = vpop.f32.mrb[7].mxu0  ;;  %512 = vst [vmem:[%s976_s14 + $0xa0] sm:$0xff] %v1004_v16  ;;  %v1009_v18 = vpop.f32.mrb[6].mxu1  ;;  %v569_v26 = vmul.f32 %v804_v15, %v804_v15  ;;  %v578_v9 = vmul.f32 %v984_v60, %v984_v60 }
 0x105   : > { %v597_v19 = vadd.f32 %v596_v14, %v566_v13  ;;  %497 = vst [vmem:[%s976_s14 + $0x28] sm:$0xff] %v384_v17  ;;  %v528_v20 = vadd.f32 %v527_v12, %v384_v17  ;;  %v567_v21 = vmul.f32 %v384_v17, %v384_v17  ;;  %515 = vst [vmem:[%s976_s14 + $0xb8] sm:$0xff] %v1009_v18  ;;  %v1014_v22 = vpop.f32.mrb[7].mxu1 }
 0x106   : > { %513 = vst [vmem:[%s976_s14 + $0xa8] sm:$0xff] %v1014_v22  ;;  %v580_v17 = vmul.f32 %v979_v58, %v979_v58 }
 0x107   : > { %v529_v24 = vadd.f32 %v803_v8, %v528_v20  ;;  %v598_v25 = vadd.f32 %v597_v19, %v567_v21  ;;  %v581_v21 = vmul.f32 %v989_v62, %v989_v62 }
 0x109   : > { %v599_v27 = vadd.f32 %v598_v25, %v568_v23  ;;  %v807_v28 = vpop.f32.mrb[8].mxu0  ;;  %v530_v29 = vadd.f32 %v804_v15, %v529_v24  ;;  %v579_v15 = vmul.f32 %v994_v2, %v994_v2 }
 0x10a   : > { %502 = vst [vmem:[%s976_s14 + $0x50] sm:$0xff] %v807_v28  ;;  %v397_v30 = vpop.f32.mrb[9].mxu0  ;;  %v1019_v31 = vpop.f32.mrb[8].mxu1  ;;  %v572_v43 = vmul.f32 %v807_v28, %v807_v28 }
 0x10b   : > { %500 = vst [vmem:[%s976_s14 + $0x40] sm:$0xff] %v397_v30  ;;  %v531_v32 = vadd.f32 %v530_v29, %v397_v30  ;;  %v570_v33 = vmul.f32 %v397_v30, %v397_v30  ;;  %v600_v34 = vadd.f32 %v599_v27, %v569_v26  ;;  %v808_v35 = vpop.f32.mrb[10].mxu0  ;;  %518 = vst [vmem:[%s976_s14 + $0xd0] sm:$0xff] %v1019_v31  ;;  %v1024_v36 = vpop.f32.mrb[9].mxu1 }
 0x10c   : > { %503 = vst [vmem:[%s976_s14 + $0x58] sm:$0xff] %v808_v35  ;;  %v400_v37 = vpop.f32.mrb[11].mxu0  ;;  %516 = vst [vmem:[%s976_s14 + $0xc0] sm:$0xff] %v1024_v36  ;;  %v1029_v38 = vpop.f32.mrb[10].mxu1  ;;  %v573_v46 = vmul.f32 %v808_v35, %v808_v35 }
 0x10d   : > { %v601_v39 = vadd.f32 %v600_v34, %v570_v33  ;;  %501 = vst [vmem:[%s976_s14 + $0x48] sm:$0xff] %v400_v37  ;;  %v532_v40 = vadd.f32 %v531_v32, %v400_v37  ;;  %v571_v41 = vmul.f32 %v400_v37, %v400_v37  ;;  %519 = vst [vmem:[%s976_s14 + $0xd8] sm:$0xff] %v1029_v38  ;;  %v1034_v42 = vpop.f32.mrb[11].mxu1 }
 0x10e   : > { %517 = vst [vmem:[%s976_s14 + $0xc8] sm:$0xff] %v1034_v42 }
 0x10f   : > { %v533_v44 = vadd.f32 %v807_v28, %v532_v40  ;;  %v602_v45 = vadd.f32 %v601_v39, %v571_v41  ;;  %v583_v28 = vmul.f32 %v1014_v22, %v1014_v22  ;;  %v587_v39 = vmul.f32 %v1034_v42, %v1034_v42 }
 0x111   : > { %v603_v47 = vadd.f32 %v602_v45, %v572_v43  ;;  %v811_v48 = vpop.f32.mrb[12].mxu0  ;;  %v534_v49 = vadd.f32 %v808_v35, %v533_v44 }
 0x112   : > { %506 = vst [vmem:[%s976_s14 + $0x70] sm:$0xff] %v811_v48  ;;  %v413_v50 = vpop.f32.mrb[13].mxu0  ;;  %v1039_v51 = vpop.f32.mrb[12].mxu1  ;;  %v576_v3 = vmul.f32 %v811_v48, %v811_v48 }
 0x113   : > { %504 = vst [vmem:[%s976_s14 + $0x60] sm:$0xff] %v413_v50  ;;  %v535_v52 = vadd.f32 %v534_v49, %v413_v50  ;;  %v574_v53 = vmul.f32 %v413_v50, %v413_v50  ;;  %v604_v54 = vadd.f32 %v603_v47, %v573_v46  ;;  %v812_v55 = vpop.f32.mrb[14].mxu0  ;;  %522 = vst [vmem:[%s976_s14 + $0xf0] sm:$0xff] %v1039_v51  ;;  %v477_v56 = vpop.f32.mrb[13].mxu1 }
 0x114   : > { %507 = vst [vmem:[%s976_s14 + $0x78] sm:$0xff] %v812_v55  ;;  %v416_v57 = vpop.f32.mrb[15].mxu0  ;;  %520 = vst [vmem:[%s976_s14 + $0xe0] sm:$0xff] %v477_v56  ;;  %v828_v59 = vpop.f32.mrb[14].mxu1  ;;  %v577_v6 = vmul.f32 %v812_v55, %v812_v55  ;;  %v590_v44 = vmul.f32 %v477_v56, %v477_v56  ;;  %v592_v49 = vmul.f32 %v1039_v51, %v1039_v51 }
 0x115   : > { %v605_v61 = vadd.f32 %v604_v54, %v574_v53  ;;  %505 = vst [vmem:[%s976_s14 + $0x68] sm:$0xff] %v416_v57  ;;  %v536_v63 = vadd.f32 %v535_v52, %v416_v57  ;;  %v575_v0 = vmul.f32 %v416_v57, %v416_v57  ;;  %523 = vst [vmem:[%s976_s14 + $0xf8] sm:$0xff] %v828_v59  ;;  %v480_v1 = vpop.f32.mrb[15].mxu1 }
 0x116   : > { %521 = vst [vmem:[%s976_s14 + $0xe8] sm:$0xff] %v480_v1  ;;  %v593_v52 = vmul.f32 %v828_v59, %v828_v59 }
 0x117   : > { %v537_v4 = vadd.f32 %v811_v48, %v536_v63  ;;  %v606_v5 = vadd.f32 %v605_v61, %v575_v0 }
 0x119   : > { %v607_v7 = vadd.f32 %v606_v5, %v576_v3  ;;  %v538_v8 = vadd.f32 %v812_v55, %v537_v4 }
 0x11b   : > { %v539_v10 = vadd.f32 %v538_v8, %v984_v60  ;;  %v608_v12 = vadd.f32 %v607_v7, %v577_v6  ;;  %v582_v60 = vmul.f32 %v1004_v16, %v1004_v16 }
 0x11d   : > { %v609_v13 = vadd.f32 %v608_v12, %v578_v9  ;;  %v540_v14 = vadd.f32 %v539_v10, %v994_v2 }
 0x11f   : > { %v541_v19 = vadd.f32 %v979_v58, %v540_v14  ;;  %v610_v20 = vadd.f32 %v609_v13, %v579_v15  ;;  %v584_v58 = vmul.f32 %v999_v11, %v999_v11 }
 0x121   : > { %v611_v23 = vadd.f32 %v610_v20, %v580_v17  ;;  %v542_v24 = vadd.f32 %v989_v62, %v541_v19  ;;  %v585_v62 = vmul.f32 %v1009_v18, %v1009_v18 }
 0x123   : > { %v543_v25 = vadd.f32 %v542_v24, %v1004_v16  ;;  %v612_v26 = vadd.f32 %v611_v23, %v581_v21  ;;  %v586_v16 = vmul.f32 %v1024_v36, %v1024_v36 }
 0x125   : > { %v613_v27 = vadd.f32 %v612_v26, %v582_v60  ;;  %v544_v2 = vadd.f32 %v543_v25, %v1014_v22 }
 0x127   : > { %v545_v29 = vadd.f32 %v999_v11, %v544_v2  ;;  %v614_v30 = vadd.f32 %v613_v27, %v583_v28  ;;  %v588_v11 = vmul.f32 %v1019_v31, %v1019_v31 }
 0x129   : > { %v615_v32 = vadd.f32 %v614_v30, %v584_v58  ;;  %v546_v33 = vadd.f32 %v1009_v18, %v545_v29  ;;  %v589_v18 = vmul.f32 %v1029_v38, %v1029_v38 }
 0x12b   : > { %v547_v34 = vadd.f32 %v546_v33, %v1024_v36  ;;  %v616_v35 = vadd.f32 %v615_v32, %v585_v62 }
 0x12d   : > { %v617_v37 = vadd.f32 %v616_v35, %v586_v16  ;;  %v548_v22 = vadd.f32 %v547_v34, %v1034_v42  ;;  %v591_v42 = vmul.f32 %v480_v1, %v480_v1 }
 0x12f   : > { %v549_v40 = vadd.f32 %v1019_v31, %v548_v22  ;;  %v618_v41 = vadd.f32 %v617_v37, %v587_v39 }
 0x131   : > { %v619_v43 = vadd.f32 %v618_v41, %v588_v11  ;;  %v550_v36 = vadd.f32 %v1029_v38, %v549_v40 }
 0x133   : > { %v551_v45 = vadd.f32 %v550_v36, %v477_v56  ;;  %v620_v46 = vadd.f32 %v619_v43, %v589_v18 }
 0x135   : > { %v621_v47 = vadd.f32 %v620_v46, %v590_v44  ;;  %v552_v48 = vadd.f32 %v551_v45, %v480_v1 }
 0x137   : > { %v553_v31 = vadd.f32 %v1039_v51, %v552_v48  ;;  %v622_v50 = vadd.f32 %v621_v47, %v591_v42 }
 0x139   : > { %v554_v53 = vadd.f32 %v828_v59, %v553_v31  ;;  %v623_v54 = vadd.f32 %v622_v50, %v592_v49 }
 0x13b   : > { %v555_v55 = vrot.slane %v554_v53, 4  ;;  %v624_v57 = vadd.f32 %v623_v54, %v593_v52 }
 0x13d   : > { %v556_v38 = vadd.f32 %v555_v55, %v554_v53  ;;  %v625_v61 = vrot.slane %v624_v57, 4 }
 0x13f   : > { %v557_v56 = vrot.slane %v556_v38, 2  ;;  %v626_v63 = vadd.f32 %v625_v61, %v624_v57 }
 0x141   : > { %v558_v0 = vadd.f32 %v557_v56, %v556_v38  ;;  %v627_v3 = vrot.slane %v626_v63, 2 }
 0x143   : > { %v559_v1 = vrot.slane %v558_v0, 1  ;;  %v628_v4 = vadd.f32 %v627_v3, %v626_v63 }
 0x145   : > { %v560_v51 = vadd.f32 %v559_v1, %v558_v0  ;;  %v629_v5 = vrot.slane %v628_v4, 1 }
 0x147   : > { %561 = vst [vmem:[%s214_s19] sm:$0x1] %v560_v51  ;;  %v630_v59 = vadd.f32 %v629_v5, %v628_v4 }
 0x149   : > { %631 = vst [vmem:[%s217_s22] sm:$0x1] %v630_v59 }
 0x14a PF: > { %s15_s15 = sadd.s32 1, %s867_s15  }
 0x14b   : > { %p12_p5 = scmp.ge.s32.totalorder %s15_s15, 4  }
 0x14d   :  { %14 = sbr.rel (!%p12_p5) target bundleno = 1 (0x1), region = 82 }

// kernel: bottleneck_forward.6
= control target key start
LH: loop header
LB: loop body
LE: loop exit
PB: predicated region body
PF: predicated region fallthrough
CT: control target
= control target key end

     0   :  { %s1070_s21 = smov 0   ;;  %s1369_s0 = inlined_call_operand.vmem [shape: f32[512,128], index: 0, kind: input, shape index: {}]   ;;  %s1370_s1 = inlined_call_operand.vmem [shape: f32[1,128], index: 1, kind: input, shape index: {}]   ;;  %s1371_s2 = inlined_call_operand.vmem [shape: f32[1,128], index: 2, kind: input, shape index: {}]   ;;  %s1372_s3 = inlined_call_operand.vmem [shape: bf16[128,128], index: 3, kind: input, shape index: {}]   ;;  %s1373_s4 = inlined_call_operand.vmem [shape: f32[512,128], index: 4, kind: output, shape index: {0}]   ;;  %s1374_s5 = inlined_call_operand.vmem [shape: f32[2,1,128], index: 5, kind: output, shape index: {1}]   ;;  %s1375_s6 = inlined_call_operand.vmem [shape: f32[2,1,128], index: 6, kind: output, shape index: {2}]  }
   0x1 LB: > { %s1076_s22 = sadd.s32 4294967295, %s1033_s21   ;;  %p906_p0 = scmp.ge.s32.totalorder %s1033_s21, 1  ;;  %s1033_s21 = sphi %s1070_s21, %s17_s21  }
   0x2   : > { %p218_p1 = scmp.lt.s32.totalorder %s1033_s21, 3 }
   0x4   : > { %p219_p2 = pnand %p906_p0, %p218_p1 }
   0x5   : > { %v1019_v0 = vld [vmem:[%s1372_s3] sm:$0xff] (!%p219_p2)   ;;  %s907_s25 = sshll.u32 (!%p219_p2), %s1076_s22, 5  ;;  %v1020_v1 = vld [vmem:[%s1372_s3 + $0x8] sm:$0xff] (!%p219_p2)   ;;  %v1021_v2 = vld [vmem:[%s1372_s3 + $0x10] sm:$0xff] (!%p219_p2)   ;;  %p266_p4 = scmp.lt.s32.totalorder (!%p219_p2), %s1076_s22, 1 }
   0x6   : > { %222 = sbr.rel (%p219_p2) target bundleno = 330 (0x14a), region = 36  ;;  %p255_p3 = scmp.lt.s32.totalorder (!%p219_p2), %s907_s25, 63  ;;  %947 = vmatprep.subr.bf16.mxu0 (!%p219_p2), %v1019_v0  ;;  %995 = vmatprep.subr.bf16.mxu1 (!%p219_p2), %v1019_v0  ;;  %v1022_v3 = vld [vmem:[%s1372_s3 + $0x18] sm:$0xff] (!%p219_p2)   ;;  %v1108_v6 = vld [vmem:[%s1370_s1] ss:$0 sm:$0xff] (!%p219_p2)  ;;  %v1024_v27 = vld [vmem:[%s1372_s3 + $0x28] sm:$0xff] (!%p219_p2)  }
   0x7   : > { %948 = vmatpush3.bf16.msra.mxu0 (!%p219_p2), %v1019_v0  ;;  %1003 = vmatpush3.bf16.msra.mxu1 (!%p219_p2), %v1019_v0  ;;  %v1115_v9 = vld [vmem:[%s1371_s2] ss:$0 sm:$0xff] (!%p219_p2)  ;;  %v1025_v35 = vld [vmem:[%s1372_s3 + $0x30] sm:$0xff] (!%p219_p2)   ;;  %v1026_v52 = vld [vmem:[%s1372_s3 + $0x38] sm:$0xff] (!%p219_p2)  }
   0x8   : > { %949 = vmatprep.subr.bf16.mxu0 (!%p219_p2), %v1020_v1  ;;  %996 = vmatprep.subr.bf16.mxu1 (!%p219_p2), %v1020_v1  ;;  %v1023_v17 = vld [vmem:[%s1372_s3 + $0x20] sm:$0xff] (!%p219_p2)  }
   0xb   : > { %950 = vmatpush3.bf16.msra.mxu0 (!%p219_p2), %v1020_v1  ;;  %1004 = vmatpush3.bf16.msra.mxu1 (!%p219_p2), %v1020_v1 }
   0xc   : > { %951 = vmatprep.subr.bf16.mxu0 (!%p219_p2), %v1021_v2  ;;  %997 = vmatprep.subr.bf16.mxu1 (!%p219_p2), %v1021_v2 }
   0xd   : > { %s1377_s25 = smov (!%p255_p3, %s907_s25), 63  ;;  %s1379_s22 = smov (!%p266_p4, %s1076_s22), 1 }
   0xe   : > { %s908_s30 = sshll.u32 %s1377_s25, 3  ;;  %s268_s7 = scalar_lea.vmem %s1374_s5, %s1379_s22 }
   0xf   : > { %s1098_s9 = scalar_lea.vmem %s1369_s0, %s908_s30  ;;  %952 = vmatpush3.bf16.msra.mxu0 %v1021_v2  ;;  %1005 = vmatpush3.bf16.msra.mxu1 %v1021_v2  ;;  %s1246_s29 = scalar_lea.vmem %s1373_s4, %s908_s30 }
  0x10   : > { %v273_v4 = vld [vmem:[%s1098_s9] sm:$0xff]  ;;  %v274_v5 = vld [vmem:[%s1098_s9 + $0x8] sm:$0xff]  ;;  %v275_v10 = vld [vmem:[%s1098_s9 + $0x10] sm:$0xff]  ;;  %953 = vmatprep.subr.bf16.mxu0 %v1022_v3  ;;  %998 = vmatprep.subr.bf16.mxu1 %v1022_v3  ;;  %s271_s10 = scalar_lea.vmem %s1375_s6, %s1379_s22 }
  0x11   : > { %v312_v7 = vmul.f32 %v1108_v6, %v273_v4  ;;  %v313_v8 = vmul.f32 %v1108_v6, %v274_v5  ;;  %v276_v11 = vld [vmem:[%s1098_s9 + $0x18] sm:$0xff]  ;;  %v314_v12 = vmul.f32 %v1108_v6, %v275_v10  ;;  %v277_v16 = vld [vmem:[%s1098_s9 + $0x20] sm:$0xff]  ;;  %v278_v20 = vld [vmem:[%s1098_s9 + $0x28] sm:$0xff] }
  0x12   : > { %v315_v15 = vmul.f32 %v1108_v6, %v276_v11  ;;  %v316_v21 = vmul.f32 %v1108_v6, %v277_v16  ;;  %v279_v22 = vld [vmem:[%s1098_s9 + $0x30] sm:$0xff]  ;;  %v280_v26 = vld [vmem:[%s1098_s9 + $0x38] sm:$0xff]  ;;  %v317_v28 = vmul.f32 %v1108_v6, %v278_v20  ;;  %v289_v31 = vld [vmem:[%s1098_s9 + $0x80] sm:$0xff] }
  0x13   : > { %v351_v13 = vadd.f32 %v1115_v9, %v312_v7  ;;  %v352_v14 = vadd.f32 %v1115_v9, %v313_v8  ;;  %954 = vmatpush3.bf16.msra.mxu0 %v1022_v3  ;;  %v353_v24 = vadd.f32 %v1115_v9, %v314_v12  ;;  %1006 = vmatpush3.bf16.msra.mxu1 %v1022_v3  ;;  %v281_v37 = vld [vmem:[%s1098_s9 + $0x40] sm:$0xff]  ;;  %v290_v38 = vld [vmem:[%s1098_s9 + $0x88] sm:$0xff]  ;;  %v291_v42 = vld [vmem:[%s1098_s9 + $0x90] sm:$0xff] }
  0x14   : > { %v354_v25 = vadd.f32 %v1115_v9, %v315_v15  ;;  %955 = vmatprep.subr.bf16.mxu0 %v1023_v17  ;;  %999 = vmatprep.subr.bf16.mxu1 %v1023_v17  ;;  %v318_v29 = vmul.f32 %v1108_v6, %v279_v22  ;;  %v319_v30 = vmul.f32 %v1108_v6, %v280_v26  ;;  %v282_v40 = vld [vmem:[%s1098_s9 + $0x48] sm:$0xff]  ;;  %v292_v44 = vld [vmem:[%s1098_s9 + $0x98] sm:$0xff]  ;;  %v293_v45 = vld [vmem:[%s1098_s9 + $0xa0] sm:$0xff] }
  0x15   : > { %v383_v18 = vmax.f32 %v351_v13, 0.0  ;;  %v384_v19 = vmax.f32 %v352_v14, 0.0  ;;  %v385_v32 = vmax.f32 %v353_v24, 0.0  ;;  %v1141_v34 = vadd.f32 %v1115_v9, %v316_v21  ;;  %v294_v50 = vld [vmem:[%s1098_s9 + $0xa8] sm:$0xff]  ;;  %v295_v51 = vld [vmem:[%s1098_s9 + $0xb0] sm:$0xff]  ;;  %v296_v61 = vld [vmem:[%s1098_s9 + $0xb8] sm:$0xff] }
  0x16   : > { %v386_v33 = vmax.f32 %v354_v25, 0.0  ;;  %v1147_v36 = vadd.f32 %v1115_v9, %v317_v28  ;;  %v1152_v39 = vadd.f32 %v1115_v9, %v318_v29  ;;  %v328_v41 = vmul.f32 %v1108_v6, %v289_v31  ;;  %v297_v2 = vld [vmem:[%s1098_s9 + $0xc0] sm:$0xff]  ;;  %v298_v8 = vld [vmem:[%s1098_s9 + $0xc8] sm:$0xff]  ;;  %v283_v14 = vld [vmem:[%s1098_s9 + $0x50] sm:$0xff] }
  0x17   : > { %v415_v23 = vpack.c.bf16 %v384_v19, %v383_v18  ;;  %956 = vmatpush3.bf16.msra.mxu0 %v1023_v17  ;;  %1007 = vmatpush3.bf16.msra.mxu1 %v1023_v17  ;;  %v1158_v43 = vadd.f32 %v1115_v9, %v319_v30  ;;  %v387_v47 = vmax.f32 %v1141_v34, 0.0  ;;  %v320_v48 = vmul.f32 %v1108_v6, %v281_v37  ;;  %v284_v15 = vld [vmem:[%s1098_s9 + $0x58] sm:$0xff]  ;;  %v285_v20 = vld [vmem:[%s1098_s9 + $0x60] sm:$0xff]  ;;  %v286_v21 = vld [vmem:[%s1098_s9 + $0x68] sm:$0xff] }
  0x18   : > { %957 = vmatprep.subr.bf16.mxu0 %v1024_v27  ;;  %1000 = vmatprep.subr.bf16.mxu1 %v1024_v27  ;;  %v1162_v46 = vpack.c.bf16 %v386_v33, %v385_v32  ;;  %v329_v49 = vmul.f32 %v1108_v6, %v290_v38  ;;  %v388_v53 = vmax.f32 %v1147_v36, 0.0  ;;  %v321_v54 = vmul.f32 %v1108_v6, %v282_v40  ;;  %v299_v30 = vld [vmem:[%s1098_s9 + $0xd0] sm:$0xff]  ;;  %v300_v31 = vld [vmem:[%s1098_s9 + $0xd8] sm:$0xff]  ;;  %v301_v36 = vld [vmem:[%s1098_s9 + $0xe0] sm:$0xff] }
  0x19   : > { %963 = vmatprep.mubr.bf16.mxu0 %v415_v23  ;;  %v367_v55 = vadd.f32 %v1115_v9, %v328_v41  ;;  %v330_v56 = vmul.f32 %v1108_v6, %v291_v42  ;;  %v389_v57 = vmax.f32 %v1152_v39, 0.0  ;;  %v331_v59 = vmul.f32 %v1108_v6, %v292_v44  ;;  %v302_v37 = vld [vmem:[%s1098_s9 + $0xe8] sm:$0xff] }
  0x1a   : > { %v368_v58 = vadd.f32 %v1115_v9, %v329_v49  ;;  %v332_v60 = vmul.f32 %v1108_v6, %v293_v45  ;;  %v333_v0 = vmul.f32 %v1108_v6, %v294_v50  ;;  %v334_v1 = vmul.f32 %v1108_v6, %v295_v51 }
  0x1b   : > { %958 = vmatpush3.bf16.msra.mxu0 %v1024_v27  ;;  %1008 = vmatpush3.bf16.msra.mxu1 %v1024_v27  ;;  %v399_v62 = vmax.f32 %v367_v55, 0.0  ;;  %v369_v63 = vadd.f32 %v1115_v9, %v330_v56  ;;  %v1186_v3 = vadd.f32 %v1115_v9, %v320_v48  ;;  %v370_v5 = vadd.f32 %v1115_v9, %v331_v59  ;;  %v287_v56 = vld [vmem:[%s1098_s9 + $0x70] sm:$0xff] }
  0x1c   : > { %959 = vmatprep.subr.bf16.mxu0 %v1025_v35  ;;  %1001 = vmatprep.subr.bf16.mxu1 %v1025_v35  ;;  %v400_v4 = vmax.f32 %v368_v58, 0.0  ;;  %v371_v7 = vadd.f32 %v1115_v9, %v332_v60  ;;  %v360_v10 = vadd.f32 %v1115_v9, %v321_v54  ;;  %v372_v12 = vadd.f32 %v1115_v9, %v333_v0  ;;  %v288_v58 = vld [vmem:[%s1098_s9 + $0x78] sm:$0xff]  ;;  %v303_v0 = vld [vmem:[%s1098_s9 + $0xf0] sm:$0xff] }
  0x1d   : > { %v401_v11 = vmax.f32 %v369_v63, 0.0  ;;  %v335_v13 = vmul.f32 %v1108_v6, %v296_v61  ;;  %v402_v17 = vmax.f32 %v370_v5, 0.0  ;;  %v336_v19 = vmul.f32 %v1108_v6, %v297_v2 }
  0x1e   : > { %v423_v16 = vpack.c.bf16 %v400_v4, %v399_v62  ;;  %v403_v18 = vmax.f32 %v371_v7, 0.0  ;;  %v404_v22 = vmax.f32 %v372_v12, 0.0  ;;  %v373_v23 = vadd.f32 %v1115_v9, %v334_v1  ;;  %v304_v1 = vld [vmem:[%s1098_s9 + $0xf8] sm:$0xff] }
  0x1f   : > { %960 = vmatpush3.bf16.msra.mxu0 %v1025_v35  ;;  %1009 = vmatpush3.bf16.msra.mxu1 %v1025_v35  ;;  %v374_v24 = vadd.f32 %v1115_v9, %v335_v13  ;;  %v337_v25 = vmul.f32 %v1108_v6, %v298_v8  ;;  %v417_v26 = vpack.c.bf16 %v388_v53, %v387_v47  ;;  %v390_v27 = vmax.f32 %v1158_v43, 0.0 }
  0x20   : > { %961 = vmatprep.subr.bf16.mxu0 %v1026_v52  ;;  %1002 = vmatprep.subr.bf16.mxu1 %v1026_v52  ;;  %v424_v28 = vpack.c.bf16 %v402_v17, %v401_v11  ;;  %v375_v29 = vadd.f32 %v1115_v9, %v336_v19  ;;  %v322_v32 = vmul.f32 %v1108_v6, %v283_v14  ;;  %v391_v38 = vmax.f32 %v1186_v3, 0.0 }
  0x21   : > { %v323_v33 = vmul.f32 %v1108_v6, %v284_v15  ;;  %979 = vmatprep.mubr.bf16.mxu1 %v423_v16  ;;  %v425_v34 = vpack.c.bf16 %v404_v22, %v403_v18  ;;  %v376_v35 = vadd.f32 %v1115_v9, %v337_v25  ;;  %v392_v40 = vmax.f32 %v360_v10, 0.0 }
  0x22   : > { %v324_v41 = vmul.f32 %v1108_v6, %v285_v20  ;;  %v325_v42 = vmul.f32 %v1108_v6, %v286_v21  ;;  %v405_v43 = vmax.f32 %v373_v23, 0.0  ;;  %v406_v44 = vmax.f32 %v374_v24, 0.0 }
  0x23   : > { %962 = vmatpush3.bf16.msra.mxu0 %v1026_v52  ;;  %1010 = vmatpush3.bf16.msra.mxu1 %v1026_v52  ;;  %v338_v45 = vmul.f32 %v1108_v6, %v299_v30  ;;  %v339_v47 = vmul.f32 %v1108_v6, %v300_v31  ;;  %v407_v48 = vmax.f32 %v375_v29, 0.0  ;;  %v408_v49 = vmax.f32 %v376_v35, 0.0 }
  0x24   : > { %v340_v50 = vmul.f32 %v1108_v6, %v301_v36  ;;  %v341_v51 = vmul.f32 %v1108_v6, %v302_v37  ;;  %v361_v52 = vadd.f32 %v1115_v9, %v322_v32  ;;  %v362_v53 = vadd.f32 %v1115_v9, %v323_v33 }
  0x25   : > { %v363_v54 = vadd.f32 %v1115_v9, %v324_v41  ;;  %v364_v55 = vadd.f32 %v1115_v9, %v325_v42  ;;  %v426_v59 = vpack.c.bf16 %v406_v44, %v405_v43  ;;  %v377_v60 = vadd.f32 %v1115_v9, %v338_v45 }
  0x26   : > { %964 = vmatmul.mubr.bf16.vlgmr.msra.gmra.mrb[0].mxu0 %v1162_v46  ;;  %980 = vmatmul.mubr.bf16.vlgmr.msra.gmra.mrb[0].mxu1 %v424_v28  ;;  %v418_v46 = vpack.c.bf16 %v390_v27, %v389_v57  ;;  %v378_v61 = vadd.f32 %v1115_v9, %v339_v47  ;;  %v419_v62 = vpack.c.bf16 %v392_v40, %v391_v38  ;;  %v393_v2 = vmax.f32 %v361_v52, 0.0 }
  0x27   : > { %967 = vmatprep.mubr.bf16.mxu0 %v417_v26  ;;  %983 = vmatprep.mubr.bf16.mxu1 %v425_v34  ;;  %v427_v63 = vpack.c.bf16 %v408_v49, %v407_v48  ;;  %v379_v39 = vadd.f32 %v1115_v9, %v340_v50  ;;  %v380_v57 = vadd.f32 %v1115_v9, %v341_v51  ;;  %v394_v3 = vmax.f32 %v362_v53, 0.0 }
  0x28   : > { %v326_v4 = vmul.f32 %v1108_v6, %v287_v56  ;;  %v327_v5 = vmul.f32 %v1108_v6, %v288_v58  ;;  %v409_v7 = vmax.f32 %v377_v60, 0.0  ;;  %v410_v8 = vmax.f32 %v378_v61, 0.0 }
  0x29   : > { %v342_v10 = vmul.f32 %v1108_v6, %v303_v0  ;;  %v343_v11 = vmul.f32 %v1108_v6, %v304_v1  ;;  %v395_v12 = vmax.f32 %v363_v54, 0.0  ;;  %v396_v13 = vmax.f32 %v364_v55, 0.0 }
  0x2a   : > { %v411_v14 = vmax.f32 %v379_v39, 0.0  ;;  %v412_v15 = vmax.f32 %v380_v57, 0.0  ;;  %v420_v16 = vpack.c.bf16 %v394_v3, %v393_v2  ;;  %v365_v17 = vadd.f32 %v1115_v9, %v326_v4 }
  0x2b   : > { %v366_v18 = vadd.f32 %v1115_v9, %v327_v5  ;;  %v428_v19 = vpack.c.bf16 %v410_v8, %v409_v7  ;;  %v381_v20 = vadd.f32 %v1115_v9, %v342_v10  ;;  %v382_v21 = vadd.f32 %v1115_v9, %v343_v11 }
  0x2c   : > { %v421_v22 = vpack.c.bf16 %v396_v13, %v395_v12  ;;  %v429_v23 = vpack.c.bf16 %v412_v15, %v411_v14  ;;  %v397_v6 = vmax.f32 %v365_v17, 0.0 }
  0x2d   : > { %v398_v24 = vmax.f32 %v366_v18, 0.0  ;;  %v413_v25 = vmax.f32 %v381_v20, 0.0  ;;  %v414_v26 = vmax.f32 %v382_v21, 0.0 }
  0x2e   : > { %968 = vmatmul.mubr.bf16.gmra.mrb[4].mxu0 %v418_v46  ;;  %984 = vmatmul.mubr.bf16.gmra.mrb[4].mxu1 %v426_v59 }
  0x2f   : > { %971 = vmatprep.mubr.bf16.mxu0 %v419_v62  ;;  %987 = vmatprep.mubr.bf16.mxu1 %v427_v63  ;;  %v422_v27 = vpack.c.bf16 %v398_v24, %v397_v6  ;;  %v430_v28 = vpack.c.bf16 %v414_v26, %v413_v25 }
  0x36   : > { %972 = vmatmul.mubr.bf16.gmra.mrb[8].mxu0 %v420_v16  ;;  %988 = vmatmul.mubr.bf16.gmra.mrb[8].mxu1 %v428_v19 }
  0x37   : > { %975 = vmatprep.mubr.bf16.mxu0 %v421_v22  ;;  %991 = vmatprep.mubr.bf16.mxu1 %v429_v23 }
  0x3e   : > { %976 = vmatmul.mubr.bf16.gmra.mrb[12].mxu0 %v422_v27  ;;  %992 = vmatmul.mubr.bf16.gmra.mrb[12].mxu1 %v430_v28 }
  0xf9   : > { %v965_v9 = vpop.f32.mrb[0].mxu0  ;;  %v1248_v29 = vpop.f32.mrb[0].mxu1 }
  0xfa   : > { %658 = vst [vmem:[%s1246_s29 + $0x10] sm:$0xff] %v965_v9  ;;  %v529_v30 = vpop.f32.mrb[1].mxu0  ;;  %674 = vst [vmem:[%s1246_s29 + $0x90] sm:$0xff] %v1248_v29  ;;  %v1253_v31 = vpop.f32.mrb[1].mxu1  ;;  %v728_v40 = vmul.f32 %v965_v9, %v965_v9 }
  0xfb   : > { %656 = vst [vmem:[%s1246_s29] sm:$0xff] %v529_v30  ;;  %v966_v32 = vpop.f32.mrb[2].mxu0  ;;  %672 = vst [vmem:[%s1246_s29 + $0x80] sm:$0xff] %v1253_v31  ;;  %v1258_v33 = vpop.f32.mrb[2].mxu1  ;;  %v726_v36 = vmul.f32 %v529_v30, %v529_v30 }
  0xfc   : > { %659 = vst [vmem:[%s1246_s29 + $0x18] sm:$0xff] %v966_v32  ;;  %v532_v34 = vpop.f32.mrb[3].mxu0  ;;  %675 = vst [vmem:[%s1246_s29 + $0x98] sm:$0xff] %v1258_v33  ;;  %v1263_v35 = vpop.f32.mrb[3].mxu1  ;;  %v729_v43 = vmul.f32 %v966_v32, %v966_v32 }
  0xfd   : > { %657 = vst [vmem:[%s1246_s29 + $0x8] sm:$0xff] %v532_v34  ;;  %v688_v37 = vadd.f32 %v532_v34, %v529_v30  ;;  %v727_v38 = vmul.f32 %v532_v34, %v532_v34  ;;  %673 = vst [vmem:[%s1246_s29 + $0x88] sm:$0xff] %v1263_v35 }
  0xff   : > { %v689_v41 = vadd.f32 %v965_v9, %v688_v37  ;;  %v758_v42 = vadd.f32 %v727_v38, %v726_v36 }
 0x101   : > { %v759_v44 = vadd.f32 %v758_v42, %v728_v40  ;;  %v969_v45 = vpop.f32.mrb[4].mxu0  ;;  %v690_v47 = vadd.f32 %v966_v32, %v689_v41  ;;  %v1268_v48 = vpop.f32.mrb[4].mxu1 }
 0x102   : > { %662 = vst [vmem:[%s1246_s29 + $0x30] sm:$0xff] %v969_v45  ;;  %v545_v49 = vpop.f32.mrb[5].mxu0  ;;  %678 = vst [vmem:[%s1246_s29 + $0xb0] sm:$0xff] %v1268_v48  ;;  %v1273_v50 = vpop.f32.mrb[5].mxu1  ;;  %v732_v61 = vmul.f32 %v969_v45, %v969_v45 }
 0x103   : > { %660 = vst [vmem:[%s1246_s29 + $0x20] sm:$0xff] %v545_v49  ;;  %v691_v51 = vadd.f32 %v690_v47, %v545_v49  ;;  %v730_v46 = vmul.f32 %v545_v49, %v545_v49  ;;  %v760_v52 = vadd.f32 %v759_v44, %v729_v43  ;;  %v970_v53 = vpop.f32.mrb[6].mxu0  ;;  %676 = vst [vmem:[%s1246_s29 + $0xa0] sm:$0xff] %v1273_v50  ;;  %v1278_v54 = vpop.f32.mrb[6].mxu1 }
 0x104   : > { %663 = vst [vmem:[%s1246_s29 + $0x38] sm:$0xff] %v970_v53  ;;  %v548_v55 = vpop.f32.mrb[7].mxu0  ;;  %679 = vst [vmem:[%s1246_s29 + $0xb8] sm:$0xff] %v1278_v54  ;;  %v1283_v56 = vpop.f32.mrb[7].mxu1  ;;  %v733_v39 = vmul.f32 %v970_v53, %v970_v53  ;;  %v742_v47 = vmul.f32 %v1253_v31, %v1253_v31 }
 0x105   : > { %v761_v58 = vadd.f32 %v760_v52, %v730_v46  ;;  %661 = vst [vmem:[%s1246_s29 + $0x28] sm:$0xff] %v548_v55  ;;  %v692_v59 = vadd.f32 %v691_v51, %v548_v55  ;;  %v731_v60 = vmul.f32 %v548_v55, %v548_v55  ;;  %677 = vst [vmem:[%s1246_s29 + $0xa8] sm:$0xff] %v1283_v56 }
 0x106   : > { %v744_v55 = vmul.f32 %v1248_v29, %v1248_v29 }
 0x107   : > { %v693_v62 = vadd.f32 %v969_v45, %v692_v59  ;;  %v762_v63 = vadd.f32 %v761_v58, %v731_v60  ;;  %v745_v60 = vmul.f32 %v1258_v33, %v1258_v33 }
 0x109   : > { %v763_v57 = vadd.f32 %v762_v63, %v732_v61  ;;  %v973_v0 = vpop.f32.mrb[8].mxu0  ;;  %v694_v1 = vadd.f32 %v970_v53, %v693_v62  ;;  %v1288_v2 = vpop.f32.mrb[8].mxu1  ;;  %v743_v53 = vmul.f32 %v1263_v35, %v1263_v35 }
 0x10a   : > { %666 = vst [vmem:[%s1246_s29 + $0x50] sm:$0xff] %v973_v0  ;;  %v561_v3 = vpop.f32.mrb[9].mxu0  ;;  %682 = vst [vmem:[%s1246_s29 + $0xd0] sm:$0xff] %v1288_v2  ;;  %v1293_v4 = vpop.f32.mrb[9].mxu1  ;;  %v736_v17 = vmul.f32 %v973_v0, %v973_v0 }
 0x10b   : > { %664 = vst [vmem:[%s1246_s29 + $0x40] sm:$0xff] %v561_v3  ;;  %v695_v5 = vadd.f32 %v694_v1, %v561_v3  ;;  %v734_v7 = vmul.f32 %v561_v3, %v561_v3  ;;  %v764_v8 = vadd.f32 %v763_v57, %v733_v39  ;;  %v974_v10 = vpop.f32.mrb[10].mxu0  ;;  %680 = vst [vmem:[%s1246_s29 + $0xc0] sm:$0xff] %v1293_v4  ;;  %v1298_v11 = vpop.f32.mrb[10].mxu1 }
 0x10c   : > { %667 = vst [vmem:[%s1246_s29 + $0x58] sm:$0xff] %v974_v10  ;;  %v564_v12 = vpop.f32.mrb[11].mxu0  ;;  %683 = vst [vmem:[%s1246_s29 + $0xd8] sm:$0xff] %v1298_v11  ;;  %v1303_v13 = vpop.f32.mrb[11].mxu1  ;;  %v737_v20 = vmul.f32 %v974_v10, %v974_v10 }
 0x10d   : > { %v765_v14 = vadd.f32 %v764_v8, %v734_v7  ;;  %665 = vst [vmem:[%s1246_s29 + $0x48] sm:$0xff] %v564_v12  ;;  %v696_v15 = vadd.f32 %v695_v5, %v564_v12  ;;  %v735_v16 = vmul.f32 %v564_v12, %v564_v12  ;;  %681 = vst [vmem:[%s1246_s29 + $0xc8] sm:$0xff] %v1303_v13 }
 0x10f   : > { %v697_v18 = vadd.f32 %v973_v0, %v696_v15  ;;  %v766_v19 = vadd.f32 %v765_v14, %v735_v16  ;;  %v747_v0 = vmul.f32 %v1283_v56, %v1283_v56  ;;  %v751_v14 = vmul.f32 %v1303_v13, %v1303_v13 }
 0x111   : > { %v767_v21 = vadd.f32 %v766_v19, %v736_v17  ;;  %v977_v22 = vpop.f32.mrb[12].mxu0  ;;  %v698_v23 = vadd.f32 %v974_v10, %v697_v18  ;;  %v1308_v6 = vpop.f32.mrb[12].mxu1 }
 0x112   : > { %670 = vst [vmem:[%s1246_s29 + $0x70] sm:$0xff] %v977_v22  ;;  %v577_v24 = vpop.f32.mrb[13].mxu0  ;;  %686 = vst [vmem:[%s1246_s29 + $0xf0] sm:$0xff] %v1308_v6  ;;  %v641_v25 = vpop.f32.mrb[13].mxu1  ;;  %v740_v40 = vmul.f32 %v977_v22, %v977_v22 }
 0x113   : > { %668 = vst [vmem:[%s1246_s29 + $0x60] sm:$0xff] %v577_v24  ;;  %v699_v26 = vadd.f32 %v698_v23, %v577_v24  ;;  %v738_v27 = vmul.f32 %v577_v24, %v577_v24  ;;  %v768_v28 = vadd.f32 %v767_v21, %v737_v20  ;;  %v978_v9 = vpop.f32.mrb[14].mxu0  ;;  %684 = vst [vmem:[%s1246_s29 + $0xe0] sm:$0xff] %v641_v25  ;;  %v994_v30 = vpop.f32.mrb[14].mxu1 }
 0x114   : > { %671 = vst [vmem:[%s1246_s29 + $0x78] sm:$0xff] %v978_v9  ;;  %v580_v32 = vpop.f32.mrb[15].mxu0  ;;  %687 = vst [vmem:[%s1246_s29 + $0xf8] sm:$0xff] %v994_v30  ;;  %v644_v34 = vpop.f32.mrb[15].mxu1  ;;  %v741_v43 = vmul.f32 %v978_v9, %v978_v9  ;;  %v754_v18 = vmul.f32 %v641_v25, %v641_v25  ;;  %v756_v23 = vmul.f32 %v1308_v6, %v1308_v6 }
 0x115   : > { %v769_v36 = vadd.f32 %v768_v28, %v738_v27  ;;  %669 = vst [vmem:[%s1246_s29 + $0x68] sm:$0xff] %v580_v32  ;;  %v700_v37 = vadd.f32 %v699_v26, %v580_v32  ;;  %v739_v38 = vmul.f32 %v580_v32, %v580_v32  ;;  %685 = vst [vmem:[%s1246_s29 + $0xe8] sm:$0xff] %v644_v34 }
 0x116   : > { %v757_v26 = vmul.f32 %v994_v30, %v994_v30 }
 0x117   : > { %v701_v41 = vadd.f32 %v977_v22, %v700_v37  ;;  %v770_v42 = vadd.f32 %v769_v36, %v739_v38 }
 0x119   : > { %v771_v44 = vadd.f32 %v770_v42, %v740_v40  ;;  %v702_v45 = vadd.f32 %v978_v9, %v701_v41 }
 0x11b   : > { %v703_v49 = vadd.f32 %v702_v45, %v1253_v31  ;;  %v772_v51 = vadd.f32 %v771_v44, %v741_v43  ;;  %v746_v31 = vmul.f32 %v1273_v50, %v1273_v50 }
 0x11d   : > { %v773_v46 = vadd.f32 %v772_v51, %v742_v47  ;;  %v704_v52 = vadd.f32 %v703_v49, %v1263_v35 }
 0x11f   : > { %v705_v58 = vadd.f32 %v1248_v29, %v704_v52  ;;  %v774_v59 = vadd.f32 %v773_v46, %v743_v53  ;;  %v748_v29 = vmul.f32 %v1268_v48, %v1268_v48 }
 0x121   : > { %v775_v61 = vadd.f32 %v774_v59, %v744_v55  ;;  %v706_v62 = vadd.f32 %v1258_v33, %v705_v58  ;;  %v749_v33 = vmul.f32 %v1278_v54, %v1278_v54 }
 0x123   : > { %v707_v63 = vadd.f32 %v706_v62, %v1273_v50  ;;  %v776_v39 = vadd.f32 %v775_v61, %v745_v60  ;;  %v750_v50 = vmul.f32 %v1293_v4, %v1293_v4 }
 0x125   : > { %v777_v57 = vadd.f32 %v776_v39, %v746_v31  ;;  %v708_v35 = vadd.f32 %v707_v63, %v1283_v56 }
 0x127   : > { %v709_v1 = vadd.f32 %v1268_v48, %v708_v35  ;;  %v778_v3 = vadd.f32 %v777_v57, %v747_v0  ;;  %v752_v48 = vmul.f32 %v1288_v2, %v1288_v2 }
 0x129   : > { %v779_v5 = vadd.f32 %v778_v3, %v748_v29  ;;  %v710_v7 = vadd.f32 %v1278_v54, %v709_v1  ;;  %v753_v54 = vmul.f32 %v1298_v11, %v1298_v11 }
 0x12b   : > { %v711_v8 = vadd.f32 %v710_v7, %v1293_v4  ;;  %v780_v10 = vadd.f32 %v779_v5, %v749_v33 }
 0x12d   : > { %v781_v12 = vadd.f32 %v780_v10, %v750_v50  ;;  %v712_v56 = vadd.f32 %v711_v8, %v1303_v13  ;;  %v755_v13 = vmul.f32 %v644_v34, %v644_v34 }
 0x12f   : > { %v713_v15 = vadd.f32 %v1288_v2, %v712_v56  ;;  %v782_v16 = vadd.f32 %v781_v12, %v751_v14 }
 0x131   : > { %v783_v17 = vadd.f32 %v782_v16, %v752_v48  ;;  %v714_v4 = vadd.f32 %v1298_v11, %v713_v15 }
 0x133   : > { %v715_v19 = vadd.f32 %v714_v4, %v641_v25  ;;  %v784_v20 = vadd.f32 %v783_v17, %v753_v54 }
 0x135   : > { %v785_v21 = vadd.f32 %v784_v20, %v754_v18  ;;  %v716_v22 = vadd.f32 %v715_v19, %v644_v34 }
 0x137   : > { %v717_v2 = vadd.f32 %v1308_v6, %v716_v22  ;;  %v786_v24 = vadd.f32 %v785_v21, %v755_v13 }
 0x139   : > { %v718_v27 = vadd.f32 %v994_v30, %v717_v2  ;;  %v787_v28 = vadd.f32 %v786_v24, %v756_v23 }
 0x13b   : > { %v719_v9 = vrot.slane %v718_v27, 4  ;;  %v788_v32 = vadd.f32 %v787_v28, %v757_v26 }
 0x13d   : > { %v720_v11 = vadd.f32 %v719_v9, %v718_v27  ;;  %v789_v36 = vrot.slane %v788_v32, 4 }
 0x13f   : > { %v721_v25 = vrot.slane %v720_v11, 2  ;;  %v790_v37 = vadd.f32 %v789_v36, %v788_v32 }
 0x141   : > { %v722_v38 = vadd.f32 %v721_v25, %v720_v11  ;;  %v791_v40 = vrot.slane %v790_v37, 2 }
 0x143   : > { %v723_v34 = vrot.slane %v722_v38, 1  ;;  %v792_v41 = vadd.f32 %v791_v40, %v790_v37 }
 0x145   : > { %v724_v6 = vadd.f32 %v723_v34, %v722_v38  ;;  %v793_v42 = vrot.slane %v792_v41, 1 }
 0x147   : > { %725 = vst [vmem:[%s268_s7] sm:$0x1] %v724_v6  ;;  %v794_v30 = vadd.f32 %v793_v42, %v792_v41 }
 0x149   : > { %795 = vst [vmem:[%s271_s10] sm:$0x1] %v794_v30 }
 0x14a PF: > { %s17_s21 = sadd.s32 1, %s1033_s21  }
 0x14b   : > { %p14_p5 = scmp.ge.s32.totalorder %s17_s21, 4  }
 0x14d   :  { %16 = sbr.rel (!%p14_p5) target bundleno = 1 (0x1), region = 90 }

// kernel: bottleneck_forward.7
= control target key start
LH: loop header
LB: loop body
LE: loop exit
PB: predicated region body
PF: predicated region fallthrough
CT: control target
= control target key end

     0   :  { %s585_s15 = smov 0   ;;  %s786_s0 = inlined_call_operand.vmem [shape: f32[512,128], index: 0, kind: input, shape index: {}]   ;;  %s787_s1 = inlined_call_operand.vmem [shape: f32[1,128], index: 1, kind: input, shape index: {}]   ;;  %s788_s2 = inlined_call_operand.vmem [shape: f32[1,128], index: 2, kind: input, shape index: {}]   ;;  %s789_s3 = inlined_call_operand.vmem [shape: f32[512,128], index: 3, kind: input, shape index: {}]   ;;  %s790_s4 = inlined_call_operand.vmem [shape: f32[512,128], index: 4, kind: output, shape index: {}]  }
   0x1 LB: > { %s529_s16 = sadd.s32 4294967295, %s558_s15   ;;  %p533_p0 = scmp.ge.s32.totalorder %s558_s15, 1  ;;  %s558_s15 = sphi %s585_s15, %s14_s15  }
   0x2   : > { %p174_p1 = scmp.lt.s32.totalorder %s558_s15, 3 }
   0x4   : > { %p175_p2 = pnand %p533_p0, %p174_p1 }
   0x5   : > { %s534_s17 = sshll.u32 (!%p175_p2), %s529_s16, 5  ;;  %v598_v0 = vld [vmem:[%s787_s1] ss:$0 sm:$0xff] (!%p175_p2) }
   0x6   : > { %178 = sbr.rel (%p175_p2) target bundleno = 55 (0x37), region = 36  ;;  %p206_p3 = scmp.lt.s32.totalorder (!%p175_p2), %s534_s17, 63  ;;  %v616_v2 = vld [vmem:[%s788_s2] ss:$0 sm:$0xff] (!%p175_p2) }
   0xd   : > { %s792_s17 = smov (!%p206_p3, %s534_s17), 63 }
   0xe   : > { %s593_s18 = sshll.u32 %s792_s17, 3 }
   0xf   : > { %s604_s23 = scalar_lea.vmem %s786_s0, %s593_s18  ;;  %s610_s26 = scalar_lea.vmem %s789_s3, %s593_s18 }
  0x10   : > { %v223_v1 = vld [vmem:[%s604_s23] sm:$0xff]  ;;  %v224_v3 = vld [vmem:[%s604_s23 + $0x8] sm:$0xff]  ;;  %v225_v7 = vld [vmem:[%s604_s23 + $0x10] sm:$0xff]  ;;  %s646_s5 = scalar_lea.vmem %s790_s4, %s593_s18 }
  0x11   : > { %v262_v4 = vmul.f32 %v598_v0, %v223_v1  ;;  %v333_v5 = vld [vmem:[%s610_s26] sm:$0xff]  ;;  %v263_v6 = vmul.f32 %v598_v0, %v224_v3  ;;  %v334_v8 = vld [vmem:[%s610_s26 + $0x8] sm:$0xff]  ;;  %v264_v9 = vmul.f32 %v598_v0, %v225_v7  ;;  %v226_v10 = vld [vmem:[%s604_s23 + $0x18] sm:$0xff] }
  0x12   : > { %v227_v11 = vld [vmem:[%s604_s23 + $0x20] sm:$0xff]  ;;  %v335_v14 = vld [vmem:[%s610_s26 + $0x10] sm:$0xff]  ;;  %v265_v15 = vmul.f32 %v598_v0, %v226_v10  ;;  %v336_v16 = vld [vmem:[%s610_s26 + $0x18] sm:$0xff] }
  0x13   : > { %v301_v12 = vadd.f32 %v616_v2, %v262_v4  ;;  %v302_v13 = vadd.f32 %v616_v2, %v263_v6  ;;  %v266_v17 = vmul.f32 %v598_v0, %v227_v11  ;;  %v228_v18 = vld [vmem:[%s604_s23 + $0x28] sm:$0xff]  ;;  %v303_v19 = vadd.f32 %v616_v2, %v264_v9  ;;  %v337_v20 = vld [vmem:[%s610_s26 + $0x20] sm:$0xff]  ;;  %v229_v22 = vld [vmem:[%s604_s23 + $0x30] sm:$0xff] }
  0x14   : > { %v267_v21 = vmul.f32 %v598_v0, %v228_v18  ;;  %v230_v23 = vld [vmem:[%s604_s23 + $0x38] sm:$0xff]  ;;  %v304_v26 = vadd.f32 %v616_v2, %v265_v15  ;;  %v338_v28 = vld [vmem:[%s610_s26 + $0x28] sm:$0xff]  ;;  %v268_v31 = vmul.f32 %v598_v0, %v229_v22  ;;  %v231_v33 = vld [vmem:[%s604_s23 + $0x40] sm:$0xff] }
  0x15   : > { %v365_v24 = vadd.f32 %v333_v5, %v301_v12  ;;  %v366_v25 = vadd.f32 %v334_v8, %v302_v13  ;;  %v305_v27 = vadd.f32 %v616_v2, %v266_v17  ;;  %v367_v29 = vadd.f32 %v335_v14, %v303_v19  ;;  %v232_v34 = vld [vmem:[%s604_s23 + $0x48] sm:$0xff]  ;;  %v339_v39 = vld [vmem:[%s610_s26 + $0x30] sm:$0xff]  ;;  %v340_v40 = vld [vmem:[%s610_s26 + $0x38] sm:$0xff] }
  0x16   : > { %v306_v30 = vadd.f32 %v616_v2, %v267_v21  ;;  %v269_v32 = vmul.f32 %v598_v0, %v230_v23  ;;  %v368_v37 = vadd.f32 %v336_v16, %v304_v26  ;;  %v233_v41 = vld [vmem:[%s604_s23 + $0x50] sm:$0xff]  ;;  %v307_v44 = vadd.f32 %v616_v2, %v268_v31  ;;  %v234_v46 = vld [vmem:[%s604_s23 + $0x58] sm:$0xff]  ;;  %v235_v47 = vld [vmem:[%s604_s23 + $0x60] sm:$0xff] }
  0x17   : > { %v397_v35 = vmax.f32 %v365_v24, 0.0  ;;  %v398_v36 = vmax.f32 %v366_v25, 0.0  ;;  %v369_v38 = vadd.f32 %v337_v20, %v305_v27  ;;  %v399_v42 = vmax.f32 %v367_v29, 0.0  ;;  %v236_v52 = vld [vmem:[%s604_s23 + $0x68] sm:$0xff]  ;;  %v341_v56 = vld [vmem:[%s610_s26 + $0x40] sm:$0xff]  ;;  %v343_v61 = vld [vmem:[%s610_s26 + $0x50] sm:$0xff] }
  0x18   : > { %v370_v43 = vadd.f32 %v338_v28, %v306_v30  ;;  %v308_v45 = vadd.f32 %v616_v2, %v269_v32  ;;  %v400_v48 = vmax.f32 %v368_v37, 0.0  ;;  %v270_v50 = vmul.f32 %v598_v0, %v231_v33  ;;  %v342_v57 = vld [vmem:[%s610_s26 + $0x48] sm:$0xff]  ;;  %v237_v1 = vld [vmem:[%s604_s23 + $0x70] sm:$0xff]  ;;  %v238_v3 = vld [vmem:[%s604_s23 + $0x78] sm:$0xff] }
  0x19   : > { %429 = vst [vmem:[%s646_s5] sm:$0xff] %v397_v35  ;;  %430 = vst [vmem:[%s646_s5 + $0x8] sm:$0xff] %v398_v36  ;;  %v401_v49 = vmax.f32 %v369_v38, 0.0  ;;  %v271_v51 = vmul.f32 %v598_v0, %v232_v34  ;;  %v371_v54 = vadd.f32 %v339_v39, %v307_v44  ;;  %v272_v58 = vmul.f32 %v598_v0, %v233_v41  ;;  %v344_v7 = vld [vmem:[%s610_s26 + $0x58] sm:$0xff]  ;;  %v345_v8 = vld [vmem:[%s610_s26 + $0x60] sm:$0xff] }
  0x1a   : > { %431 = vst [vmem:[%s646_s5 + $0x10] sm:$0xff] %v399_v42  ;;  %v402_v53 = vmax.f32 %v370_v43, 0.0  ;;  %v372_v55 = vadd.f32 %v340_v40, %v308_v45  ;;  %432 = vst [vmem:[%s646_s5 + $0x18] sm:$0xff] %v400_v48  ;;  %v309_v59 = vadd.f32 %v616_v2, %v270_v50  ;;  %v273_v62 = vmul.f32 %v598_v0, %v234_v46  ;;  %v346_v14 = vld [vmem:[%s610_s26 + $0x68] sm:$0xff]  ;;  %v239_v19 = vld [vmem:[%s604_s23 + $0x80] sm:$0xff] }
  0x1b   : > { %433 = vst [vmem:[%s646_s5 + $0x20] sm:$0xff] %v401_v49  ;;  %v310_v60 = vadd.f32 %v616_v2, %v271_v51  ;;  %v274_v63 = vmul.f32 %v598_v0, %v235_v47  ;;  %v403_v4 = vmax.f32 %v371_v54, 0.0  ;;  %v311_v6 = vadd.f32 %v616_v2, %v272_v58  ;;  %v240_v20 = vld [vmem:[%s604_s23 + $0x88] sm:$0xff]  ;;  %v347_v25 = vld [vmem:[%s610_s26 + $0x70] sm:$0xff]  ;;  %v348_v26 = vld [vmem:[%s610_s26 + $0x78] sm:$0xff] }
  0x1c   : > { %434 = vst [vmem:[%s646_s5 + $0x28] sm:$0xff] %v402_v53  ;;  %v404_v5 = vmax.f32 %v372_v55, 0.0  ;;  %v275_v9 = vmul.f32 %v598_v0, %v236_v52  ;;  %v373_v10 = vadd.f32 %v341_v56, %v309_v59  ;;  %v312_v12 = vadd.f32 %v616_v2, %v273_v62  ;;  %v241_v27 = vld [vmem:[%s604_s23 + $0x90] sm:$0xff]  ;;  %v242_v32 = vld [vmem:[%s604_s23 + $0x98] sm:$0xff]  ;;  %v243_v33 = vld [vmem:[%s604_s23 + $0xa0] sm:$0xff] }
  0x1d   : > { %v374_v11 = vadd.f32 %v342_v57, %v310_v60  ;;  %v313_v13 = vadd.f32 %v616_v2, %v274_v63  ;;  %435 = vst [vmem:[%s646_s5 + $0x30] sm:$0xff] %v403_v4  ;;  %v375_v15 = vadd.f32 %v343_v61, %v311_v6  ;;  %v276_v17 = vmul.f32 %v598_v0, %v237_v1  ;;  %v244_v38 = vld [vmem:[%s604_s23 + $0xa8] sm:$0xff]  ;;  %v349_v42 = vld [vmem:[%s610_s26 + $0x80] sm:$0xff]  ;;  %v351_v47 = vld [vmem:[%s610_s26 + $0x90] sm:$0xff] }
  0x1e   : > { %436 = vst [vmem:[%s646_s5 + $0x38] sm:$0xff] %v404_v5  ;;  %v314_v16 = vadd.f32 %v616_v2, %v275_v9  ;;  %v277_v18 = vmul.f32 %v598_v0, %v238_v3  ;;  %v405_v21 = vmax.f32 %v373_v10, 0.0  ;;  %v376_v23 = vadd.f32 %v344_v7, %v312_v12  ;;  %v350_v43 = vld [vmem:[%s610_s26 + $0x88] sm:$0xff]  ;;  %v245_v50 = vld [vmem:[%s604_s23 + $0xb0] sm:$0xff]  ;;  %v246_v51 = vld [vmem:[%s604_s23 + $0xb8] sm:$0xff] }
  0x1f   : > { %v406_v22 = vmax.f32 %v374_v11, 0.0  ;;  %v377_v24 = vadd.f32 %v345_v8, %v313_v13  ;;  %v407_v28 = vmax.f32 %v375_v15, 0.0  ;;  %v315_v30 = vadd.f32 %v616_v2, %v276_v17  ;;  %v352_v55 = vld [vmem:[%s610_s26 + $0x98] sm:$0xff]  ;;  %v353_v56 = vld [vmem:[%s610_s26 + $0xa0] sm:$0xff]  ;;  %v354_v62 = vld [vmem:[%s610_s26 + $0xa8] sm:$0xff] }
  0x20   : > { %v378_v29 = vadd.f32 %v346_v14, %v314_v16  ;;  %v316_v31 = vadd.f32 %v616_v2, %v277_v18  ;;  %437 = vst [vmem:[%s646_s5 + $0x40] sm:$0xff] %v405_v21  ;;  %v408_v34 = vmax.f32 %v376_v23, 0.0  ;;  %v278_v36 = vmul.f32 %v598_v0, %v239_v19  ;;  %v247_v5 = vld [vmem:[%s604_s23 + $0xc0] sm:$0xff]  ;;  %v248_v6 = vld [vmem:[%s604_s23 + $0xc8] sm:$0xff]  ;;  %v355_v11 = vld [vmem:[%s610_s26 + $0xb0] sm:$0xff] }
  0x21   : > { %438 = vst [vmem:[%s646_s5 + $0x48] sm:$0xff] %v406_v22  ;;  %v409_v35 = vmax.f32 %v377_v24, 0.0  ;;  %v279_v37 = vmul.f32 %v598_v0, %v240_v20  ;;  %439 = vst [vmem:[%s646_s5 + $0x50] sm:$0xff] %v407_v28  ;;  %v379_v40 = vadd.f32 %v347_v25, %v315_v30  ;;  %v280_v44 = vmul.f32 %v598_v0, %v241_v27  ;;  %v356_v12 = vld [vmem:[%s610_s26 + $0xb8] sm:$0xff]  ;;  %v249_v13 = vld [vmem:[%s604_s23 + $0xd0] sm:$0xff] }
  0x22   : > { %v410_v39 = vmax.f32 %v378_v29, 0.0  ;;  %v380_v41 = vadd.f32 %v348_v26, %v316_v31  ;;  %440 = vst [vmem:[%s646_s5 + $0x58] sm:$0xff] %v408_v34  ;;  %v317_v45 = vadd.f32 %v616_v2, %v278_v36  ;;  %v281_v48 = vmul.f32 %v598_v0, %v242_v32  ;;  %v250_v18 = vld [vmem:[%s604_s23 + $0xd8] sm:$0xff]  ;;  %v251_v19 = vld [vmem:[%s604_s23 + $0xe0] sm:$0xff]  ;;  %v252_v24 = vld [vmem:[%s604_s23 + $0xe8] sm:$0xff] }
  0x23   : > { %441 = vst [vmem:[%s646_s5 + $0x60] sm:$0xff] %v409_v35  ;;  %v318_v46 = vadd.f32 %v616_v2, %v279_v37  ;;  %v282_v49 = vmul.f32 %v598_v0, %v243_v33  ;;  %v411_v52 = vmax.f32 %v379_v40, 0.0  ;;  %v319_v54 = vadd.f32 %v616_v2, %v280_v44  ;;  %v357_v28 = vld [vmem:[%s610_s26 + $0xc0] sm:$0xff]  ;;  %v358_v29 = vld [vmem:[%s610_s26 + $0xc8] sm:$0xff]  ;;  %v359_v33 = vld [vmem:[%s610_s26 + $0xd0] sm:$0xff] }
  0x24   : > { %442 = vst [vmem:[%s646_s5 + $0x68] sm:$0xff] %v410_v39  ;;  %v412_v53 = vmax.f32 %v380_v41, 0.0  ;;  %v283_v57 = vmul.f32 %v598_v0, %v244_v38  ;;  %v381_v58 = vadd.f32 %v349_v42, %v317_v45  ;;  %v320_v60 = vadd.f32 %v616_v2, %v281_v48  ;;  %v253_v36 = vld [vmem:[%s604_s23 + $0xf0] sm:$0xff]  ;;  %v254_v37 = vld [vmem:[%s604_s23 + $0xf8] sm:$0xff]  ;;  %v361_v42 = vld [vmem:[%s610_s26 + $0xe0] sm:$0xff] }
  0x25   : > { %v382_v59 = vadd.f32 %v350_v43, %v318_v46  ;;  %v321_v61 = vadd.f32 %v616_v2, %v282_v49  ;;  %443 = vst [vmem:[%s646_s5 + $0x70] sm:$0xff] %v411_v52  ;;  %v383_v63 = vadd.f32 %v351_v47, %v319_v54  ;;  %v284_v3 = vmul.f32 %v598_v0, %v245_v50  ;;  %v360_v41 = vld [vmem:[%s610_s26 + $0xd8] sm:$0xff]  ;;  %v362_v48 = vld [vmem:[%s610_s26 + $0xe8] sm:$0xff] }
  0x26   : > { %444 = vst [vmem:[%s646_s5 + $0x78] sm:$0xff] %v412_v53  ;;  %v322_v1 = vadd.f32 %v616_v2, %v283_v57  ;;  %v285_v4 = vmul.f32 %v598_v0, %v246_v51  ;;  %v413_v7 = vmax.f32 %v381_v58, 0.0  ;;  %v384_v9 = vadd.f32 %v352_v55, %v320_v60  ;;  %v363_v57 = vld [vmem:[%s610_s26 + $0xf0] sm:$0xff]  ;;  %v364_v58 = vld [vmem:[%s610_s26 + $0xf8] sm:$0xff] }
  0x27   : > { %v414_v8 = vmax.f32 %v382_v59, 0.0  ;;  %v385_v10 = vadd.f32 %v353_v56, %v321_v61  ;;  %v415_v14 = vmax.f32 %v383_v63, 0.0  ;;  %v323_v16 = vadd.f32 %v616_v2, %v284_v3 }
  0x28   : > { %v386_v15 = vadd.f32 %v354_v62, %v322_v1  ;;  %v324_v17 = vadd.f32 %v616_v2, %v285_v4  ;;  %445 = vst [vmem:[%s646_s5 + $0x80] sm:$0xff] %v413_v7  ;;  %v416_v20 = vmax.f32 %v384_v9, 0.0  ;;  %v286_v22 = vmul.f32 %v598_v0, %v247_v5 }
  0x29   : > { %446 = vst [vmem:[%s646_s5 + $0x88] sm:$0xff] %v414_v8  ;;  %v417_v21 = vmax.f32 %v385_v10, 0.0  ;;  %v287_v23 = vmul.f32 %v598_v0, %v248_v6  ;;  %447 = vst [vmem:[%s646_s5 + $0x90] sm:$0xff] %v415_v14  ;;  %v387_v26 = vadd.f32 %v355_v11, %v323_v16  ;;  %v288_v30 = vmul.f32 %v598_v0, %v249_v13 }
  0x2a   : > { %v418_v25 = vmax.f32 %v386_v15, 0.0  ;;  %v388_v27 = vadd.f32 %v356_v12, %v324_v17  ;;  %448 = vst [vmem:[%s646_s5 + $0x98] sm:$0xff] %v416_v20  ;;  %v325_v31 = vadd.f32 %v616_v2, %v286_v22  ;;  %v289_v34 = vmul.f32 %v598_v0, %v250_v18 }
  0x2b   : > { %449 = vst [vmem:[%s646_s5 + $0xa0] sm:$0xff] %v417_v21  ;;  %v326_v32 = vadd.f32 %v616_v2, %v287_v23  ;;  %v290_v35 = vmul.f32 %v598_v0, %v251_v19  ;;  %v419_v38 = vmax.f32 %v387_v26, 0.0  ;;  %v327_v40 = vadd.f32 %v616_v2, %v288_v30 }
  0x2c   : > { %450 = vst [vmem:[%s646_s5 + $0xa8] sm:$0xff] %v418_v25  ;;  %v420_v39 = vmax.f32 %v388_v27, 0.0  ;;  %v291_v43 = vmul.f32 %v598_v0, %v252_v24  ;;  %v389_v44 = vadd.f32 %v357_v28, %v325_v31  ;;  %v328_v46 = vadd.f32 %v616_v2, %v289_v34 }
  0x2d   : > { %v390_v45 = vadd.f32 %v358_v29, %v326_v32  ;;  %v329_v47 = vadd.f32 %v616_v2, %v290_v35  ;;  %451 = vst [vmem:[%s646_s5 + $0xb0] sm:$0xff] %v419_v38  ;;  %v391_v49 = vadd.f32 %v359_v33, %v327_v40  ;;  %v292_v51 = vmul.f32 %v598_v0, %v253_v36 }
  0x2e   : > { %452 = vst [vmem:[%s646_s5 + $0xb8] sm:$0xff] %v420_v39  ;;  %v330_v50 = vadd.f32 %v616_v2, %v291_v43  ;;  %v293_v52 = vmul.f32 %v598_v0, %v254_v37  ;;  %v421_v53 = vmax.f32 %v389_v44, 0.0  ;;  %v392_v55 = vadd.f32 %v360_v41, %v328_v46 }
  0x2f   : > { %v422_v54 = vmax.f32 %v390_v45, 0.0  ;;  %v393_v56 = vadd.f32 %v361_v42, %v329_v47  ;;  %v423_v59 = vmax.f32 %v391_v49, 0.0  ;;  %v331_v61 = vadd.f32 %v616_v2, %v292_v51 }
  0x30   : > { %v394_v60 = vadd.f32 %v362_v48, %v330_v50  ;;  %v332_v62 = vadd.f32 %v616_v2, %v293_v52  ;;  %453 = vst [vmem:[%s646_s5 + $0xc0] sm:$0xff] %v421_v53  ;;  %v424_v0 = vmax.f32 %v392_v55, 0.0 }
  0x31   : > { %454 = vst [vmem:[%s646_s5 + $0xc8] sm:$0xff] %v422_v54  ;;  %v425_v63 = vmax.f32 %v393_v56, 0.0  ;;  %455 = vst [vmem:[%s646_s5 + $0xd0] sm:$0xff] %v423_v59  ;;  %v395_v3 = vadd.f32 %v363_v57, %v331_v61 }
  0x32   : > { %v426_v1 = vmax.f32 %v394_v60, 0.0  ;;  %v396_v4 = vadd.f32 %v364_v58, %v332_v62  ;;  %456 = vst [vmem:[%s646_s5 + $0xd8] sm:$0xff] %v424_v0 }
  0x33   : > { %457 = vst [vmem:[%s646_s5 + $0xe0] sm:$0xff] %v425_v63  ;;  %v427_v5 = vmax.f32 %v395_v3, 0.0 }
  0x34   : > { %458 = vst [vmem:[%s646_s5 + $0xe8] sm:$0xff] %v426_v1  ;;  %v428_v6 = vmax.f32 %v396_v4, 0.0 }
  0x35   : > { %459 = vst [vmem:[%s646_s5 + $0xf0] sm:$0xff] %v427_v5 }
  0x36   : > { %460 = vst [vmem:[%s646_s5 + $0xf8] sm:$0xff] %v428_v6 }
  0x37 PF: > { %s14_s15 = sadd.s32 1, %s558_s15  }
  0x38   : > { %p11_p4 = scmp.ge.s32.totalorder %s14_s15, 4  }
  0x3a   :  { %13 = sbr.rel (!%p11_p4) target bundleno = 1 (0x1), region = 69 }

// kernel: bottleneck_forward.5
= control target key start
LH: loop header
LB: loop body
LE: loop exit
PB: predicated region body
PF: predicated region fallthrough
CT: control target
= control target key end

     0   :  { %s3279_s21 = smov 0   ;;  %s4596_s0 = inlined_call_operand.vmem [shape: f32[2,16,16,128], index: 0, kind: input, shape index: {}]   ;;  %s4597_s1 = inlined_call_operand.vmem [shape: f32[1,128], index: 1, kind: input, shape index: {}]   ;;  %s4598_s2 = inlined_call_operand.vmem [shape: f32[1,128], index: 2, kind: input, shape index: {}]   ;;  %s4599_s3 = inlined_call_operand.vmem [shape: bf16[1152,128], index: 3, kind: input, shape index: {}]   ;;  %s4600_s4 = inlined_call_operand.vmem [shape: f32[512,128], index: 4, kind: output, shape index: {0}]   ;;  %s4601_s5 = inlined_call_operand.vmem [shape: f32[2,1,128], index: 5, kind: output, shape index: {1}]   ;;  %s4602_s6 = inlined_call_operand.vmem [shape: f32[2,1,128], index: 6, kind: output, shape index: {2}]  }
   0x1 LB: > { %s3285_s22 = sadd.s32 4294967295, %s3240_s21   ;;  %p2532_p0 = scmp.ge.s32.totalorder %s3240_s21, 1  ;;  %s3240_s21 = sphi %s3279_s21, %s17_s21  }
   0x2   : > { %p217_p1 = scmp.lt.s32.totalorder %s3240_s21, 3 }
   0x4   : > { %p218_p2 = pnand %p2532_p0, %p217_p1 }
   0x6   : > { %221 = sbr.rel (%p218_p2) target bundleno = 565 (0x235), region = 36 }
   0xd   : > { %v3159_v0 = vld [vmem:[%s4599_s3 + $0x40] sm:$0xff]   ;;  %v3242_v2 = vmov 0.0   ;;  %v3161_v3 = vld [vmem:[%s4599_s3 + $0x48] sm:$0xff]   ;;  %v3163_v5 = vld [vmem:[%s4599_s3 + $0x50] sm:$0xff]   ;;  %p253_p3 = scmp.lt.s32.totalorder %s3285_s22, 1  ;;  %vm587_vm0 = vcmask 1046528  }
   0xe   : > { %v3160_v1 = vld [vmem:[%s4599_s3] sm:$0xff]   ;;  %413 = vst [vmem:[#allocation2] sm:$0xff] %v3242_v2  ;;  %415 = vst [vmem:[#allocation2 + $0x10] sm:$0x3] %v3242_v2  ;;  %2614 = vmatprep.subr.bf16.mxu0 %v3159_v0  ;;  %3134 = vmatprep.subr.bf16.mxu1 %v3159_v0  ;;  %v3162_v4 = vld [vmem:[%s4599_s3 + $0x8] sm:$0xff]   ;;  %v588_v10 = vrot.slane %v3242_v2, 1 }
   0xf   : > { %419 = vst [vmem:[#allocation2 + $0x1a8] sm:$0x3] %v3242_v2  ;;  %421 = vst [vmem:[#allocation2 + $0x18] sm:$0x1] %v3242_v2  ;;  %2615 = vmatpush3.bf16.msra.mxu0 %v3160_v1  ;;  %3142 = vmatpush3.bf16.msra.mxu1 %v3160_v1  ;;  %v3164_v6 = vld [vmem:[%s4599_s3 + $0x10] sm:$0xff]   ;;  %s3344_s11 = scalar_select %p253_p3, %s3285_s22, 1 }
  0x10   : > { %422 = vst [vmem:[#allocation2 + $0x30] sm:$0x1] %v3242_v2  ;;  %423 = vst [vmem:[#allocation2 + $0x48] sm:$0x1] %v3242_v2  ;;  %2616 = vmatprep.subr.bf16.mxu0 %v3161_v3  ;;  %3135 = vmatprep.subr.bf16.mxu1 %v3161_v3  ;;  %v3165_v7 = vld [vmem:[%s4599_s3 + $0x58] sm:$0xff]   ;;  %v3167_v9 = vld [vmem:[%s4599_s3 + $0x60] sm:$0xff]  }
  0x11   : > { %424 = vst [vmem:[#allocation2 + $0x60] sm:$0x1] %v3242_v2  ;;  %425 = vst [vmem:[#allocation2 + $0x78] sm:$0x1] %v3242_v2  ;;  %s2613_s14 = sshll.u32 %s3344_s11, 8  ;;  %v3166_v8 = vld [vmem:[%s4599_s3 + $0x18] sm:$0xff]   ;;  %s266_s19 = scalar_lea.vmem %s4601_s5, %s3344_s11 }
  0x12   : > { %426 = vst [vmem:[#allocation2 + $0x90] sm:$0x1] %v3242_v2  ;;  %427 = vst [vmem:[#allocation2 + $0xa8] sm:$0x1] %v3242_v2  ;;  %s3360_s23 = scalar_lea.vmem %s4596_s0, %s2613_s14  ;;  %v3168_v11 = vld [vmem:[%s4599_s3 + $0x20] sm:$0xff]   ;;  %v3169_v12 = vld [vmem:[%s4599_s3 + $0x68] sm:$0xff]   ;;  %s269_s25 = scalar_lea.vmem %s4602_s6, %s3344_s11 }
  0x13   : > { %428 = vst [vmem:[#allocation2 + $0xc0] sm:$0x1] %v3242_v2  ;;  %429 = vst [vmem:[#allocation2 + $0xd8] sm:$0x1] %v3242_v2  ;;  %2617 = vmatpush3.bf16.msra.mxu0 %v3162_v4  ;;  %3143 = vmatpush3.bf16.msra.mxu1 %v3162_v4  ;;  %v293_v14 = vld [vmem:[%s3360_s23 + $0xb0] sm:$0xff]  ;;  %v294_v15 = vld [vmem:[%s3360_s23 + $0xb8] sm:$0xff] }
  0x14   : > { %430 = vst [vmem:[#allocation2 + $0xf0] sm:$0x1] %v3242_v2  ;;  %431 = vst [vmem:[#allocation2 + $0x108] sm:$0x1] %v3242_v2  ;;  %2618 = vmatprep.subr.bf16.mxu0 %v3163_v5  ;;  %3136 = vmatprep.subr.bf16.mxu1 %v3163_v5  ;;  %v3376_v17 = vld [vmem:[%s4597_s1] ss:$0 sm:$0xff] }
  0x15   : > { %432 = vst [vmem:[#allocation2 + $0x120] sm:$0x1] %v3242_v2  ;;  %433 = vst [vmem:[#allocation2 + $0x138] sm:$0x1] %v3242_v2  ;;  %v3368_v13 = vld [vmem:[#allocation2 + $0x10] sm:$0x3]  ;;  %v332_v19 = vmul.f32 %v3376_v17, %v293_v14  ;;  %v333_v20 = vmul.f32 %v3376_v17, %v294_v15 }
  0x16   : > { %434 = vst [vmem:[#allocation2 + $0x150] sm:$0x1] %v3242_v2  ;;  %435 = vst [vmem:[#allocation2 + $0x168] sm:$0x1] %v3242_v2  ;;  %v591_v16 = vrot.slane %v3368_v13, 1  ;;  %v3170_v21 = vld [vmem:[%s4599_s3 + $0x28] sm:$0xff]  }
  0x17   : > { %436 = vst [vmem:[#allocation2 + $0x180] sm:$0x1] %v3242_v2  ;;  %437 = vst [vmem:[#allocation2 + $0x29] sm:$0x1] %v3242_v2  ;;  %2619 = vmatpush3.bf16.msra.mxu0 %v3164_v6  ;;  %3144 = vmatpush3.bf16.msra.mxu1 %v3164_v6  ;;  %v3381_v18 = vld [vmem:[%s4598_s2] ss:$0 sm:$0xff] }
  0x18   : > { %438 = vst [vmem:[#allocation2 + $0x41] sm:$0x1] %v3242_v2  ;;  %439 = vst [vmem:[#allocation2 + $0x59] sm:$0x1] %v3242_v2  ;;  %2620 = vmatprep.subr.bf16.mxu0 %v3165_v7  ;;  %3137 = vmatprep.subr.bf16.mxu1 %v3165_v7  ;;  %v592_v22 = vsel %vm587_vm0, %v588_v10, %v591_v16  ;;  %v3171_v23 = vld [vmem:[%s4599_s3 + $0x70] sm:$0xff]   ;;  %v371_v25 = vadd.f32 %v3381_v18, %v332_v19  ;;  %v3173_v30 = vld [vmem:[%s4599_s3 + $0x78] sm:$0xff]  }
  0x19   : > { %440 = vst [vmem:[#allocation2 + $0x71] sm:$0x1] %v3242_v2  ;;  %441 = vst [vmem:[#allocation2 + $0x89] sm:$0x1] %v3242_v2  ;;  %v848_v24 = vpack.c.bf16 %v592_v22, %v588_v10  ;;  %v372_v26 = vadd.f32 %v3381_v18, %v333_v20  ;;  %v3172_v29 = vld [vmem:[%s4599_s3 + $0x30] sm:$0xff]   ;;  %v271_v31 = vld [vmem:[%s3360_s23] sm:$0xff] }
  0x1a   : > { %442 = vst [vmem:[#allocation2 + $0xa1] sm:$0x1] %v3242_v2  ;;  %443 = vst [vmem:[#allocation2 + $0xb9] sm:$0x1] %v3242_v2  ;;  %v403_v27 = vmax.f32 %v371_v25, 0.0  ;;  %v272_v32 = vld [vmem:[%s3360_s23 + $0x8] sm:$0xff]  ;;  %v310_v33 = vmul.f32 %v3376_v17, %v271_v31 }
  0x1b   : > { %444 = vst [vmem:[#allocation2 + $0xd1] sm:$0x1] %v3242_v2  ;;  %445 = vst [vmem:[#allocation2 + $0xe9] sm:$0x1] %v3242_v2  ;;  %2621 = vmatpush3.bf16.msra.mxu0 %v3166_v8  ;;  %3145 = vmatpush3.bf16.msra.mxu1 %v3166_v8  ;;  %v404_v28 = vmax.f32 %v372_v26, 0.0  ;;  %v311_v34 = vmul.f32 %v3376_v17, %v272_v32  ;;  %v295_v35 = vld [vmem:[%s3360_s23 + $0xc0] sm:$0xff] }
  0x1c   : > { %446 = vst [vmem:[#allocation2 + $0x101] sm:$0x1] %v3242_v2  ;;  %447 = vst [vmem:[#allocation2 + $0x119] sm:$0x1] %v3242_v2  ;;  %2622 = vmatprep.subr.bf16.mxu0 %v3167_v9  ;;  %3138 = vmatprep.subr.bf16.mxu1 %v3167_v9  ;;  %v296_v36 = vld [vmem:[%s3360_s23 + $0xc8] sm:$0xff]  ;;  %v3174_v37 = vld [vmem:[%s4599_s3 + $0x38] sm:$0xff]   ;;  %v334_v38 = vmul.f32 %v3376_v17, %v295_v35  ;;  %v349_v41 = vadd.f32 %v3381_v18, %v310_v33 }
  0x1d   : > { %448 = vst [vmem:[#allocation2 + $0x131] sm:$0x1] %v3242_v2  ;;  %449 = vst [vmem:[#allocation2 + $0x149] sm:$0x1] %v3242_v2  ;;  %1509 = vmatprep.mubr.bf16.mxu0 %v848_v24  ;;  %v335_v39 = vmul.f32 %v3376_v17, %v296_v36  ;;  %v3175_v40 = vld [vmem:[%s4599_s3 + $0xc0] sm:$0xff]   ;;  %v350_v42 = vadd.f32 %v3381_v18, %v311_v34  ;;  %v3184_v57 = vld [vmem:[%s4599_s3 + $0x148] sm:$0xff]  }
  0x1e   : > { %450 = vst [vmem:[#allocation2 + $0x161] sm:$0x1] %v3242_v2  ;;  %451 = vst [vmem:[#allocation2 + $0x179] sm:$0x1] %v3242_v2  ;;  %v3176_v43 = vld [vmem:[%s4599_s3 + $0x140] sm:$0xff]   ;;  %v373_v44 = vadd.f32 %v3381_v18, %v334_v38  ;;  %v381_v47 = vmax.f32 %v349_v41, 0.0 }
  0x1f   : > { %452 = vst [vmem:[#allocation2 + $0x191] sm:$0x1] %v3242_v2  ;;  %2623 = vmatpush3.bf16.msra.mxu0 %v3168_v11  ;;  %3146 = vmatpush3.bf16.msra.mxu1 %v3168_v11  ;;  %475 = vst [vmem:[#allocation2 + $0x121] sm:$0xff] %v403_v27  ;;  %v374_v45 = vadd.f32 %v3381_v18, %v335_v39  ;;  %v3178_v46 = vld [vmem:[%s4599_s3 + $0x100] sm:$0xff]   ;;  %v382_v48 = vmax.f32 %v350_v42, 0.0  ;;  %v273_v60 = vld [vmem:[%s3360_s23 + $0x10] sm:$0xff] }
  0x20   : > { %2624 = vmatprep.subr.bf16.mxu0 %v3169_v12  ;;  %3139 = vmatprep.subr.bf16.mxu1 %v3169_v12  ;;  %476 = vst [vmem:[#allocation2 + $0x129] sm:$0xff] %v404_v28  ;;  %v405_v49 = vmax.f32 %v373_v44, 0.0  ;;  %453 = vst [vmem:[#allocation2 + $0x19] sm:$0xff] %v381_v47  ;;  %v3177_v59 = vld [vmem:[%s4599_s3 + $0x80] sm:$0xff]   ;;  %v274_v61 = vld [vmem:[%s3360_s23 + $0x18] sm:$0xff]  ;;  %v3243_v0 = vmov 0.0|0.0   ;;  %v312_v1 = vmul.f32 %v3376_v17, %v273_v60 }
  0x21   : > { %v406_v50 = vmax.f32 %v374_v45, 0.0  ;;  %454 = vst [vmem:[#allocation2 + $0x21] sm:$0xff] %v382_v48  ;;  %v313_v3 = vmul.f32 %v3376_v17, %v274_v61  ;;  %v297_v4 = vld [vmem:[%s3360_s23 + $0xd0] sm:$0xff]  ;;  %v298_v5 = vld [vmem:[%s3360_s23 + $0xd8] sm:$0xff]  ;;  %v3186_v7 = vld [vmem:[%s4599_s3 + $0x108] sm:$0xff]   ;;  %vm700_vm1 = vcmask 1045504  }
  0x22   : > { %477 = vst [vmem:[#allocation2 + $0x139] sm:$0xff] %v405_v49  ;;  %v336_v8 = vmul.f32 %v3376_v17, %v297_v4  ;;  %v337_v9 = vmul.f32 %v3376_v17, %v298_v5  ;;  %v3179_v11 = vld [vmem:[%s4599_s3 + $0xc8] sm:$0xff]   ;;  %v351_v12 = vadd.f32 %v3381_v18, %v312_v1  ;;  %v3181_v24 = vld [vmem:[%s4599_s3 + $0xd0] sm:$0xff]   ;;  %v275_v39 = vld [vmem:[%s3360_s23 + $0x20] sm:$0xff]  ;;  %s2535_s14 = sshll.u32 %s3285_s22, 5 }
  0x23   : > { %2625 = vmatpush3.bf16.msra.mxu0 %v3170_v21  ;;  %3147 = vmatpush3.bf16.msra.mxu1 %v3170_v21  ;;  %478 = vst [vmem:[#allocation2 + $0x141] sm:$0xff] %v406_v50  ;;  %v352_v14 = vadd.f32 %v3381_v18, %v313_v3  ;;  %v3180_v16 = vld [vmem:[%s4599_s3 + $0x88] sm:$0xff]   ;;  %v299_v45 = vld [vmem:[%s3360_s23 + $0xe0] sm:$0xff]  ;;  %v314_v48 = vmul.f32 %v3376_v17, %v275_v39  ;;  %v3192_v60 = vld [vmem:[%s4599_s3 + $0x150] sm:$0xff]   ;;  %p259_p4 = scmp.lt.s32.totalorder %s2535_s14, 63 }
  0x24   : > { %2626 = vmatprep.subr.bf16.mxu0 %v3171_v23  ;;  %3140 = vmatprep.subr.bf16.mxu1 %v3171_v23  ;;  %v375_v19 = vadd.f32 %v3381_v18, %v336_v8  ;;  %v376_v20 = vadd.f32 %v3381_v18, %v337_v9  ;;  %v383_v25 = vmax.f32 %v351_v12, 0.0  ;;  %v276_v44 = vld [vmem:[%s3360_s23 + $0x28] sm:$0xff]  ;;  %v3183_v61 = vld [vmem:[%s4599_s3 + $0xd8] sm:$0xff]   ;;  %v3194_v5 = vld [vmem:[%s4599_s3 + $0x110] sm:$0xff]  }
  0x25   : > { %v384_v26 = vmax.f32 %v352_v14, 0.0  ;;  %v315_v49 = vmul.f32 %v3376_v17, %v276_v44  ;;  %v300_v50 = vld [vmem:[%s3360_s23 + $0xe8] sm:$0xff]  ;;  %v3185_v1 = vld [vmem:[%s4599_s3 + $0x98] sm:$0xff]   ;;  %s4618_s14 = smov (!%p259_p4, %s2535_s14), 63 }
  0x26   : > { %v521_v51 = vld [vmem:[#allocation2 + $0x120] sm:$0xff]  ;;  %455 = vst [vmem:[#allocation2 + $0x31] sm:$0xff] %v383_v25  ;;  %v407_v38 = vmax.f32 %v375_v19, 0.0  ;;  %v278_v39 = vld [vmem:[%s3360_s23 + $0x38] sm:$0xff]  ;;  %s2536_s22 = sshll.u32 %s4618_s14, 3 }
  0x27   : > { %2627 = vmatpush3.bf16.msra.mxu0 %v3172_v29  ;;  %3148 = vmatpush3.bf16.msra.mxu1 %v3172_v29  ;;  %v3424_v52 = vld [vmem:[#allocation2 + $0x128] sm:$0xff]  ;;  %v3426_v53 = vld [vmem:[#allocation2 + $0x130] sm:$0x3]  ;;  %v648_v54 = vrot.slane %v521_v51, 1  ;;  %v761_v10 = vrot.slane %v521_v51, 2  ;;  %v3467_v21 = vld [vmem:[#allocation2 + $0x18] sm:$0xff]  ;;  %s4501_s17 = scalar_lea.vmem %s4600_s4, %s2536_s22 }
  0x28   : > { %2628 = vmatprep.subr.bf16.mxu0 %v3173_v30  ;;  %3141 = vmatprep.subr.bf16.mxu1 %v3173_v30  ;;  %v649_v55 = vrot.slane %v3424_v52, 1  ;;  %v651_v56 = vrot.slane %v3426_v53, 1  ;;  %v3434_v58 = vpack.c.bf16 %v3424_v52, %v521_v51  ;;  %v762_v15 = vrot.slane %v3424_v52, 2  ;;  %v3469_v22 = vld [vmem:[#allocation2 + $0x20] sm:$0xff]  ;;  %v3471_v23 = vld [vmem:[#allocation2 + $0x28] sm:$0x3] }
  0x29   : > { %v593_v28 = vrot.slane %v3467_v21, 1  ;;  %v594_v29 = vrot.slane %v3469_v22, 1  ;;  %v596_v30 = vrot.slane %v3471_v23, 1  ;;  %v3480_v31 = vld [vmem:[#allocation2 + $0x138] sm:$0xff]  ;;  %v764_v33 = vrot.slane %v3426_v53, 2  ;;  %456 = vst [vmem:[#allocation2 + $0x39] sm:$0xff] %v384_v26 }
  0x2a   : > { %v650_v62 = vsel %vm587_vm0, %v648_v54, %v649_v55  ;;  %v652_v63 = vsel %vm587_vm0, %v649_v55, %v651_v56  ;;  %v763_v27 = vsel %vm700_vm1, %v761_v10, %v762_v15  ;;  %v3482_v32 = vld [vmem:[#allocation2 + $0x140] sm:$0xff]  ;;  %v3485_v34 = vld [vmem:[#allocation2 + $0x148] sm:$0x3]  ;;  %v653_v35 = vrot.slane %v3480_v31, 1  ;;  %479 = vst [vmem:[#allocation2 + $0x151] sm:$0xff] %v407_v38  ;;  %v3182_v53 = vld [vmem:[%s4599_s3 + $0x90] sm:$0xff]  }
  0x2b   : > { %2629 = vmatpush3.bf16.msra.mxu0 %v3174_v37  ;;  %3149 = vmatpush3.bf16.msra.mxu1 %v3174_v37  ;;  %v3447_v6 = vpack.c.bf16 %v652_v63, %v650_v62  ;;  %v654_v36 = vrot.slane %v3482_v32, 1  ;;  %v3491_v37 = vpack.c.bf16 %v3469_v22, %v3467_v21  ;;  %v597_v41 = vsel %vm587_vm0, %v594_v29, %v596_v30  ;;  %v3187_v19 = vld [vmem:[%s4599_s3 + $0xe0] sm:$0xff]   ;;  %v277_v30 = vld [vmem:[%s3360_s23 + $0x30] sm:$0xff] }
  0x2c   : > { %2726 = vmatprep.subr.bf16.mxu1 %v3175_v40  ;;  %2838 = vmatprep.subr.bf16.mxu0 %v3176_v43  ;;  %v595_v40 = vsel %vm587_vm0, %v593_v28, %v594_v29  ;;  %v656_v42 = vrot.slane %v3485_v34, 1  ;;  %v408_v43 = vmax.f32 %v376_v20, 0.0  ;;  %v3508_v52 = vpack.c.bf16 %v3482_v32, %v3480_v31  ;;  %v3188_v38 = vld [vmem:[%s4599_s3 + $0xa0] sm:$0xff]  }
  0x2d   : > { %1605 = vmatprep.mubr.bf16.mxu1 %v3447_v6  ;;  %v655_v47 = vsel %vm587_vm0, %v653_v35, %v654_v36  ;;  %v338_v54 = vmul.f32 %v3376_v17, %v299_v45  ;;  %v339_v55 = vmul.f32 %v3376_v17, %v300_v50  ;;  %v3540_v8 = vld [vmem:[#allocation2 + $0x30] sm:$0xff] }
  0x2e   : > { %1510 = vmatmul.mubr.bf16.vlgmr.msra.gmra.mrb[0].mxu0 %v3243_v0  ;;  %1606 = vmatmul.mubr.bf16.vlgmr.msra.gmra.mrb[0].mxu1 %v3434_v58  ;;  %v657_v51 = vsel %vm587_vm0, %v654_v36, %v656_v42  ;;  %480 = vst [vmem:[#allocation2 + $0x159] sm:$0xff] %v408_v43  ;;  %v765_v0 = vsel %vm700_vm1, %v762_v15, %v764_v33  ;;  %v598_v14 = vrot.slane %v3540_v8, 1  ;;  %v3577_v42 = vrot.slane %v3242_v2, 2  ;;  %v3190_v2 = vld [vmem:[%s4599_s3 + $0xa8] sm:$0xff]  }
  0x2f   : > { %2839 = vmatpush3.bf16.msra.mxu0 %v3178_v46  ;;  %2727 = vmatpush3.bf16.msra.mxu1 %v3177_v59  ;;  %v3499_v46 = vpack.c.bf16 %v597_v41, %v595_v40  ;;  %v3516_v56 = vpack.c.bf16 %v657_v51, %v655_v47  ;;  %v354_v59 = vadd.f32 %v3381_v18, %v315_v49  ;;  %v3189_v47 = vld [vmem:[%s4599_s3 + $0xe8] sm:$0xff]   ;;  %v3199_v51 = vld [vmem:[%s4599_s3 + $0x158] sm:$0xff]  }
  0x30   : > { %2840 = vmatprep.subr.bf16.mxu0 %v3184_v57  ;;  %2728 = vmatprep.subr.bf16.mxu1 %v3179_v11  ;;  %v353_v57 = vadd.f32 %v3381_v18, %v314_v48  ;;  %v377_v62 = vadd.f32 %v3381_v18, %v338_v54  ;;  %v378_v63 = vadd.f32 %v3381_v18, %v339_v55  ;;  %v3542_v9 = vld [vmem:[#allocation2 + $0x38] sm:$0xff]  ;;  %v3544_v10 = vld [vmem:[#allocation2 + $0x40] sm:$0x3] }
  0x31   : > { %1517 = vmatprep.mubr.bf16.mxu0 %v3499_v46  ;;  %4610 = vst [vmem:[#allocation3_spill] sm:$0xff] %v3516_v56  ;;  %1613 = vmatprep.mubr.bf16.mxu1 %v3516_v56  ;;  %v386_v4 = vmax.f32 %v354_v59, 0.0  ;;  %v599_v15 = vrot.slane %v3542_v9, 1  ;;  %v3552_v20 = vld [vmem:[#allocation2 + $0x150] sm:$0xff]  ;;  %v3563_v29 = vpack.c.bf16 %v3542_v9, %v3540_v8  ;;  %v316_v40 = vmul.f32 %v3376_v17, %v277_v30  ;;  %v280_v30 = vld [vmem:[%s3360_s23 + $0x48] sm:$0xff] }
  0x32   : > { %v385_v3 = vmax.f32 %v353_v57, 0.0  ;;  %v409_v11 = vmax.f32 %v377_v62, 0.0  ;;  %v410_v12 = vmax.f32 %v378_v63, 0.0  ;;  %v658_v28 = vrot.slane %v3552_v20, 1  ;;  %v3191_v59 = vld [vmem:[%s4599_s3 + $0xf0] sm:$0xff]  }
  0x33   : > { %2841 = vmatpush3.bf16.msra.mxu0 %v3186_v7  ;;  %2729 = vmatpush3.bf16.msra.mxu1 %v3180_v16  ;;  %v3537_v7 = vpack.c.bf16 %v765_v0, %v763_v27  ;;  %v601_v16 = vrot.slane %v3544_v10, 1  ;;  %458 = vst [vmem:[#allocation2 + $0x51] sm:$0xff] %v386_v4  ;;  %v317_v41 = vmul.f32 %v3376_v17, %v278_v39 }
  0x34   : > { %2730 = vmatprep.subr.bf16.mxu1 %v3181_v24  ;;  %2842 = vmatprep.subr.bf16.mxu0 %v3192_v60  ;;  %457 = vst [vmem:[#allocation2 + $0x49] sm:$0xff] %v385_v3  ;;  %481 = vst [vmem:[#allocation2 + $0x169] sm:$0xff] %v409_v11  ;;  %v600_v24 = vsel %vm587_vm0, %v598_v14, %v599_v15  ;;  %v355_v49 = vadd.f32 %v3381_v18, %v316_v40  ;;  %v767_v60 = vrot.slane %v3482_v32, 2  ;;  %v3200_v3 = vld [vmem:[%s4599_s3 + $0x118] sm:$0xff]  }
  0x35   : > { %482 = vst [vmem:[#allocation2 + $0x171] sm:$0xff] %v410_v12  ;;  %v602_v25 = vsel %vm587_vm0, %v599_v15, %v601_v16  ;;  %v3556_v26 = vld [vmem:[#allocation2 + $0x158] sm:$0xff]  ;;  %v3558_v27 = vld [vmem:[#allocation2 + $0x160] sm:$0x3]  ;;  %v356_v50 = vadd.f32 %v3381_v18, %v317_v41  ;;  %v319_v41 = vmul.f32 %v3376_v17, %v280_v30  ;;  %v3205_v30 = vld [vmem:[%s4599_s3 + $0x168] sm:$0xff]   ;;  %v707_v32 = vrot.slane %v3469_v22, 2 }
  0x36   : > { %1518 = vmatmul.mubr.bf16.gmra.mrb[4].mxu0 %v3491_v37  ;;  %1614 = vmatmul.mubr.bf16.gmra.mrb[4].mxu1 %v3508_v52  ;;  %v3566_v33 = vpack.c.bf16 %v602_v25, %v600_v24  ;;  %v659_v35 = vrot.slane %v3556_v26, 1  ;;  %v661_v36 = vrot.slane %v3558_v27, 1  ;;  %v3584_v45 = vpack.c.bf16 %v3556_v26, %v3552_v20  ;;  %v279_v15 = vld [vmem:[%s3360_s23 + $0x40] sm:$0xff]  ;;  %v3193_v25 = vld [vmem:[%s4599_s3 + $0xb0] sm:$0xff]  }
  0x37   : > { %2731 = vmatpush3.bf16.msra.mxu1 %v3182_v53  ;;  %2843 = vmatpush3.bf16.msra.mxu0 %v3194_v5  ;;  %v766_v53 = vrot.slane %v3480_v31, 2  ;;  %v387_v14 = vmax.f32 %v355_v49, 0.0  ;;  %v318_v40 = vmul.f32 %v3376_v17, %v279_v15  ;;  %v3195_v49 = vld [vmem:[%s4599_s3 + $0xf8] sm:$0xff]   ;;  %v771_v22 = vrot.slane %v3552_v20, 2 }
  0x38   : > { %2732 = vmatprep.subr.bf16.mxu1 %v3183_v61  ;;  %1525 = vmatprep.mubr.bf16.mxu0 %v3566_v33  ;;  %v660_v43 = vsel %vm587_vm0, %v658_v28, %v659_v35  ;;  %v662_v44 = vsel %vm587_vm0, %v659_v35, %v661_v36  ;;  %v769_v61 = vrot.slane %v3485_v34, 2  ;;  %v388_v28 = vmax.f32 %v356_v50, 0.0  ;;  %v281_v35 = vld [vmem:[%s3360_s23 + $0x50] sm:$0xff]  ;;  %v282_v36 = vld [vmem:[%s3360_s23 + $0x58] sm:$0xff]  ;;  %v3206_v34 = vld [vmem:[%s4599_s3 + $0x128] sm:$0xff]  }
  0x39   : > { %v3589_v48 = vpack.c.bf16 %v662_v44, %v660_v43  ;;  %2844 = vmatprep.subr.bf16.mxu0 %v3199_v51  ;;  %459 = vst [vmem:[#allocation2 + $0x61] sm:$0xff] %v387_v14  ;;  %v3201_v43 = vld [vmem:[%s4599_s3 + $0x160] sm:$0xff]   ;;  %v320_v50 = vmul.f32 %v3376_v17, %v281_v35  ;;  %v321_v51 = vmul.f32 %v3376_v17, %v282_v36 }
  0x3a   : > { %v3605_v57 = vld [vmem:[#allocation2 + $0x58] sm:$0x3]  ;;  %460 = vst [vmem:[#allocation2 + $0x69] sm:$0xff] %v388_v28  ;;  %v3197_v14 = vld [vmem:[%s4599_s3 + $0x1c0] sm:$0xff]   ;;  %v284_v28 = vld [vmem:[%s3360_s23 + $0x68] sm:$0xff] }
  0x3b   : > { %2733 = vmatpush3.bf16.msra.mxu1 %v3185_v1  ;;  %4611 = vst [vmem:[#allocation4_spill] sm:$0xff] %v3589_v48  ;;  %v3601_v54 = vld [vmem:[#allocation2 + $0x48] sm:$0xff]  ;;  %v3603_v55 = vld [vmem:[#allocation2 + $0x50] sm:$0xff]  ;;  %1621 = vmatprep.mubr.bf16.mxu1 %v3589_v48  ;;  %v606_v63 = vrot.slane %v3605_v57, 1 }
  0x3c   : > { %2734 = vmatprep.subr.bf16.mxu1 %v3187_v19  ;;  %v603_v31 = vrot.slane %v3601_v54, 1  ;;  %v604_v62 = vrot.slane %v3603_v55, 1  ;;  %v3616_v0 = vld [vmem:[#allocation2 + $0x168] sm:$0xff]  ;;  %v3618_v1 = vld [vmem:[#allocation2 + $0x170] sm:$0xff]  ;;  %v3624_v4 = vld [vmem:[#allocation2 + $0x178] sm:$0x3]  ;;  %v3630_v12 = vpack.c.bf16 %v3603_v55, %v3601_v54  ;;  %2845 = vmatpush3.bf16.msra.mxu0 %v3200_v3 }
  0x3d   : > { %v663_v5 = vrot.slane %v3616_v0, 1  ;;  %v664_v11 = vrot.slane %v3618_v1, 1  ;;  %v666_v24 = vrot.slane %v3624_v4, 1  ;;  %v3203_v3 = vld [vmem:[%s4599_s3 + $0x120] sm:$0xff]   ;;  %2846 = vmatprep.subr.bf16.mxu0 %v3201_v43 }
  0x3e   : > { %1526 = vmatmul.mubr.bf16.gmra.mrb[8].mxu0 %v3563_v29  ;;  %1622 = vmatmul.mubr.bf16.gmra.mrb[8].mxu1 %v3584_v45  ;;  %v605_v16 = vsel %vm587_vm0, %v603_v31, %v604_v62  ;;  %v607_v19 = vsel %vm587_vm0, %v604_v62, %v606_v63  ;;  %v704_v31 = vrot.slane %v3368_v13, 2  ;;  %v357_v62 = vadd.f32 %v3381_v18, %v318_v40  ;;  %v3196_v13 = vld [vmem:[%s4599_s3 + $0xb8] sm:$0xff]  }
  0x3f   : > { %2735 = vmatpush3.bf16.msra.mxu1 %v3188_v38  ;;  %v3642_v38 = vpack.c.bf16 %v607_v19, %v605_v16  ;;  %v665_v39 = vsel %vm587_vm0, %v663_v5, %v664_v11  ;;  %v667_v44 = vsel %vm587_vm0, %v664_v11, %v666_v24  ;;  %v358_v63 = vadd.f32 %v3381_v18, %v319_v41  ;;  %v283_v24 = vld [vmem:[%s3360_s23 + $0x60] sm:$0xff] }
  0x40   : > { %2736 = vmatprep.subr.bf16.mxu1 %v3189_v47  ;;  %v3653_v47 = vpack.c.bf16 %v3618_v1, %v3616_v0  ;;  %v359_v5 = vadd.f32 %v3381_v18, %v320_v50  ;;  %v768_v11 = vsel %vm700_vm1, %v766_v53, %v767_v60  ;;  %v389_v15 = vmax.f32 %v357_v62, 0.0  ;;  %2847 = vmatpush3.bf16.msra.mxu0 %v3203_v3 }
  0x41   : > { %1533 = vmatprep.mubr.bf16.mxu0 %v3642_v38  ;;  %v390_v16 = vmax.f32 %v358_v63, 0.0  ;;  %v706_v19 = vrot.slane %v3467_v21, 2  ;;  %v770_v53 = vsel %vm700_vm1, %v767_v60, %v769_v61  ;;  %v323_v40 = vmul.f32 %v3376_v17, %v284_v28  ;;  %v3704_v61 = vld [vmem:[#allocation2 + $0x60] sm:$0xff]  ;;  %2848 = vmatprep.subr.bf16.mxu0 %v3205_v30 }
  0x42   : > { %v391_v35 = vmax.f32 %v359_v5, 0.0  ;;  %v705_v41 = vsel %vm700_vm1, %v3577_v42, %v704_v31  ;;  %461 = vst [vmem:[#allocation2 + $0x79] sm:$0xff] %v389_v15  ;;  %v3702_v60 = vpack.c.bf16 %v770_v53, %v768_v11  ;;  %v4603_v50 = vrot.slane %v3556_v26, 2  ;;  %v3715_v31 = vld [vmem:[#allocation2 + $0x70] sm:$0x3] }
  0x43   : > { %2737 = vmatpush3.bf16.msra.mxu1 %v3190_v2  ;;  %v3662_v2 = vpack.c.bf16 %v667_v44, %v665_v39  ;;  %v322_v39 = vmul.f32 %v3376_v17, %v283_v24  ;;  %462 = vst [vmem:[#allocation2 + $0x81] sm:$0xff] %v390_v16  ;;  %v362_v43 = vadd.f32 %v3381_v18, %v323_v40  ;;  %v285_v44 = vld [vmem:[%s3360_s23 + $0x70] sm:$0xff]  ;;  %v608_v62 = vrot.slane %v3704_v61, 1 }
  0x44   : > { %2738 = vmatprep.subr.bf16.mxu1 %v3191_v59  ;;  %v360_v59 = vadd.f32 %v3381_v18, %v321_v51  ;;  %463 = vst [vmem:[#allocation2 + $0x91] sm:$0xff] %v391_v35  ;;  %v3713_v51 = vld [vmem:[#allocation2 + $0x68] sm:$0xff]  ;;  %2849 = vmatpush3.bf16.msra.mxu0 %v3206_v34  ;;  %v324_v63 = vmul.f32 %v3376_v17, %v285_v44  ;;  %v611_v5 = vrot.slane %v3715_v31, 1 }
  0x45   : > { %4612 = vst [vmem:[#allocation5_spill] sm:$0xff] %v3662_v2  ;;  %1629 = vmatprep.mubr.bf16.mxu1 %v3662_v2  ;;  %v609_v20 = vrot.slane %v3713_v51, 1  ;;  %v849_v15 = vpack.c.bf16 %v705_v41, %v3577_v42  ;;  %v394_v16 = vmax.f32 %v362_v43, 0.0  ;;  %v3736_v53 = vpack.c.bf16 %v3713_v51, %v3704_v61  ;;  %v287_v42 = vld [vmem:[%s3360_s23 + $0x80] sm:$0xff]  ;;  %v3204_v44 = vld [vmem:[%s4599_s3 + $0x188] sm:$0xff]  }
  0x46   : > { %1534 = vmatmul.mubr.bf16.gmra.mrb[12].mxu0 %v3630_v12  ;;  %v392_v36 = vmax.f32 %v360_v59, 0.0  ;;  %1630 = vmatmul.mubr.bf16.gmra.mrb[12].mxu1 %v3653_v47  ;;  %v3198_v59 = vld [vmem:[%s4599_s3 + $0x180] sm:$0xff]   ;;  %v3743_v35 = vsel %vm700_vm1, %v771_v22, %v4603_v50  ;;  %v708_v43 = vsel %vm700_vm1, %v706_v19, %v707_v32  ;;  %v717_v2 = vrot.slane %v3603_v55, 2 }
  0x47   : > { %2739 = vmatpush3.bf16.msra.mxu1 %v3193_v25  ;;  %1670 = vmatprep.mubr.bf16.mxu1 %v3491_v37  ;;  %v361_v25 = vadd.f32 %v3381_v18, %v322_v39  ;;  %v709_v37 = vrot.slane %v3471_v23, 2  ;;  %v3202_v23 = vld [vmem:[%s4599_s3 + $0x1c8] sm:$0xff]   ;;  %v610_v28 = vsel %vm587_vm0, %v608_v62, %v609_v20  ;;  %v612_v30 = vsel %vm587_vm0, %v609_v20, %v611_v5  ;;  %v3207_v5 = vld [vmem:[%s4599_s3 + $0x1d0] sm:$0xff]   ;;  %v291_v50 = vld [vmem:[%s3360_s23 + $0xa0] sm:$0xff] }
  0x48   : > { %2740 = vmatprep.subr.bf16.mxu1 %v3195_v49  ;;  %464 = vst [vmem:[#allocation2 + $0x99] sm:$0xff] %v392_v36  ;;  %v286_v49 = vld [vmem:[%s3360_s23 + $0x78] sm:$0xff]  ;;  %v3745_v36 = vpack.c.bf16 %v612_v30, %v610_v28  ;;  %466 = vst [vmem:[#allocation2 + $0xb1] sm:$0xff] %v394_v16  ;;  %v289_v30 = vld [vmem:[%s3360_s23 + $0x90] sm:$0xff]  ;;  %v330_v48 = vmul.f32 %v3376_v17, %v291_v50 }
  0x49   : > { %v325_v3 = vmul.f32 %v3376_v17, %v286_v49  ;;  %v393_v11 = vmax.f32 %v361_v25, 0.0  ;;  %v3747_v41 = vld [vmem:[#allocation2 + $0x78] sm:$0xff]  ;;  %v326_v49 = vmul.f32 %v3376_v17, %v287_v42  ;;  %v710_v21 = vsel %vm700_vm1, %v707_v32, %v709_v37  ;;  %v3864_v55 = vld [vmem:[%s4599_s3 + $0x200] sm:$0xff]  }
  0x4a   : > { %v3749_v34 = vld [vmem:[#allocation2 + $0x80] sm:$0xff]  ;;  %v3751_v25 = vld [vmem:[#allocation2 + $0x88] sm:$0x3]  ;;  %1541 = vmatprep.mubr.bf16.mxu0 %v3745_v36  ;;  %v613_v62 = vrot.slane %v3747_v41, 1 }
  0x4b   : > { %2741 = vmatpush3.bf16.msra.mxu1 %v3196_v13  ;;  %v363_v13 = vadd.f32 %v3381_v18, %v324_v63  ;;  %v364_v24 = vadd.f32 %v3381_v18, %v325_v3  ;;  %465 = vst [vmem:[#allocation2 + $0xa9] sm:$0xff] %v393_v11  ;;  %v614_v63 = vrot.slane %v3749_v34, 1  ;;  %v616_v3 = vrot.slane %v3751_v25, 1  ;;  %v3766_v19 = vld [vmem:[#allocation2 + $0x90] sm:$0xff] }
  0x4c   : > { %2950 = vmatprep.subr.bf16.mxu1 %v3197_v14  ;;  %v288_v14 = vld [vmem:[%s3360_s23 + $0x88] sm:$0xff]  ;;  %v3209_v11 = vld [vmem:[%s4599_s3 + $0x170] sm:$0xff]   ;;  %v618_v32 = vrot.slane %v3766_v19, 1  ;;  %v365_v28 = vadd.f32 %v3381_v18, %v326_v49  ;;  %v712_v49 = vrot.slane %v3542_v9, 2 }
  0x4d   : > { %v395_v39 = vmax.f32 %v363_v13, 0.0  ;;  %v396_v40 = vmax.f32 %v364_v24, 0.0  ;;  %v327_v22 = vmul.f32 %v3376_v17, %v288_v14  ;;  %v615_v16 = vsel %vm587_vm0, %v613_v62, %v614_v63  ;;  %2850 = vmatprep.subr.bf16.mxu0 %v3209_v11 }
  0x4e   : > { %1671 = vmatmul.mubr.bf16.vlgmr.msra.gmra.mrb[16].mxu1 %v849_v15  ;;  %1542 = vmatmul.mubr.bf16.gmra.mrb[16].mxu0 %v3736_v53  ;;  %v617_v13 = vsel %vm587_vm0, %v614_v63, %v616_v3  ;;  %v3792_v14 = vpack.c.bf16 %v710_v21, %v708_v43  ;;  %v3208_v3 = vld [vmem:[%s4599_s3 + $0x190] sm:$0xff]   ;;  %v290_v43 = vld [vmem:[%s3360_s23 + $0x98] sm:$0xff]  ;;  %v714_v21 = vrot.slane %v3544_v10, 2 }
  0x4f   : > { %v3768_v20 = vld [vmem:[#allocation2 + $0x98] sm:$0xff]  ;;  %467 = vst [vmem:[#allocation2 + $0xc1] sm:$0xff] %v395_v39  ;;  %468 = vst [vmem:[#allocation2 + $0xc9] sm:$0xff] %v396_v40  ;;  %2951 = vmatpush3.bf16.msra.mxu1 %v3198_v59  ;;  %v3777_v15 = vld [vmem:[#allocation2 + $0xa0] sm:$0x3]  ;;  %1678 = vmatprep.mubr.bf16.mxu1 %v3563_v29  ;;  %v3790_v42 = vpack.c.bf16 %v617_v13, %v615_v16  ;;  %v366_v40 = vadd.f32 %v3381_v18, %v327_v22  ;;  %v397_v16 = vmax.f32 %v365_v28, 0.0 }
  0x50   : > { %v619_v37 = vrot.slane %v3768_v20, 1  ;;  %v621_v24 = vrot.slane %v3777_v15, 1  ;;  %2952 = vmatprep.subr.bf16.mxu1 %v3202_v23  ;;  %v3210_v59 = vld [vmem:[%s4599_s3 + $0x130] sm:$0xff]   ;;  %v711_v23 = vrot.slane %v3540_v8, 2  ;;  %v3808_v22 = vpack.c.bf16 %v3749_v34, %v3747_v41  ;;  %v3813_v9 = vld [vmem:[#allocation2 + $0xb8] sm:$0x3] }
  0x51   : > { %2851 = vmatpush3.bf16.msra.mxu0 %v3210_v59  ;;  %1549 = vmatprep.mubr.bf16.mxu0 %v3790_v42  ;;  %v398_v11 = vmax.f32 %v366_v40, 0.0  ;;  %469 = vst [vmem:[#allocation2 + $0xd9] sm:$0xff] %v397_v16  ;;  %v626_v10 = vrot.slane %v3813_v9, 1  ;;  %v715_v40 = vsel %vm700_vm1, %v712_v49, %v714_v21  ;;  %v3214_v16 = vld [vmem:[%s4599_s3 + $0x138] sm:$0xff]   ;;  %v3868_v50 = vpack.c.bf16 %v3768_v20, %v3766_v19 }
  0x52   : > { %v620_v39 = vsel %vm587_vm0, %v618_v32, %v619_v37  ;;  %v622_v62 = vsel %vm587_vm0, %v619_v37, %v621_v24  ;;  %v3799_v63 = vld [vmem:[#allocation2 + $0xa8] sm:$0xff]  ;;  %v3811_v8 = vld [vmem:[#allocation2 + $0xb0] sm:$0xff]  ;;  %v328_v32 = vmul.f32 %v3376_v17, %v289_v30  ;;  %v3213_v37 = vld [vmem:[%s4599_s3 + $0x178] sm:$0xff]  }
  0x53   : > { %2953 = vmatpush3.bf16.msra.mxu1 %v3204_v44  ;;  %v3819_v13 = vpack.c.bf16 %v622_v62, %v620_v39  ;;  %v623_v24 = vrot.slane %v3799_v63, 1  ;;  %v624_v28 = vrot.slane %v3811_v8, 1  ;;  %470 = vst [vmem:[#allocation2 + $0xe1] sm:$0xff] %v398_v11  ;;  %v329_v44 = vmul.f32 %v3376_v17, %v290_v43  ;;  %v3211_v30 = vld [vmem:[%s4599_s3 + $0x1d8] sm:$0xff]   ;;  %2852 = vmatprep.subr.bf16.mxu0 %v3213_v37 }
  0x54   : > { %2954 = vmatprep.subr.bf16.mxu1 %v3207_v5  ;;  %v367_v59 = vadd.f32 %v3381_v18, %v328_v32  ;;  %v3212_v5 = vld [vmem:[%s4599_s3 + $0x198] sm:$0xff]   ;;  %v713_v39 = vsel %vm700_vm1, %v711_v23, %v712_v49  ;;  %v716_v11 = vrot.slane %v3601_v54, 2  ;;  %v292_v49 = vld [vmem:[%s3360_s23 + $0xa8] sm:$0xff]  ;;  %v3215_v54 = vld [vmem:[%s4599_s3 + $0x1e0] sm:$0xff]  }
  0x55   : > { %v625_v43 = vsel %vm587_vm0, %v623_v24, %v624_v28  ;;  %v368_v37 = vadd.f32 %v3381_v18, %v329_v44  ;;  %v627_v21 = vsel %vm587_vm0, %v624_v28, %v626_v10  ;;  %2853 = vmatpush3.bf16.msra.mxu0 %v3214_v16  ;;  %v331_v24 = vmul.f32 %v3376_v17, %v292_v49 }
  0x56   : > { %1679 = vmatmul.mubr.bf16.gmra.mrb[20].mxu1 %v3792_v14  ;;  %1550 = vmatmul.mubr.bf16.gmra.mrb[20].mxu0 %v3808_v22  ;;  %v3837_v62 = vld [vmem:[#allocation2 + $0xc0] sm:$0xff]  ;;  %v3845_v32 = vld [vmem:[#allocation2 + $0xc8] sm:$0xff]  ;;  %v399_v23 = vmax.f32 %v367_v59, 0.0  ;;  %v3859_v44 = vld [vmem:[#allocation2 + $0xd0] sm:$0x3]  ;;  %v719_v17 = vrot.slane %v3605_v57, 2  ;;  %v369_v28 = vadd.f32 %v3381_v18, %v330_v48 }
  0x57   : > { %1686 = vmatprep.mubr.bf16.mxu1 %v3630_v12  ;;  %1557 = vmatprep.mubr.bf16.mxu0 %v3819_v13  ;;  %v400_v59 = vmax.f32 %v368_v37, 0.0  ;;  %v370_v10 = vadd.f32 %v3381_v18, %v331_v24  ;;  %v774_v16 = vrot.slane %v3558_v27, 2  ;;  %v629_v57 = vrot.slane %v3845_v32, 1  ;;  %v3218_v18 = vld [vmem:[%s4599_s3 + $0x1e8] sm:$0xff]  }
  0x58   : > { %2955 = vmatpush3.bf16.msra.mxu1 %v3208_v3  ;;  %v3857_v3 = vpack.c.bf16 %v715_v40, %v713_v39  ;;  %471 = vst [vmem:[#allocation2 + $0xf1] sm:$0xff] %v399_v23  ;;  %v628_v39 = vrot.slane %v3837_v62, 1  ;;  %3086 = vmatprep.subr.bf16.mxu0 %v3864_v55  ;;  %v3217_v40 = vld [vmem:[%s4599_s3 + $0x1a0] sm:$0xff]   ;;  %v631_v48 = vrot.slane %v3859_v44, 1  ;;  %v401_v37 = vmax.f32 %v369_v28, 0.0  ;;  %v3891_v23 = vld [vmem:[#allocation2 + $0xd8] sm:$0xff] }
  0x59   : > { %2956 = vmatprep.subr.bf16.mxu1 %v3211_v30  ;;  %v3873_v30 = vpack.c.bf16 %v627_v21, %v625_v43  ;;  %472 = vst [vmem:[#allocation2 + $0xf9] sm:$0xff] %v400_v59  ;;  %v718_v43 = vsel %vm700_vm1, %v716_v11, %v717_v2  ;;  %v720_v27 = vsel %vm700_vm1, %v717_v2, %v719_v17  ;;  %v721_v49 = vrot.slane %v3704_v61, 2  ;;  %v3221_v61 = vld [vmem:[%s4599_s3 + $0x1f0] sm:$0xff]  }
  0x5a   : > { %473 = vst [vmem:[#allocation2 + $0x109] sm:$0xff] %v401_v37  ;;  %v722_v21 = vrot.slane %v3713_v51, 2  ;;  %v3896_v24 = vld [vmem:[#allocation2 + $0xe0] sm:$0xff]  ;;  %v630_v11 = vsel %vm587_vm0, %v628_v39, %v629_v57  ;;  %v632_v2 = vsel %vm587_vm0, %v629_v57, %v631_v48  ;;  %v724_v59 = vrot.slane %v3715_v31, 2 }
  0x5b   : > { %v4613_v51 = vrot.slane %v3556_v26, 2  ;;  %v3910_v28 = vpack.c.bf16 %v720_v27, %v718_v43  ;;  %v3916_v39 = vpack.c.bf16 %v3811_v8, %v3799_v63  ;;  %v776_v31 = vrot.slane %v3616_v0, 2  ;;  %v3224_v0 = vld [vmem:[%s4599_s3 + $0x1f8] sm:$0xff]  }
  0x5c   : > { %2957 = vmatpush3.bf16.msra.mxu1 %v3212_v5  ;;  %v402_v5 = vmax.f32 %v370_v10, 0.0  ;;  %v3912_v10 = vld [vmem:[#allocation2 + $0xe8] sm:$0x3]  ;;  %v777_v57 = vrot.slane %v3618_v1, 2  ;;  %v3923_v48 = vpack.c.bf16 %v632_v2, %v630_v11  ;;  %v633_v26 = vrot.slane %v3891_v23, 1 }
  0x5d   : > { %2958 = vmatprep.subr.bf16.mxu1 %v3215_v54  ;;  %v3220_v54 = vld [vmem:[%s4599_s3 + $0x1a8] sm:$0xff]   ;;  %v775_v17 = vsel %vm700_vm1, %v4613_v51, %v774_v16  ;;  %v634_v16 = vrot.slane %v3896_v24, 1  ;;  %v636_v37 = vrot.slane %v3912_v10, 1  ;;  %v725_v43 = vsel %vm700_vm1, %v722_v21, %v724_v59 }
  0x5e   : > { %1687 = vmatmul.mubr.bf16.gmra.mrb[24].mxu1 %v3857_v3  ;;  %1558 = vmatmul.mubr.bf16.gmra.mrb[24].mxu0 %v3868_v50  ;;  %474 = vst [vmem:[#allocation2 + $0x111] sm:$0xff] %v402_v5  ;;  %v778_v1 = vsel %vm700_vm1, %v776_v31, %v777_v57  ;;  %v723_v5 = vsel %vm700_vm1, %v721_v49, %v722_v21  ;;  %v301_v49 = vld [vmem:[%s3360_s23 + $0xf0] sm:$0xff]  ;;  %v726_v51 = vrot.slane %v3747_v41, 2  ;;  %v3231_v31 = vld [vmem:[%s4597_s1] ss:$0 sm:$0xff] }
  0x5f   : > { %1694 = vmatprep.mubr.bf16.mxu1 %v3736_v53  ;;  %1565 = vmatprep.mubr.bf16.mxu0 %v3873_v30  ;;  %v3941_v27 = vld [vmem:[#allocation2 + $0xf0] sm:$0xff]  ;;  %v635_v11 = vsel %vm587_vm0, %v633_v26, %v634_v16  ;;  %v637_v2 = vsel %vm587_vm0, %v634_v16, %v636_v37  ;;  %v3955_v59 = vpack.c.bf16 %v725_v43, %v723_v5  ;;  %v727_v16 = vrot.slane %v3749_v34, 2 }
  0x60   : > { %2959 = vmatpush3.bf16.msra.mxu1 %v3217_v40  ;;  %v3919_v40 = vpack.c.bf16 %v775_v17, %v3743_v35  ;;  %v779_v35 = vrot.slane %v3624_v4, 2  ;;  %v3226_v4 = vld [vmem:[%s4599_s3 + $0x1b8] sm:$0xff]   ;;  %v3966_v26 = vpack.c.bf16 %v3845_v32, %v3837_v62  ;;  %v638_v41 = vrot.slane %v3941_v27, 1 }
  0x61   : > { %2960 = vmatprep.subr.bf16.mxu1 %v3218_v18  ;;  %v3223_v18 = vld [vmem:[%s4599_s3 + $0x1b0] sm:$0xff]   ;;  %v302_v17 = vld [vmem:[%s3360_s23 + $0xf8] sm:$0xff] }
  0x62   : > { %v780_v21 = vsel %vm700_vm1, %v777_v57, %v779_v35  ;;  %v729_v57 = vrot.slane %v3751_v25, 2  ;;  %v341_v37 = vmul.f32 %v3231_v31, %v302_v17  ;;  %v3232_v35 = vld [vmem:[%s4598_s2] ss:$0 sm:$0xff]  ;;  %v728_v25 = vsel %vm700_vm1, %v726_v51, %v727_v16 }
  0x63   : > { %v3962_v56 = vpack.c.bf16 %v780_v21, %v778_v1  ;;  %v3996_v51 = vpack.c.bf16 %v3896_v24, %v3891_v23 }
  0x64   : > { %2961 = vmatpush3.bf16.msra.mxu1 %v3220_v54  ;;  %v3944_v54 = vld [vmem:[#allocation2 + $0xf8] sm:$0xff] }
  0x65   : > { %2962 = vmatprep.subr.bf16.mxu1 %v3221_v61  ;;  %v3951_v61 = vld [vmem:[#allocation2 + $0x100] sm:$0x3]  ;;  %v639_v5 = vrot.slane %v3944_v54, 1 }
  0x66   : > { %1695 = vmatmul.mubr.bf16.gmra.mrb[28].mxu1 %v3910_v28  ;;  %1566 = vmatmul.mubr.bf16.gmra.mrb[28].mxu0 %v3916_v39  ;;  %v641_v43 = vrot.slane %v3951_v61, 1 }
  0x67   : > { %1702 = vmatprep.mubr.bf16.mxu1 %v3808_v22  ;;  %1573 = vmatprep.mubr.bf16.mxu0 %v3923_v48 }
  0x68   : > { %2963 = vmatpush3.bf16.msra.mxu1 %v3223_v18  ;;  %v340_v18 = vmul.f32 %v3231_v31, %v301_v49  ;;  %v380_v49 = vadd.f32 %v3232_v35, %v341_v37  ;;  %v642_v21 = vsel %vm587_vm0, %v639_v5, %v641_v43  ;;  %v3988_v31 = vld [vmem:[#allocation2 + $0x108] sm:$0xff]  ;;  %v3992_v37 = vld [vmem:[#allocation2 + $0x118] sm:$0x3] }
  0x69   : > { %2964 = vmatprep.subr.bf16.mxu1 %v3224_v0  ;;  %v3970_v0 = vpack.c.bf16 %v637_v2, %v635_v11  ;;  %v640_v2 = vsel %vm587_vm0, %v638_v41, %v639_v5  ;;  %v734_v41 = vrot.slane %v3777_v15, 2  ;;  %v646_v43 = vrot.slane %v3992_v37, 1 }
  0x6a   : > { %v379_v1 = vadd.f32 %v3232_v35, %v340_v18  ;;  %v412_v11 = vmax.f32 %v380_v49, 0.0  ;;  %v3990_v18 = vld [vmem:[#allocation2 + $0x110] sm:$0xff]  ;;  %v4001_v35 = vpack.c.bf16 %v642_v21, %v640_v2  ;;  %v739_v2 = vrot.slane %v3813_v9, 2 }
  0x6b   : > { %v644_v5 = vrot.slane %v3990_v18, 1 }
  0x6c   : > { %2965 = vmatpush3.bf16.msra.mxu1 %v3226_v4  ;;  %v411_v34 = vmax.f32 %v379_v1, 0.0  ;;  %v730_v4 = vsel %vm700_vm1, %v727_v16, %v729_v57  ;;  %484 = vst [vmem:[#allocation2 + $0x189] sm:$0xff] %v412_v11  ;;  %v731_v16 = vrot.slane %v3766_v19, 2  ;;  %v732_v57 = vrot.slane %v3768_v20, 2 }
  0x6d   : > { %v3986_v17 = vpack.c.bf16 %v730_v4, %v728_v25  ;;  %v643_v1 = vrot.slane %v3988_v31, 1  ;;  %v647_v49 = vsel %vm587_vm0, %v644_v5, %v646_v43  ;;  %v4018_v25 = vpack.c.bf16 %v3944_v54, %v3941_v27 }
  0x6e   : > { %1703 = vmatmul.mubr.bf16.gmra.mrb[32].mxu1 %v3955_v59  ;;  %1574 = vmatmul.mubr.bf16.gmra.mrb[32].mxu0 %v3966_v26  ;;  %483 = vst [vmem:[#allocation2 + $0x181] sm:$0xff] %v411_v34  ;;  %v733_v19 = vsel %vm700_vm1, %v731_v16, %v732_v57  ;;  %v735_v20 = vsel %vm700_vm1, %v732_v57, %v734_v41  ;;  %v736_v4 = vrot.slane %v3799_v63, 2  ;;  %v737_v11 = vrot.slane %v3811_v8, 2 }
  0x6f   : > { %1710 = vmatprep.mubr.bf16.mxu1 %v3868_v50  ;;  %1581 = vmatprep.mubr.bf16.mxu0 %v3970_v0  ;;  %v645_v15 = vsel %vm587_vm0, %v643_v1, %v644_v5  ;;  %v4014_v34 = vpack.c.bf16 %v735_v20, %v733_v19  ;;  %v4045_v20 = vpack.c.bf16 %v3990_v18, %v3988_v31 }
  0x70   : > { %v4023_v21 = vpack.c.bf16 %v647_v49, %v645_v15  ;;  %v738_v63 = vsel %vm700_vm1, %v736_v4, %v737_v11  ;;  %v740_v8 = vsel %vm700_vm1, %v737_v11, %v739_v2  ;;  %v741_v15 = vrot.slane %v3837_v62, 2 }
  0x71   : > { %v4039_v5 = vpack.c.bf16 %v740_v8, %v738_v63  ;;  %v742_v49 = vrot.slane %v3845_v32, 2  ;;  %v744_v4 = vrot.slane %v3859_v44, 2  ;;  %v746_v32 = vrot.slane %v3891_v23, 2  ;;  %v3219_v8 = vld [vmem:[%s4599_s3 + $0x208] sm:$0xff]   ;;  %v3222_v23 = vld [vmem:[%s4599_s3 + $0x210] sm:$0xff]  }
  0x72   : > { %v747_v44 = vrot.slane %v3896_v24, 2 }
  0x73   : > { %v4037_v9 = vld [vmem:[#allocation2 + $0x190] sm:$0x3]  ;;  %v745_v63 = vsel %vm700_vm1, %v742_v49, %v744_v4  ;;  %v757_v4 = vrot.slane %v3990_v18, 2 }
  0x74   : > { %v819_v19 = vrot.slane %v4037_v9, 1  ;;  %v3229_v18 = vld [vmem:[%s4599_s3 + $0x230] sm:$0xff]  }
  0x75   : > { %v4025_v16 = vld [vmem:[#allocation2 + $0x180] sm:$0xff]  ;;  %v4027_v57 = vld [vmem:[#allocation2 + $0x188] sm:$0xff] }
  0x76   : > { %1711 = vmatmul.mubr.bf16.gmra.mrb[36].mxu1 %v3986_v17  ;;  %1582 = vmatmul.mubr.bf16.gmra.mrb[36].mxu0 %v3996_v51  ;;  %v816_v41 = vrot.slane %v4025_v16, 1  ;;  %v817_v1 = vrot.slane %v4027_v57, 1 }
  0x77   : > { %1718 = vmatprep.mubr.bf16.mxu1 %v3916_v39  ;;  %1589 = vmatprep.mubr.bf16.mxu0 %v4001_v35 }
  0x78   : > { %v818_v43 = vsel %vm587_vm0, %v816_v41, %v817_v1  ;;  %v820_v11 = vsel %vm587_vm0, %v817_v1, %v819_v19  ;;  %v743_v41 = vsel %vm700_vm1, %v741_v15, %v742_v49  ;;  %v749_v1 = vrot.slane %v3912_v10, 2 }
  0x79   : > { %v4051_v2 = vpack.c.bf16 %v820_v11, %v818_v43  ;;  %v4059_v62 = vpack.c.bf16 %v745_v63, %v743_v41  ;;  %v751_v10 = vrot.slane %v3941_v27, 2  ;;  %v754_v19 = vrot.slane %v3951_v61, 2  ;;  %v3228_v41 = vld [vmem:[%s4599_s3 + $0x228] sm:$0xff]  }
  0x7a   : > { %v750_v43 = vsel %vm700_vm1, %v747_v44, %v749_v1  ;;  %v756_v49 = vrot.slane %v3988_v31, 2  ;;  %v759_v11 = vrot.slane %v3992_v37, 2 }
  0x7c   : > { %v758_v63 = vsel %vm700_vm1, %v756_v49, %v757_v4  ;;  %v760_v31 = vsel %vm700_vm1, %v757_v4, %v759_v11 }
  0x7d   : > { %v4111_v37 = vpack.c.bf16 %v760_v31, %v758_v63 }
  0x7e   : > { %1719 = vmatmul.mubr.bf16.gmra.mrb[40].mxu1 %v4014_v34  ;;  %1590 = vmatmul.mubr.bf16.gmra.mrb[40].mxu0 %v4018_v25 }
  0x7f   : > { %1726 = vmatprep.mubr.bf16.mxu1 %v3966_v26  ;;  %1597 = vmatprep.mubr.bf16.mxu0 %v4023_v21 }
  0x86   : > { %1727 = vmatmul.mubr.bf16.gmra.mrb[44].mxu1 %v4039_v5  ;;  %1598 = vmatmul.mubr.bf16.gmra.mrb[44].mxu0 %v4045_v20 }
  0x87   : > { %1734 = vmatprep.mubr.bf16.mxu1 %v3996_v51  ;;  %1831 = vmatprep.mubr.bf16.mxu0 %v3792_v14  ;;  %v748_v14 = vsel %vm700_vm1, %v746_v32, %v747_v44  ;;  %v3230_v32 = vld [vmem:[%s4599_s3 + $0x238] sm:$0xff]   ;;  %v4130_v44 = vpack.c.bf16 %v4027_v57, %v4025_v16 }
  0x88   : > { %v4077_v24 = vpack.c.bf16 %v750_v43, %v748_v14 }
  0x8e   : > { %1735 = vmatmul.mubr.bf16.gmra.mrb[48].mxu1 %v4059_v62  ;;  %1832 = vmatmul.mubr.bf16.vlgmr.msra.gmra.mrb[48].mxu0 %v3499_v46  ;;  %v752_v46 = vrot.slane %v3944_v54, 2  ;;  %v3227_v54 = vld [vmem:[%s4599_s3 + $0x220] sm:$0xff]  }
  0x8f   : > { %1742 = vmatprep.mubr.bf16.mxu1 %v4018_v25  ;;  %3087 = vmatpush3.bf16.msra.mxu0 %v3864_v55  ;;  %v3225_v55 = vld [vmem:[%s4599_s3 + $0x218] sm:$0xff]  }
  0x90   : > { %1839 = vmatprep.mubr.bf16.mxu0 %v3857_v3  ;;  %3088 = vmatprep.subr.bf16.mxu0 %v3219_v8  ;;  %v753_v15 = vsel %vm700_vm1, %v751_v10, %v752_v46  ;;  %v755_v27 = vsel %vm700_vm1, %v752_v46, %v754_v19 }
  0x91   : > { %v4094_v61 = vpack.c.bf16 %v755_v27, %v753_v15 }
  0x93   : > { %3089 = vmatpush3.bf16.msra.mxu0 %v3219_v8 }
  0x94   : > { %3090 = vmatprep.subr.bf16.mxu0 %v3222_v23 }
  0x96   : > { %1743 = vmatmul.mubr.bf16.gmra.mrb[52].mxu1 %v4077_v24  ;;  %1840 = vmatmul.mubr.bf16.gmra.mrb[52].mxu0 %v3566_v33 }
  0x97   : > { %1750 = vmatprep.mubr.bf16.mxu1 %v4045_v20  ;;  %1847 = vmatprep.mubr.bf16.mxu0 %v3910_v28 }
  0x98   : > { %3091 = vmatpush3.bf16.msra.mxu0 %v3222_v23 }
  0x99   : > { %3092 = vmatprep.subr.bf16.mxu0 %v3225_v55 }
  0x9c   : > { %3093 = vmatpush3.bf16.msra.mxu0 %v3225_v55 }
  0x9d   : > { %3094 = vmatprep.subr.bf16.mxu0 %v3227_v54 }
  0x9e   : > { %1751 = vmatmul.mubr.bf16.gmra.mrb[56].mxu1 %v4094_v61  ;;  %1848 = vmatmul.mubr.bf16.gmra.mrb[56].mxu0 %v3642_v38 }
  0x9f   : > { %1758 = vmatprep.mubr.bf16.mxu1 %v3434_v58  ;;  %1855 = vmatprep.mubr.bf16.mxu0 %v3955_v59 }
  0xa0   : > { %3095 = vmatpush3.bf16.msra.mxu0 %v3227_v54 }
  0xa1   : > { %3096 = vmatprep.subr.bf16.mxu0 %v3228_v41 }
  0xa4   : > { %3097 = vmatpush3.bf16.msra.mxu0 %v3228_v41 }
  0xa5   : > { %3098 = vmatprep.subr.bf16.mxu0 %v3229_v18 }
  0xa6   : > { %1759 = vmatmul.mubr.bf16.gmra.mrb[60].mxu1 %v4111_v37  ;;  %1856 = vmatmul.mubr.bf16.gmra.mrb[60].mxu0 %v3745_v36 }
  0xa7   : > { %1766 = vmatprep.mubr.bf16.mxu1 %v3508_v52  ;;  %1863 = vmatprep.mubr.bf16.mxu0 %v3986_v17 }
  0xa8   : > { %3099 = vmatpush3.bf16.msra.mxu0 %v3229_v18 }
  0xa9   : > { %3100 = vmatprep.subr.bf16.mxu0 %v3230_v32 }
  0xac   : > { %3101 = vmatpush3.bf16.msra.mxu0 %v3230_v32 }
  0xae   : > { %1767 = vmatmul.mubr.bf16.gmra.mrb[64].mxu1 %v3537_v7  ;;  %1864 = vmatmul.mubr.bf16.gmra.mrb[64].mxu0 %v3790_v42 }
  0xaf   : > { %1774 = vmatprep.mubr.bf16.mxu1 %v3584_v45  ;;  %1871 = vmatprep.mubr.bf16.mxu0 %v4014_v34 }
  0xb6   : > { %1775 = vmatmul.mubr.bf16.gmra.mrb[68].mxu1 %v3702_v60  ;;  %1872 = vmatmul.mubr.bf16.gmra.mrb[68].mxu0 %v3819_v13 }
  0xb7   : > { %1782 = vmatprep.mubr.bf16.mxu1 %v3653_v47  ;;  %1879 = vmatprep.mubr.bf16.mxu0 %v4039_v5 }
  0xbe   : > { %1783 = vmatmul.mubr.bf16.gmra.mrb[72].mxu1 %v3919_v40  ;;  %1880 = vmatmul.mubr.bf16.gmra.mrb[72].mxu0 %v3873_v30 }
  0xbf   : > { %1790 = vmatprep.mubr.bf16.mxu1 %v4130_v44  ;;  %1887 = vmatprep.mubr.bf16.mxu0 %v4059_v62 }
  0xc6   : > { %1791 = vmatmul.mubr.bf16.gmra.mrb[76].mxu1 %v3962_v56  ;;  %1888 = vmatmul.mubr.bf16.gmra.mrb[76].mxu0 %v3923_v48 }
  0xc7   : > { %1992 = vmatprep.mubr.bf16.mxu1 %v3566_v33  ;;  %1895 = vmatprep.mubr.bf16.mxu0 %v4077_v24  ;;  %v823_v33 = vrot.slane %v4025_v16, 2 }
  0xce   : > { %1993 = vmatmul.mubr.bf16.vlgmr.msra.gmra.mrb[80].mxu1 %v3563_v29  ;;  %1896 = vmatmul.mubr.bf16.gmra.mrb[80].mxu0 %v3970_v0  ;;  %v4614_v29 = vld [vmem:[#allocation3_spill] sm:$0xff] }
  0xcf   : > { %2000 = vmatprep.mubr.bf16.mxu1 %v3642_v38  ;;  %1903 = vmatprep.mubr.bf16.mxu0 %v4094_v61  ;;  %v826_v38 = vrot.slane %v4037_v9, 2 }
  0xd6   : > { %2001 = vmatmul.mubr.bf16.gmra.mrb[84].mxu1 %v3630_v12  ;;  %1904 = vmatmul.mubr.bf16.gmra.mrb[84].mxu0 %v4001_v35  ;;  %v824_v12 = vrot.slane %v4027_v57, 2 }
  0xd7   : > { %2008 = vmatprep.mubr.bf16.mxu1 %v3745_v36  ;;  %1911 = vmatprep.mubr.bf16.mxu0 %v4111_v37 }
  0xd8   : > { %v825_v36 = vsel %vm700_vm1, %v823_v33, %v824_v12 }
  0xde   : > { %2009 = vmatmul.mubr.bf16.gmra.mrb[88].mxu1 %v3736_v53  ;;  %1912 = vmatmul.mubr.bf16.gmra.mrb[88].mxu0 %v4023_v21  ;;  %v4615_v53 = vld [vmem:[#allocation4_spill] sm:$0xff] }
  0xdf   : > { %2016 = vmatprep.mubr.bf16.mxu1 %v3790_v42  ;;  %1919 = vmatprep.mubr.bf16.mxu0 %v3537_v7  ;;  %v827_v42 = vsel %vm700_vm1, %v824_v12, %v826_v38 }
  0xe0   : > { %v4171_v16 = vpack.c.bf16 %v827_v42, %v825_v36 }
  0xe6   : > { %2017 = vmatmul.mubr.bf16.gmra.mrb[92].mxu1 %v3808_v22  ;;  %1920 = vmatmul.mubr.bf16.gmra.mrb[92].mxu0 %v3447_v6 }
  0xe7   : > { %2024 = vmatprep.mubr.bf16.mxu1 %v3819_v13  ;;  %1927 = vmatprep.mubr.bf16.mxu0 %v3702_v60 }
  0xee   : > { %2025 = vmatmul.mubr.bf16.gmra.mrb[96].mxu1 %v3868_v50  ;;  %1928 = vmatmul.mubr.bf16.gmra.mrb[96].mxu0 %v4614_v29 }
  0xef   : > { %2032 = vmatprep.mubr.bf16.mxu1 %v3873_v30  ;;  %1935 = vmatprep.mubr.bf16.mxu0 %v3919_v40 }
  0xf6   : > { %2033 = vmatmul.mubr.bf16.gmra.mrb[100].mxu1 %v3916_v39  ;;  %1936 = vmatmul.mubr.bf16.gmra.mrb[100].mxu0 %v4615_v53 }
  0xf7   : > { %2040 = vmatprep.mubr.bf16.mxu1 %v3923_v48  ;;  %1943 = vmatprep.mubr.bf16.mxu0 %v3962_v56  ;;  %v4616_v48 = vld [vmem:[#allocation5_spill] sm:$0xff] }
  0xfe   : > { %2041 = vmatmul.mubr.bf16.gmra.mrb[104].mxu1 %v3966_v26  ;;  %1944 = vmatmul.mubr.bf16.gmra.mrb[104].mxu0 %v4616_v48 }
  0xff   : > { %2048 = vmatprep.mubr.bf16.mxu1 %v3970_v0  ;;  %1951 = vmatprep.mubr.bf16.mxu0 %v4171_v16 }
 0x101   : > { %v2630_v22 = vpop.f32.mrb[0].mxu0  ;;  %v2702_v39 = vpop.f32.mrb[0].mxu1 }
 0x102   : > { %v2631_v13 = vpop.f32.mrb[1].mxu0  ;;  %v2703_v1 = vpop.f32.mrb[1].mxu1 }
 0x103   : > { %v4169_v50 = vadd.f32 %v2631_v13, %v2630_v22  ;;  %v2633_v30 = vpop.f32.mrb[2].mxu0  ;;  %v4178_v8 = vadd.f32 %v2703_v1, %v2702_v39  ;;  %v2705_v14 = vpop.f32.mrb[2].mxu1 }
 0x104   : > { %v2634_v57 = vpop.f32.mrb[3].mxu0  ;;  %v2706_v43 = vpop.f32.mrb[3].mxu1 }
 0x105   : > { %v4174_v9 = vadd.f32 %v2634_v57, %v2633_v30  ;;  %v4181_v23 = vadd.f32 %v2706_v43, %v2705_v14 }
 0x106   : > { %2049 = vmatmul.mubr.bf16.gmra.mrb[108].mxu1 %v3996_v51  ;;  %1952 = vmatmul.mubr.bf16.gmra.mrb[108].mxu0 %v4051_v2 }
 0x107   : > { %2056 = vmatprep.mubr.bf16.mxu1 %v4001_v35  ;;  %3102 = vmatprep.mubr.bf16.mxu0 %v3857_v3 }
 0x109   : > { %v2636_v10 = vpop.f32.mrb[4].mxu0  ;;  %v2708_v46 = vpop.f32.mrb[4].mxu1 }
 0x10a   : > { %v2637_v26 = vpop.f32.mrb[5].mxu0  ;;  %v2709_v0 = vpop.f32.mrb[5].mxu1 }
 0x10b   : > { %v4185_v19 = vadd.f32 %v2637_v26, %v2636_v10  ;;  %v2639_v55 = vpop.f32.mrb[6].mxu0  ;;  %v4189_v27 = vadd.f32 %v2709_v0, %v2708_v46  ;;  %v2711_v54 = vpop.f32.mrb[6].mxu1 }
 0x10c   : > { %v2640_v15 = vpop.f32.mrb[7].mxu0  ;;  %v2712_v4 = vpop.f32.mrb[7].mxu1 }
 0x10d   : > { %v4191_v49 = vadd.f32 %v2640_v15, %v2639_v55  ;;  %v4193_v51 = vadd.f32 %v2712_v4, %v2711_v54 }
 0x10e   : > { %2057 = vmatmul.mubr.bf16.gmra.mrb[112].mxu1 %v4018_v25  ;;  %3103 = vmatmul.mubr.bf16.vlgmr.msra.gmra.mrb[112].mxu0 %v3910_v28 }
 0x10f   : > { %2064 = vmatprep.mubr.bf16.mxu1 %v4023_v21  ;;  %3106 = vmatprep.mubr.bf16.mxu0 %v3955_v59 }
 0x111   : > { %v2642_v11 = vpop.f32.mrb[8].mxu0  ;;  %v2714_v3 = vpop.f32.mrb[8].mxu1 }
 0x112   : > { %v2643_v41 = vpop.f32.mrb[9].mxu0  ;;  %v2715_v18 = vpop.f32.mrb[9].mxu1 }
 0x113   : > { %v4198_v35 = vadd.f32 %v2643_v41, %v2642_v11  ;;  %v2645_v63 = vpop.f32.mrb[10].mxu0  ;;  %v4203_v33 = vadd.f32 %v2715_v18, %v2714_v3  ;;  %v2717_v12 = vpop.f32.mrb[10].mxu1 }
 0x114   : > { %v2646_v31 = vpop.f32.mrb[11].mxu0  ;;  %v2718_v25 = vpop.f32.mrb[11].mxu1 }
 0x115   : > { %v4201_v32 = vadd.f32 %v2646_v31, %v2645_v63  ;;  %v4205_v38 = vadd.f32 %v2718_v25, %v2717_v12  ;;  %v538_v12 = vld [vmem:[#allocation2 + $0x1a8] sm:$0x3] }
 0x116   : > { %2065 = vmatmul.mubr.bf16.gmra.mrb[116].mxu1 %v4045_v20  ;;  %3107 = vmatmul.mubr.bf16.gmra.mrb[116].mxu0 %v3986_v17 }
 0x117   : > { %2072 = vmatprep.mubr.bf16.mxu1 %v3447_v6  ;;  %3110 = vmatprep.mubr.bf16.mxu0 %v4014_v34 }
 0x119   : > { %v2648_v28 = vpop.f32.mrb[12].mxu0  ;;  %v2720_v42 = vpop.f32.mrb[12].mxu1 }
 0x11a   : > { %v2649_v21 = vpop.f32.mrb[13].mxu0  ;;  %v2721_v13 = vpop.f32.mrb[13].mxu1 }
 0x11b   : > { %v4210_v59 = vadd.f32 %v2649_v21, %v2648_v28  ;;  %v2651_v36 = vpop.f32.mrb[14].mxu0  ;;  %v4215_v57 = vadd.f32 %v2721_v13, %v2720_v42  ;;  %v2723_v39 = vpop.f32.mrb[14].mxu1  ;;  %v3233_v13 = vld [vmem:[#allocation2] sm:$0xff] }
 0x11c   : > { %v2652_v22 = vpop.f32.mrb[15].mxu0  ;;  %v2724_v20 = vpop.f32.mrb[15].mxu1 }
 0x11d   : > { %v4213_v30 = vadd.f32 %v2652_v22, %v2651_v36  ;;  %v4217_v1 = vadd.f32 %v2724_v20, %v2723_v39  ;;  %v836_v39 = vrot.slane %v538_v12, 1 }
 0x11e   : > { %2073 = vmatmul.mubr.bf16.gmra.mrb[120].mxu1 %v3434_v58  ;;  %3111 = vmatmul.mubr.bf16.gmra.mrb[120].mxu0 %v4039_v5 }
 0x11f   : > { %2080 = vmatprep.mubr.bf16.mxu1 %v4614_v29  ;;  %3114 = vmatprep.mubr.bf16.mxu0 %v4059_v62 }
 0x121   : > { %v2742_v6 = vpop.f32.mrb[16].mxu1  ;;  %v2654_v17 = vpop.f32.mrb[16].mxu0 }
 0x122   : > { %v2743_v34 = vpop.f32.mrb[17].mxu1  ;;  %v2655_v14 = vpop.f32.mrb[17].mxu0 }
 0x123   : > { %v2744_v43 = vadd.f32 %v2743_v34, %v2742_v6  ;;  %v2745_v10 = vpop.f32.mrb[18].mxu1  ;;  %v4223_v26 = vadd.f32 %v2655_v14, %v2654_v17  ;;  %v2657_v46 = vpop.f32.mrb[18].mxu0 }
 0x124   : > { %v2746_v55 = vpop.f32.mrb[19].mxu1  ;;  %v2658_v58 = vpop.f32.mrb[19].mxu0 }
 0x125   : > { %v4226_v0 = vadd.f32 %v2744_v43, %v4169_v50  ;;  %v2747_v15 = vadd.f32 %v2746_v55, %v2745_v10  ;;  %v4228_v5 = vadd.f32 %v2658_v58, %v2657_v46 }
 0x126   : > { %2081 = vmatmul.mubr.bf16.gmra.mrb[124].mxu1 %v3508_v52  ;;  %3115 = vmatmul.mubr.bf16.gmra.mrb[124].mxu0 %v4077_v24 }
 0x127   : > { %v4232_v62 = vadd.f32 %v2747_v15, %v4174_v9  ;;  %2088 = vmatprep.mubr.bf16.mxu1 %v4615_v53  ;;  %3118 = vmatprep.mubr.bf16.mxu0 %v4094_v61  ;;  %v840_v15 = vrot.slane %v3233_v13, 2 }
 0x129   : > { %v2748_v29 = vpop.f32.mrb[20].mxu1  ;;  %v2660_v54 = vpop.f32.mrb[20].mxu0 }
 0x12a   : > { %v2749_v4 = vpop.f32.mrb[21].mxu1  ;;  %v2661_v50 = vpop.f32.mrb[21].mxu0 }
 0x12b   : > { %v2750_v11 = vadd.f32 %v2749_v4, %v2748_v29  ;;  %v2751_v41 = vpop.f32.mrb[22].mxu1  ;;  %v4237_v63 = vadd.f32 %v2661_v50, %v2660_v54  ;;  %v2663_v3 = vpop.f32.mrb[22].mxu0  ;;  %v843_v29 = vrot.slane %v538_v12, 2 }
 0x12c   : > { %v2752_v31 = vpop.f32.mrb[23].mxu1  ;;  %v2664_v9 = vpop.f32.mrb[23].mxu0 }
 0x12d   : > { %v4240_v52 = vadd.f32 %v2750_v11, %v4185_v19  ;;  %v2753_v18 = vadd.f32 %v2752_v31, %v2751_v41  ;;  %v4242_v24 = vadd.f32 %v2664_v9, %v2663_v3  ;;  %v844_v50 = vsel %vm700_vm1, %v840_v15, %v843_v29 }
 0x12e   : > { %2089 = vmatmul.mubr.bf16.gmra.mrb[128].mxu1 %v3584_v45  ;;  %3119 = vmatmul.mubr.bf16.gmra.mrb[128].mxu0 %v4111_v37  ;;  %v898_v3 = vpack.c.bf16 %v3233_v13, %v3233_v13 }
 0x12f   : > { %v4246_v61 = vadd.f32 %v2753_v18, %v4191_v49  ;;  %2096 = vmatprep.mubr.bf16.mxu1 %v4616_v48  ;;  %3122 = vmatprep.mubr.bf16.mxu0 %v3537_v7  ;;  %v833_v49 = vrot.slane %v3233_v13, 1 }
 0x131   : > { %v2754_v53 = vpop.f32.mrb[24].mxu1  ;;  %v2666_v25 = vpop.f32.mrb[24].mxu0  ;;  %v837_v17 = vsel %vm587_vm0, %v833_v49, %v836_v39 }
 0x132   : > { %v2755_v19 = vpop.f32.mrb[25].mxu1  ;;  %v2667_v28 = vpop.f32.mrb[25].mxu0  ;;  %v899_v55 = vpack.c.bf16 %v837_v17, %v833_v49 }
 0x133   : > { %v2756_v21 = vadd.f32 %v2755_v19, %v2754_v53  ;;  %v2757_v36 = vpop.f32.mrb[26].mxu1  ;;  %v4251_v42 = vadd.f32 %v2667_v28, %v2666_v25  ;;  %v2669_v22 = vpop.f32.mrb[26].mxu0  ;;  %v900_v53 = vpack.c.bf16 %v844_v50, %v840_v15 }
 0x134   : > { %v2758_v45 = vpop.f32.mrb[27].mxu1  ;;  %v2670_v48 = vpop.f32.mrb[27].mxu0 }
 0x135   : > { %v4254_v37 = vadd.f32 %v2756_v21, %v4198_v35  ;;  %v2759_v20 = vadd.f32 %v2758_v45, %v2757_v36  ;;  %v4256_v7 = vadd.f32 %v2670_v48, %v2669_v22 }
 0x136   : > { %2097 = vmatmul.mubr.bf16.gmra.mrb[132].mxu1 %v3653_v47  ;;  %3123 = vmatmul.mubr.bf16.gmra.mrb[132].mxu0 %v3702_v60 }
 0x137   : > { %v4260_v6 = vadd.f32 %v2759_v20, %v4201_v32  ;;  %2104 = vmatprep.mubr.bf16.mxu1 %v4051_v2  ;;  %3126 = vmatprep.mubr.bf16.mxu0 %v3919_v40 }
 0x139   : > { %v2760_v34 = vpop.f32.mrb[28].mxu1  ;;  %v2672_v35 = vpop.f32.mrb[28].mxu0 }
 0x13a   : > { %v2761_v14 = vpop.f32.mrb[29].mxu1  ;;  %v2673_v43 = vpop.f32.mrb[29].mxu0 }
 0x13b   : > { %v2762_v10 = vadd.f32 %v2761_v14, %v2760_v34  ;;  %v2763_v46 = vpop.f32.mrb[30].mxu1  ;;  %v4266_v58 = vadd.f32 %v2673_v43, %v2672_v35  ;;  %v2675_v47 = vpop.f32.mrb[30].mxu0 }
 0x13c   : > { %v2764_v32 = vpop.f32.mrb[31].mxu1  ;;  %v2676_v2 = vpop.f32.mrb[31].mxu0 }
 0x13d   : > { %v4269_v60 = vadd.f32 %v2762_v10, %v4210_v59  ;;  %v2765_v40 = vadd.f32 %v2764_v32, %v2763_v46  ;;  %v4271_v54 = vadd.f32 %v2676_v2, %v2675_v47 }
 0x13e   : > { %2105 = vmatmul.mubr.bf16.gmra.mrb[136].mxu1 %v4130_v44  ;;  %3127 = vmatmul.mubr.bf16.gmra.mrb[136].mxu0 %v3962_v56 }
 0x13f   : > { %v4275_v4 = vadd.f32 %v2765_v40, %v4213_v30  ;;  %2112 = vmatprep.mubr.bf16.mxu1 %v899_v55  ;;  %3130 = vmatprep.mubr.bf16.mxu0 %v4171_v16 }
 0x141   : > { %v2766_v11 = vpop.f32.mrb[32].mxu1  ;;  %v2678_v41 = vpop.f32.mrb[32].mxu0 }
 0x142   : > { %v2767_v59 = vpop.f32.mrb[33].mxu1  ;;  %v2679_v31 = vpop.f32.mrb[33].mxu0 }
 0x143   : > { %v2768_v9 = vadd.f32 %v2767_v59, %v2766_v11  ;;  %v2769_v18 = vpop.f32.mrb[34].mxu1  ;;  %v2680_v12 = vadd.f32 %v2679_v31, %v2678_v41  ;;  %v2681_v44 = vpop.f32.mrb[34].mxu0 }
 0x144   : > { %v2770_v25 = vpop.f32.mrb[35].mxu1  ;;  %v2682_v56 = vpop.f32.mrb[35].mxu0 }
 0x145   : > { %v4281_v30 = vadd.f32 %v2768_v9, %v4223_v26  ;;  %v2771_v19 = vadd.f32 %v2770_v25, %v2769_v18  ;;  %v2683_v28 = vadd.f32 %v2682_v56, %v2681_v44 }
 0x146   : > { %2113 = vmatmul.mubr.bf16.gmra.mrb[140].mxu1 %v898_v3  ;;  %3131 = vmatmul.mubr.bf16.gmra.mrb[140].mxu0 %v900_v53 }
 0x147   : > { %v4284_v16 = vadd.f32 %v2771_v19, %v4228_v5 }
 0x149   : > { %v2772_v21 = vpop.f32.mrb[36].mxu1  ;;  %v2684_v36 = vpop.f32.mrb[36].mxu0 }
 0x14a   : > { %v2773_v22 = vpop.f32.mrb[37].mxu1  ;;  %v2685_v45 = vpop.f32.mrb[37].mxu0 }
 0x14b   : > { %v2774_v13 = vadd.f32 %v2773_v22, %v2772_v21  ;;  %v2775_v49 = vpop.f32.mrb[38].mxu1  ;;  %v2686_v39 = vadd.f32 %v2685_v45, %v2684_v36  ;;  %v2687_v48 = vpop.f32.mrb[38].mxu0 }
 0x14c   : > { %v2776_v20 = vpop.f32.mrb[39].mxu1  ;;  %v2688_v17 = vpop.f32.mrb[39].mxu0 }
 0x14d   : > { %v4287_v26 = vadd.f32 %v2774_v13, %v4237_v63  ;;  %v2777_v34 = vadd.f32 %v2776_v20, %v2775_v49  ;;  %v2689_v35 = vadd.f32 %v2688_v17, %v2687_v48 }
 0x14f   : > { %v4290_v14 = vadd.f32 %v2777_v34, %v4242_v24 }
 0x151   : > { %v2778_v5 = vpop.f32.mrb[40].mxu1  ;;  %v2690_v43 = vpop.f32.mrb[40].mxu0 }
 0x152   : > { %v2779_v10 = vpop.f32.mrb[41].mxu1  ;;  %v2691_v46 = vpop.f32.mrb[41].mxu0 }
 0x153   : > { %v2780_v55 = vadd.f32 %v2779_v10, %v2778_v5  ;;  %v2781_v47 = vpop.f32.mrb[42].mxu1  ;;  %v4292_v32 = vadd.f32 %v2691_v46, %v2690_v43  ;;  %v2693_v15 = vpop.f32.mrb[42].mxu0 }
 0x154   : > { %v2782_v29 = vpop.f32.mrb[43].mxu1  ;;  %v2694_v63 = vpop.f32.mrb[43].mxu0 }
 0x155   : > { %v4295_v2 = vadd.f32 %v2780_v55, %v4251_v42  ;;  %v2783_v40 = vadd.f32 %v2782_v29, %v2781_v47  ;;  %v2695_v50 = vadd.f32 %v2694_v63, %v2693_v15 }
 0x157   : > { %v4298_v11 = vadd.f32 %v2783_v40, %v4256_v7 }
 0x159   : > { %v2784_v24 = vpop.f32.mrb[44].mxu1  ;;  %v2696_v41 = vpop.f32.mrb[44].mxu0 }
 0x15a   : > { %v2785_v59 = vpop.f32.mrb[45].mxu1  ;;  %v2697_v3 = vpop.f32.mrb[45].mxu0 }
 0x15b   : > { %v2786_v31 = vadd.f32 %v2785_v59, %v2784_v24  ;;  %v2787_v9 = vpop.f32.mrb[46].mxu1  ;;  %v4300_v18 = vadd.f32 %v2697_v3, %v2696_v41  ;;  %v2699_v53 = vpop.f32.mrb[46].mxu0 }
 0x15c   : > { %v2788_v44 = vpop.f32.mrb[47].mxu1  ;;  %v2700_v42 = vpop.f32.mrb[47].mxu0 }
 0x15d   : > { %v4303_v25 = vadd.f32 %v2786_v31, %v4266_v58  ;;  %v2789_v56 = vadd.f32 %v2788_v44, %v2787_v9  ;;  %v4305_v19 = vadd.f32 %v2700_v42, %v2699_v53 }
 0x15f   : > { %v4308_v7 = vadd.f32 %v2789_v56, %v4271_v54 }
 0x161   : > { %v2790_v21 = vpop.f32.mrb[48].mxu1  ;;  %v2854_v36 = vpop.f32.mrb[48].mxu0 }
 0x162   : > { %v2791_v22 = vpop.f32.mrb[49].mxu1  ;;  %v2855_v13 = vpop.f32.mrb[49].mxu0 }
 0x163   : > { %v2792_v45 = vadd.f32 %v2791_v22, %v2790_v21  ;;  %v2793_v49 = vpop.f32.mrb[50].mxu1  ;;  %v2856_v48 = vadd.f32 %v2855_v13, %v2854_v36  ;;  %v2857_v20 = vpop.f32.mrb[50].mxu0 }
 0x164   : > { %v2794_v17 = vpop.f32.mrb[51].mxu1  ;;  %v2858_v5 = vpop.f32.mrb[51].mxu0 }
 0x165   : > { %v4310_v34 = vadd.f32 %v2792_v45, %v2680_v12  ;;  %v2795_v58 = vadd.f32 %v2794_v17, %v2793_v49  ;;  %v4313_v43 = vadd.f32 %v2856_v48, %v4226_v0  ;;  %v2859_v10 = vadd.f32 %v2858_v5, %v2857_v20 }
 0x167   : > { %v4315_v46 = vadd.f32 %v2795_v58, %v2683_v28  ;;  %v4318_v54 = vadd.f32 %v2859_v10, %v4232_v62 }
 0x169   : > { %v2796_v55 = vpop.f32.mrb[52].mxu1  ;;  %v2860_v47 = vpop.f32.mrb[52].mxu0 }
 0x16a   : > { %v2797_v15 = vpop.f32.mrb[53].mxu1  ;;  %v2861_v63 = vpop.f32.mrb[53].mxu0 }
 0x16b   : > { %v2798_v29 = vadd.f32 %v2797_v15, %v2796_v55  ;;  %v2799_v40 = vpop.f32.mrb[54].mxu1  ;;  %v2862_v24 = vadd.f32 %v2861_v63, %v2860_v47  ;;  %v2863_v12 = vpop.f32.mrb[54].mxu0 }
 0x16c   : > { %v2800_v41 = vpop.f32.mrb[55].mxu1  ;;  %v2864_v0 = vpop.f32.mrb[55].mxu0 }
 0x16d   : > { %v4320_v59 = vadd.f32 %v2798_v29, %v2686_v39  ;;  %v2801_v3 = vadd.f32 %v2800_v41, %v2799_v40  ;;  %v4323_v31 = vadd.f32 %v2862_v24, %v4240_v52  ;;  %v2865_v28 = vadd.f32 %v2864_v0, %v2863_v12 }
 0x16f   : > { %v4325_v9 = vadd.f32 %v2801_v3, %v2689_v35  ;;  %v4328_v62 = vadd.f32 %v2865_v28, %v4246_v61 }
 0x171   : > { %v2802_v53 = vpop.f32.mrb[56].mxu1  ;;  %v2866_v44 = vpop.f32.mrb[56].mxu0 }
 0x172   : > { %v2803_v42 = vpop.f32.mrb[57].mxu1  ;;  %v2867_v21 = vpop.f32.mrb[57].mxu0 }
 0x173   : > { %v2804_v56 = vadd.f32 %v2803_v42, %v2802_v53  ;;  %v2805_v36 = vpop.f32.mrb[58].mxu1  ;;  %v2868_v22 = vadd.f32 %v2867_v21, %v2866_v44  ;;  %v2869_v39 = vpop.f32.mrb[58].mxu0 }
 0x174   : > { %v2806_v45 = vpop.f32.mrb[59].mxu1  ;;  %v2870_v49 = vpop.f32.mrb[59].mxu0 }
 0x175   : > { %v4331_v13 = vadd.f32 %v2804_v56, %v4292_v32  ;;  %v2807_v52 = vadd.f32 %v2806_v45, %v2805_v36  ;;  %v4334_v35 = vadd.f32 %v2868_v22, %v4254_v37  ;;  %v2871_v48 = vadd.f32 %v2870_v49, %v2869_v39 }
 0x177   : > { %v4336_v61 = vadd.f32 %v2807_v52, %v2695_v50  ;;  %v4339_v20 = vadd.f32 %v2871_v48, %v4260_v6 }
 0x179   : > { %v2808_v17 = vpop.f32.mrb[60].mxu1  ;;  %v2872_v58 = vpop.f32.mrb[60].mxu0 }
 0x17a   : > { %v2809_v5 = vpop.f32.mrb[61].mxu1  ;;  %v2873_v55 = vpop.f32.mrb[61].mxu0 }
 0x17b   : > { %v2810_v10 = vadd.f32 %v2809_v5, %v2808_v17  ;;  %v2811_v47 = vpop.f32.mrb[62].mxu1  ;;  %v2874_v15 = vadd.f32 %v2873_v55, %v2872_v58  ;;  %v2875_v32 = vpop.f32.mrb[62].mxu0 }
 0x17c   : > { %v2812_v29 = vpop.f32.mrb[63].mxu1  ;;  %v2876_v40 = vpop.f32.mrb[63].mxu0 }
 0x17d   : > { %v4342_v63 = vadd.f32 %v2810_v10, %v4300_v18  ;;  %v2813_v37 = vadd.f32 %v2812_v29, %v2811_v47  ;;  %v4345_v50 = vadd.f32 %v2874_v15, %v4269_v60  ;;  %v2877_v24 = vadd.f32 %v2876_v40, %v2875_v32 }
 0x17f   : > { %v4348_v6 = vadd.f32 %v2813_v37, %v4305_v19  ;;  %v4351_v12 = vadd.f32 %v2877_v24, %v4275_v4 }
 0x181   : > { %v2814_v41 = vpop.f32.mrb[64].mxu1  ;;  %v2878_v3 = vpop.f32.mrb[64].mxu0 }
 0x182   : > { %v2815_v0 = vpop.f32.mrb[65].mxu1  ;;  %v2879_v53 = vpop.f32.mrb[65].mxu0 }
 0x183   : > { %v2816_v28 = vadd.f32 %v2815_v0, %v2814_v41  ;;  %v2817_v44 = vpop.f32.mrb[66].mxu1  ;;  %v2880_v18 = vadd.f32 %v2879_v53, %v2878_v3  ;;  %v2881_v42 = vpop.f32.mrb[66].mxu0 }
 0x184   : > { %v2818_v56 = vpop.f32.mrb[67].mxu1  ;;  %v2882_v36 = vpop.f32.mrb[67].mxu0 }
 0x185   : > { %v4354_v21 = vadd.f32 %v2816_v28, %v4178_v8  ;;  %v2819_v60 = vadd.f32 %v2818_v56, %v2817_v44  ;;  %v4357_v19 = vadd.f32 %v2880_v18, %v4281_v30  ;;  %v2883_v22 = vadd.f32 %v2882_v36, %v2881_v42 }
 0x187   : > { %v4360_v4 = vadd.f32 %v2819_v60, %v4181_v23  ;;  %v4363_v39 = vadd.f32 %v2883_v22, %v4284_v16 }
 0x189   : > { %v2820_v45 = vpop.f32.mrb[68].mxu1  ;;  %v2884_v52 = vpop.f32.mrb[68].mxu0 }
 0x18a   : > { %v2821_v49 = vpop.f32.mrb[69].mxu1  ;;  %v2885_v17 = vpop.f32.mrb[69].mxu0 }
 0x18b   : > { %v2822_v48 = vadd.f32 %v2821_v49, %v2820_v45  ;;  %v2823_v58 = vpop.f32.mrb[70].mxu1  ;;  %v2886_v8 = vadd.f32 %v2885_v17, %v2884_v52  ;;  %v2887_v5 = vpop.f32.mrb[70].mxu0 }
 0x18c   : > { %v2824_v10 = vpop.f32.mrb[71].mxu1  ;;  %v2888_v47 = vpop.f32.mrb[71].mxu0 }
 0x18d   : > { %v4366_v55 = vadd.f32 %v2822_v48, %v4189_v27  ;;  %v2825_v30 = vadd.f32 %v2824_v10, %v2823_v58  ;;  %v4369_v23 = vadd.f32 %v2886_v8, %v4287_v26  ;;  %v2889_v15 = vadd.f32 %v2888_v47, %v2887_v5 }
 0x18f   : > { %v4372_v16 = vadd.f32 %v2825_v30, %v4193_v51  ;;  %v4375_v32 = vadd.f32 %v2889_v15, %v4290_v14 }
 0x191   : > { %v2826_v29 = vpop.f32.mrb[72].mxu1  ;;  %v2890_v37 = vpop.f32.mrb[72].mxu0 }
 0x192   : > { %v2827_v40 = vpop.f32.mrb[73].mxu1  ;;  %v2891_v41 = vpop.f32.mrb[73].mxu0 }
 0x193   : > { %v2828_v24 = vadd.f32 %v2827_v40, %v2826_v29  ;;  %v2829_v3 = vpop.f32.mrb[74].mxu1  ;;  %v2892_v27 = vadd.f32 %v2891_v41, %v2890_v37  ;;  %v2893_v0 = vpop.f32.mrb[74].mxu0 }
 0x194   : > { %v2830_v28 = vpop.f32.mrb[75].mxu1  ;;  %v2894_v44 = vpop.f32.mrb[75].mxu0 }
 0x195   : > { %v4378_v53 = vadd.f32 %v2828_v24, %v4203_v33  ;;  %v2831_v26 = vadd.f32 %v2830_v28, %v2829_v3  ;;  %v4381_v51 = vadd.f32 %v2892_v27, %v4295_v2  ;;  %v2895_v18 = vadd.f32 %v2894_v44, %v2893_v0 }
 0x197   : > { %v4384_v14 = vadd.f32 %v2831_v26, %v4205_v38  ;;  %v4387_v42 = vadd.f32 %v2895_v18, %v4298_v11 }
 0x199   : > { %v2832_v56 = vpop.f32.mrb[76].mxu1  ;;  %v2896_v60 = vpop.f32.mrb[76].mxu0 }
 0x19a   : > { %v2833_v36 = vpop.f32.mrb[77].mxu1  ;;  %v2897_v45 = vpop.f32.mrb[77].mxu0 }
 0x19b   : > { %v2834_v22 = vadd.f32 %v2833_v36, %v2832_v56  ;;  %v2835_v52 = vpop.f32.mrb[78].mxu1  ;;  %v2898_v33 = vadd.f32 %v2897_v45, %v2896_v60  ;;  %v2899_v49 = vpop.f32.mrb[78].mxu0 }
 0x19c   : > { %v2836_v48 = vpop.f32.mrb[79].mxu1  ;;  %v2900_v58 = vpop.f32.mrb[79].mxu0 }
 0x19d   : > { %v4390_v17 = vadd.f32 %v2834_v22, %v4215_v57  ;;  %v2837_v2 = vadd.f32 %v2836_v48, %v2835_v52  ;;  %v4393_v38 = vadd.f32 %v2898_v33, %v4303_v25  ;;  %v2901_v8 = vadd.f32 %v2900_v58, %v2899_v49 }
 0x19f   : > { %v4396_v11 = vadd.f32 %v2837_v2, %v4217_v1  ;;  %v4399_v5 = vadd.f32 %v2901_v8, %v4308_v7 }
 0x1a1   : > { %v2966_v10 = vpop.f32.mrb[80].mxu1  ;;  %v2902_v30 = vpop.f32.mrb[80].mxu0 }
 0x1a2   : > { %v2967_v47 = vpop.f32.mrb[81].mxu1  ;;  %v2903_v15 = vpop.f32.mrb[81].mxu0 }
 0x1a3   : > { %v2968_v29 = vadd.f32 %v2967_v47, %v2966_v10  ;;  %v2969_v37 = vpop.f32.mrb[82].mxu1  ;;  %v2904_v57 = vadd.f32 %v2903_v15, %v2902_v30  ;;  %v2905_v40 = vpop.f32.mrb[82].mxu0 }
 0x1a4   : > { %v2970_v24 = vpop.f32.mrb[83].mxu1  ;;  %v2906_v41 = vpop.f32.mrb[83].mxu0 }
 0x1a5   : > { %v2971_v3 = vadd.f32 %v2970_v24, %v2969_v37  ;;  %v4402_v25 = vadd.f32 %v2968_v29, %v4313_v43  ;;  %v4405_v1 = vadd.f32 %v2904_v57, %v4310_v34  ;;  %v2907_v27 = vadd.f32 %v2906_v41, %v2905_v40 }
 0x1a7   : > { %v4408_v7 = vadd.f32 %v2971_v3, %v4318_v54  ;;  %v4411_v0 = vadd.f32 %v2907_v27, %v4315_v46 }
 0x1a9   : > { %v2972_v28 = vpop.f32.mrb[84].mxu1  ;;  %v2908_v26 = vpop.f32.mrb[84].mxu0 }
 0x1aa   : > { %v2973_v44 = vpop.f32.mrb[85].mxu1  ;;  %v2909_v18 = vpop.f32.mrb[85].mxu0 }
 0x1ab   : > { %v2974_v56 = vadd.f32 %v2973_v44, %v2972_v28  ;;  %v2975_v60 = vpop.f32.mrb[86].mxu1  ;;  %v2910_v36 = vadd.f32 %v2909_v18, %v2908_v26  ;;  %v2911_v22 = vpop.f32.mrb[86].mxu0 }
 0x1ac   : > { %v2976_v43 = vpop.f32.mrb[87].mxu1  ;;  %v2912_v45 = vpop.f32.mrb[87].mxu0 }
 0x1ad   : > { %v2977_v52 = vadd.f32 %v2976_v43, %v2975_v60  ;;  %v4414_v34 = vadd.f32 %v2974_v56, %v4323_v31  ;;  %v4417_v54 = vadd.f32 %v2910_v36, %v4320_v59  ;;  %v2913_v33 = vadd.f32 %v2912_v45, %v2911_v22 }
 0x1af   : > { %v4420_v46 = vadd.f32 %v2977_v52, %v4328_v62  ;;  %v4423_v49 = vadd.f32 %v2913_v33, %v4325_v9 }
 0x1b1   : > { %v2978_v48 = vpop.f32.mrb[88].mxu1  ;;  %v2914_v2 = vpop.f32.mrb[88].mxu0 }
 0x1b2   : > { %v2979_v58 = vpop.f32.mrb[89].mxu1  ;;  %v2915_v8 = vpop.f32.mrb[89].mxu0 }
 0x1b3   : > { %v2980_v10 = vadd.f32 %v2979_v58, %v2978_v48  ;;  %v2981_v30 = vpop.f32.mrb[90].mxu1  ;;  %v2916_v47 = vadd.f32 %v2915_v8, %v2914_v2  ;;  %v2917_v15 = vpop.f32.mrb[90].mxu0 }
 0x1b4   : > { %v2982_v31 = vpop.f32.mrb[91].mxu1  ;;  %v2918_v29 = vpop.f32.mrb[91].mxu0 }
 0x1b5   : > { %v2983_v37 = vadd.f32 %v2982_v31, %v2981_v30  ;;  %v4426_v59 = vadd.f32 %v2980_v10, %v4334_v35  ;;  %v4429_v62 = vadd.f32 %v2916_v47, %v4331_v13  ;;  %v2919_v57 = vadd.f32 %v2918_v29, %v2917_v15 }
 0x1b7   : > { %v4432_v9 = vadd.f32 %v2983_v37, %v4339_v20  ;;  %v4435_v40 = vadd.f32 %v2919_v57, %v4336_v61 }
 0x1b9   : > { %v2984_v24 = vpop.f32.mrb[92].mxu1  ;;  %v2920_v41 = vpop.f32.mrb[92].mxu0 }
 0x1ba   : > { %v2985_v3 = vpop.f32.mrb[93].mxu1  ;;  %v2921_v27 = vpop.f32.mrb[93].mxu0 }
 0x1bb   : > { %v2986_v28 = vadd.f32 %v2985_v3, %v2984_v24  ;;  %v2987_v26 = vpop.f32.mrb[94].mxu1  ;;  %v2922_v44 = vadd.f32 %v2921_v27, %v2920_v41  ;;  %v2923_v18 = vpop.f32.mrb[94].mxu0 }
 0x1bc   : > { %v2988_v35 = vpop.f32.mrb[95].mxu1  ;;  %v2924_v56 = vpop.f32.mrb[95].mxu0 }
 0x1bd   : > { %v2989_v60 = vadd.f32 %v2988_v35, %v2987_v26  ;;  %v4438_v13 = vadd.f32 %v2986_v28, %v4345_v50  ;;  %v4441_v20 = vadd.f32 %v2922_v44, %v4342_v63  ;;  %v2925_v36 = vadd.f32 %v2924_v56, %v2923_v18 }
 0x1bf   : > { %v4444_v61 = vadd.f32 %v2989_v60, %v4351_v12  ;;  %v4447_v22 = vadd.f32 %v2925_v36, %v4348_v6 }
 0x1c1   : > { %v2990_v43 = vpop.f32.mrb[96].mxu1  ;;  %v2926_v45 = vpop.f32.mrb[96].mxu0 }
 0x1c2   : > { %v2991_v52 = vpop.f32.mrb[97].mxu1  ;;  %v2927_v33 = vpop.f32.mrb[97].mxu0 }
 0x1c3   : > { %v2992_v48 = vadd.f32 %v2991_v52, %v2990_v43  ;;  %v2993_v2 = vpop.f32.mrb[98].mxu1  ;;  %v2928_v58 = vadd.f32 %v2927_v33, %v2926_v45  ;;  %v2929_v8 = vpop.f32.mrb[98].mxu0 }
 0x1c4   : > { %v2994_v50 = vpop.f32.mrb[99].mxu1  ;;  %v2930_v10 = vpop.f32.mrb[99].mxu0 }
 0x1c5   : > { %v2995_v30 = vadd.f32 %v2994_v50, %v2993_v2  ;;  %v4450_v63 = vadd.f32 %v2992_v48, %v4357_v19  ;;  %v4453_v12 = vadd.f32 %v2928_v58, %v4354_v21  ;;  %v2931_v47 = vadd.f32 %v2930_v10, %v2929_v8 }
 0x1c7   : > { %v4456_v6 = vadd.f32 %v2995_v30, %v4363_v39  ;;  %v4459_v15 = vadd.f32 %v2931_v47, %v4360_v4 }
 0x1c9   : > { %v2996_v31 = vpop.f32.mrb[100].mxu1  ;;  %v2932_v29 = vpop.f32.mrb[100].mxu0 }
 0x1ca   : > { %v2997_v37 = vpop.f32.mrb[101].mxu1  ;;  %v2933_v57 = vpop.f32.mrb[101].mxu0 }
 0x1cb   : > { %v2998_v24 = vadd.f32 %v2997_v37, %v2996_v31  ;;  %v2999_v41 = vpop.f32.mrb[102].mxu1  ;;  %v2934_v3 = vadd.f32 %v2933_v57, %v2932_v29  ;;  %v2935_v27 = vpop.f32.mrb[102].mxu0 }
 0x1cc   : > { %v3000_v19 = vpop.f32.mrb[103].mxu1  ;;  %v2936_v28 = vpop.f32.mrb[103].mxu0 }
 0x1cd   : > { %v3001_v21 = vadd.f32 %v3000_v19, %v2999_v41  ;;  %v4462_v26 = vadd.f32 %v2998_v24, %v4369_v23  ;;  %v4465_v39 = vadd.f32 %v2934_v3, %v4366_v55  ;;  %v2937_v4 = vadd.f32 %v2936_v28, %v2935_v27 }
 0x1cf   : > { %v4468_v44 = vadd.f32 %v3001_v21, %v4375_v32  ;;  %v4471_v18 = vadd.f32 %v2937_v4, %v4372_v16 }
 0x1d1   : > { %v3002_v35 = vpop.f32.mrb[104].mxu1  ;;  %v2938_v56 = vpop.f32.mrb[104].mxu0 }
 0x1d2   : > { %v3003_v60 = vpop.f32.mrb[105].mxu1  ;;  %v2939_v36 = vpop.f32.mrb[105].mxu0 }
 0x1d3   : > { %v3004_v43 = vadd.f32 %v3003_v60, %v3002_v35  ;;  %v3005_v45 = vpop.f32.mrb[106].mxu1  ;;  %v2940_v52 = vadd.f32 %v2939_v36, %v2938_v56  ;;  %v2941_v33 = vpop.f32.mrb[106].mxu0 }
 0x1d4   : > { %v3006_v23 = vpop.f32.mrb[107].mxu1  ;;  %v2942_v48 = vpop.f32.mrb[107].mxu0 }
 0x1d5   : > { %v3007_v55 = vadd.f32 %v3006_v23, %v3005_v45  ;;  %v4475_v2 = vadd.f32 %v3004_v43, %v4381_v51  ;;  %v4478_v32 = vadd.f32 %v2940_v52, %v4378_v53  ;;  %v2943_v16 = vadd.f32 %v2942_v48, %v2941_v33 }
 0x1d7   : > { %v4481_v58 = vadd.f32 %v3007_v55, %v4387_v42  ;;  %v4484_v8 = vadd.f32 %v2943_v16, %v4384_v14 }
 0x1d9   : > { %v3008_v50 = vpop.f32.mrb[108].mxu1  ;;  %v2944_v10 = vpop.f32.mrb[108].mxu0 }
 0x1da   : > { %v3009_v30 = vpop.f32.mrb[109].mxu1  ;;  %v2945_v47 = vpop.f32.mrb[109].mxu0 }
 0x1db   : > { %v3010_v31 = vadd.f32 %v3009_v30, %v3008_v50  ;;  %v3011_v29 = vpop.f32.mrb[110].mxu1  ;;  %v2946_v51 = vadd.f32 %v2945_v47, %v2944_v10  ;;  %v2947_v37 = vpop.f32.mrb[110].mxu0 }
 0x1dc   : > { %v3012_v57 = vpop.f32.mrb[111].mxu1  ;;  %v2948_v53 = vpop.f32.mrb[111].mxu0 }
 0x1dd   : > { %v3013_v24 = vadd.f32 %v3012_v57, %v3011_v29  ;;  %v4487_v41 = vadd.f32 %v3010_v31, %v4393_v38  ;;  %v4490_v42 = vadd.f32 %v2946_v51, %v4390_v17  ;;  %v2949_v14 = vadd.f32 %v2948_v53, %v2947_v37 }
 0x1df   : > { %v4493_v3 = vadd.f32 %v3013_v24, %v4399_v5  ;;  %v4496_v27 = vadd.f32 %v2949_v14, %v4396_v11 }
 0x1e1   : > { %v3014_v19 = vpop.f32.mrb[112].mxu1  ;;  %v3104_v38 = vpop.f32.mrb[112].mxu0 }
 0x1e2   : > { %v3015_v17 = vpop.f32.mrb[113].mxu1  ;;  %v2164_v28 = vadd.f32 %v3104_v38, %v4414_v34  ;;  %v2155_v5 = vpop.f32.mrb[113].mxu0 }
 0x1e3   : > { %v3016_v21 = vadd.f32 %v3015_v17, %v3014_v19  ;;  %v3017_v4 = vpop.f32.mrb[114].mxu1  ;;  %v2156_v11 = vadd.f32 %v2155_v5, %v4402_v25  ;;  %v3105_v35 = vpop.f32.mrb[114].mxu0 }
 0x1e4   : > { %v3018_v56 = vpop.f32.mrb[115].mxu1  ;;  %2284 = vst [vmem:[%s4501_s17 + $0x10] sm:$0xff] %v2164_v28  ;;  %v2167_v60 = vadd.f32 %v3105_v35, %v4420_v46  ;;  %v2158_v43 = vpop.f32.mrb[115].mxu0  ;;  %v2354_v55 = vmul.f32 %v2164_v28, %v2164_v28 }
 0x1e5   : > { %v3019_v36 = vadd.f32 %v3018_v56, %v3017_v4  ;;  %v4508_v45 = vadd.f32 %v3016_v21, %v4405_v1  ;;  %2282 = vst [vmem:[%s4501_s17] sm:$0xff] %v2156_v11  ;;  %v2159_v52 = vadd.f32 %v2158_v43, %v4408_v7  ;;  %v2352_v33 = vmul.f32 %v2156_v11, %v2156_v11 }
 0x1e6   : > { %2285 = vst [vmem:[%s4501_s17 + $0x18] sm:$0xff] %v2167_v60  ;;  %v2355_v31 = vmul.f32 %v2167_v60, %v2167_v60 }
 0x1e7   : > { %v4514_v34 = vadd.f32 %v3019_v36, %v4411_v0  ;;  %2283 = vst [vmem:[%s4501_s17 + $0x8] sm:$0xff] %v2159_v52  ;;  %v2314_v25 = vadd.f32 %v2159_v52, %v2156_v11  ;;  %v2353_v23 = vmul.f32 %v2159_v52, %v2159_v52 }
 0x1e9   : > { %v3020_v48 = vpop.f32.mrb[116].mxu1  ;;  %v2315_v46 = vadd.f32 %v2314_v25, %v2164_v28  ;;  %v2384_v16 = vadd.f32 %v2353_v23, %v2352_v33  ;;  %v3108_v50 = vpop.f32.mrb[116].mxu0 }
 0x1ea   : > { %v3021_v10 = vpop.f32.mrb[117].mxu1  ;;  %v2180_v1 = vadd.f32 %v3108_v50, %v4438_v13  ;;  %v2171_v7 = vpop.f32.mrb[117].mxu0 }
 0x1eb   : > { %v3022_v30 = vadd.f32 %v3021_v10, %v3020_v48  ;;  %v3023_v47 = vpop.f32.mrb[118].mxu1  ;;  %v2385_v0 = vadd.f32 %v2384_v16, %v2354_v55  ;;  %v2172_v29 = vadd.f32 %v2171_v7, %v4426_v59  ;;  %v2316_v51 = vadd.f32 %v2315_v46, %v2167_v60  ;;  %v3109_v37 = vpop.f32.mrb[118].mxu0 }
 0x1ec   : > { %v3024_v57 = vpop.f32.mrb[119].mxu1  ;;  %2288 = vst [vmem:[%s4501_s17 + $0x30] sm:$0xff] %v2180_v1  ;;  %v2183_v53 = vadd.f32 %v3109_v37, %v4444_v61  ;;  %v2174_v14 = vpop.f32.mrb[119].mxu0  ;;  %v2358_v11 = vmul.f32 %v2180_v1, %v2180_v1 }
 0x1ed   : > { %v3025_v24 = vadd.f32 %v3024_v57, %v3023_v47  ;;  %v4522_v19 = vadd.f32 %v3022_v30, %v4417_v54  ;;  %2286 = vst [vmem:[%s4501_s17 + $0x20] sm:$0xff] %v2172_v29  ;;  %v2317_v13 = vadd.f32 %v2316_v51, %v2172_v29  ;;  %v2356_v38 = vmul.f32 %v2172_v29, %v2172_v29 }
 0x1ee   : > { %v2386_v17 = vadd.f32 %v2385_v0, %v2355_v31  ;;  %v2175_v28 = vadd.f32 %v2174_v14, %v4432_v9  ;;  %2289 = vst [vmem:[%s4501_s17 + $0x38] sm:$0xff] %v2183_v53  ;;  %v2359_v33 = vmul.f32 %v2183_v53, %v2183_v53 }
 0x1ef   : > { %v4528_v59 = vadd.f32 %v3025_v24, %v4423_v49 }
 0x1f0   : > { %v2387_v21 = vadd.f32 %v2386_v17, %v2356_v38  ;;  %2287 = vst [vmem:[%s4501_s17 + $0x28] sm:$0xff] %v2175_v28  ;;  %v2318_v5 = vadd.f32 %v2317_v13, %v2175_v28  ;;  %v2357_v4 = vmul.f32 %v2175_v28, %v2175_v28 }
 0x1f1   : > { %v3026_v61 = vpop.f32.mrb[120].mxu1  ;;  %v3112_v56 = vpop.f32.mrb[120].mxu0 }
 0x1f2   : > { %v2319_v35 = vadd.f32 %v2318_v5, %v2180_v1  ;;  %v2388_v54 = vadd.f32 %v2387_v21, %v2357_v4  ;;  %v3027_v60 = vpop.f32.mrb[121].mxu1  ;;  %v2196_v36 = vadd.f32 %v3112_v56, %v4462_v26  ;;  %v2187_v9 = vpop.f32.mrb[121].mxu0 }
 0x1f3   : > { %v3028_v43 = vadd.f32 %v3027_v60, %v3026_v61  ;;  %v3029_v52 = vpop.f32.mrb[122].mxu1  ;;  %v2188_v25 = vadd.f32 %v2187_v9, %v4450_v63  ;;  %v3113_v48 = vpop.f32.mrb[122].mxu0 }
 0x1f4   : > { %v2389_v49 = vadd.f32 %v2388_v54, %v2358_v11  ;;  %v2320_v23 = vadd.f32 %v2319_v35, %v2183_v53  ;;  %v3030_v55 = vpop.f32.mrb[123].mxu1  ;;  %2292 = vst [vmem:[%s4501_s17 + $0x50] sm:$0xff] %v2196_v36  ;;  %v2199_v46 = vadd.f32 %v3113_v48, %v4468_v44  ;;  %v2190_v50 = vpop.f32.mrb[123].mxu0  ;;  %v2362_v29 = vmul.f32 %v2196_v36, %v2196_v36 }
 0x1f5   : > { %v3031_v16 = vadd.f32 %v3030_v55, %v3029_v52  ;;  %v4536_v10 = vadd.f32 %v3028_v43, %v4429_v62  ;;  %2290 = vst [vmem:[%s4501_s17 + $0x40] sm:$0xff] %v2188_v25  ;;  %v2360_v1 = vmul.f32 %v2188_v25, %v2188_v25  ;;  %v2191_v7 = vadd.f32 %v2190_v50, %v4456_v6 }
 0x1f6   : > { %v2321_v26 = vadd.f32 %v2320_v23, %v2188_v25  ;;  %v2390_v30 = vadd.f32 %v2389_v49, %v2359_v33  ;;  %2293 = vst [vmem:[%s4501_s17 + $0x58] sm:$0xff] %v2199_v46  ;;  %v2363_v13 = vmul.f32 %v2199_v46, %v2199_v46 }
 0x1f7   : > { %v4542_v63 = vadd.f32 %v3031_v16, %v4435_v40  ;;  %2291 = vst [vmem:[%s4501_s17 + $0x48] sm:$0xff] %v2191_v7  ;;  %v2361_v0 = vmul.f32 %v2191_v7, %v2191_v7 }
 0x1f8   : > { %v2391_v47 = vadd.f32 %v2390_v30, %v2360_v1  ;;  %v2322_v31 = vadd.f32 %v2321_v26, %v2191_v7 }
 0x1f9   : > { %v3032_v44 = vpop.f32.mrb[124].mxu1  ;;  %v3116_v37 = vpop.f32.mrb[124].mxu0 }
 0x1fa   : > { %v2323_v51 = vadd.f32 %v2322_v31, %v2196_v36  ;;  %v2392_v62 = vadd.f32 %v2391_v47, %v2361_v0  ;;  %v3033_v57 = vpop.f32.mrb[125].mxu1  ;;  %v2212_v53 = vadd.f32 %v3116_v37, %v4487_v41  ;;  %v2203_v6 = vpop.f32.mrb[125].mxu0 }
 0x1fb   : > { %v3034_v24 = vadd.f32 %v3033_v57, %v3032_v44  ;;  %v3035_v14 = vpop.f32.mrb[126].mxu1  ;;  %v2204_v38 = vadd.f32 %v2203_v6, %v4475_v2  ;;  %v3117_v28 = vpop.f32.mrb[126].mxu0 }
 0x1fc   : > { %v2393_v40 = vadd.f32 %v2392_v62, %v2362_v29  ;;  %v2324_v17 = vadd.f32 %v2323_v51, %v2199_v46  ;;  %v3036_v21 = vpop.f32.mrb[127].mxu1  ;;  %2296 = vst [vmem:[%s4501_s17 + $0x70] sm:$0xff] %v2212_v53  ;;  %v2215_v5 = vadd.f32 %v3117_v28, %v4493_v3  ;;  %v2206_v61 = vpop.f32.mrb[127].mxu0  ;;  %v2366_v3 = vmul.f32 %v2212_v53, %v2212_v53 }
 0x1fd   : > { %v3037_v4 = vadd.f32 %v3036_v21, %v3035_v14  ;;  %v2083_v11 = vadd.f32 %v3034_v24, %v4441_v20  ;;  %2294 = vst [vmem:[%s4501_s17 + $0x60] sm:$0xff] %v2204_v38  ;;  %v2364_v35 = vmul.f32 %v2204_v38, %v2204_v38  ;;  %v2207_v56 = vadd.f32 %v2206_v61, %v4481_v58 }
 0x1fe   : > { %v2325_v41 = vadd.f32 %v2324_v17, %v2204_v38  ;;  %v2394_v54 = vadd.f32 %v2393_v40, %v2363_v13  ;;  %2297 = vst [vmem:[%s4501_s17 + $0x78] sm:$0xff] %v2215_v5  ;;  %v2367_v55 = vmul.f32 %v2215_v5, %v2215_v5 }
 0x1ff   : > { %v2086_v2 = vadd.f32 %v3037_v4, %v4447_v22  ;;  %2295 = vst [vmem:[%s4501_s17 + $0x68] sm:$0xff] %v2207_v56  ;;  %v2365_v43 = vmul.f32 %v2207_v56, %v2207_v56 }
 0x200   : > { %v2395_v60 = vadd.f32 %v2394_v54, %v2364_v35  ;;  %v2326_v36 = vadd.f32 %v2325_v41, %v2207_v56 }
 0x201   : > { %v3038_v9 = vpop.f32.mrb[128].mxu1  ;;  %v3120_v49 = vpop.f32.mrb[128].mxu0 }
 0x202   : > { %v2327_v52 = vadd.f32 %v2326_v36, %v2212_v53  ;;  %v2396_v33 = vadd.f32 %v2395_v60, %v2365_v43  ;;  %v3039_v20 = vpop.f32.mrb[129].mxu1  ;;  %v2228_v25 = vadd.f32 %v3120_v49, %v4522_v19  ;;  %v2219_v48 = vpop.f32.mrb[129].mxu0 }
 0x203   : > { %v3040_v23 = vadd.f32 %v3039_v20, %v3038_v9  ;;  %v3041_v58 = vpop.f32.mrb[130].mxu1  ;;  %v2220_v46 = vadd.f32 %v2219_v48, %v4508_v45  ;;  %v3121_v50 = vpop.f32.mrb[130].mxu0 }
 0x204   : > { %v2397_v22 = vadd.f32 %v2396_v33, %v2366_v3  ;;  %v2328_v16 = vadd.f32 %v2327_v52, %v2215_v5  ;;  %v3042_v26 = vpop.f32.mrb[131].mxu1  ;;  %2300 = vst [vmem:[%s4501_s17 + $0x90] sm:$0xff] %v2228_v25  ;;  %v2231_v1 = vadd.f32 %v3121_v50, %v4528_v59  ;;  %v2222_v7 = vpop.f32.mrb[131].mxu0  ;;  %v2370_v59 = vmul.f32 %v2228_v25, %v2228_v25 }
 0x205   : > { %v3043_v30 = vadd.f32 %v3042_v26, %v3041_v58  ;;  %v2091_v47 = vadd.f32 %v3040_v23, %v4453_v12  ;;  %2298 = vst [vmem:[%s4501_s17 + $0x80] sm:$0xff] %v2220_v46  ;;  %v2368_v31 = vmul.f32 %v2220_v46, %v2220_v46  ;;  %v2223_v44 = vadd.f32 %v2222_v7, %v4514_v34 }
 0x206   : > { %v2329_v19 = vadd.f32 %v2328_v16, %v2220_v46  ;;  %v2398_v0 = vadd.f32 %v2397_v22, %v2367_v55  ;;  %2301 = vst [vmem:[%s4501_s17 + $0x98] sm:$0xff] %v2231_v1  ;;  %v2371_v34 = vmul.f32 %v2231_v1, %v2231_v1 }
 0x207   : > { %v2094_v45 = vadd.f32 %v3043_v30, %v4459_v15  ;;  %2299 = vst [vmem:[%s4501_s17 + $0x88] sm:$0xff] %v2223_v44  ;;  %v2369_v62 = vmul.f32 %v2223_v44, %v2223_v44 }
 0x208   : > { %v2399_v29 = vadd.f32 %v2398_v0, %v2368_v31  ;;  %v2330_v51 = vadd.f32 %v2329_v19, %v2223_v44 }
 0x209   : > { %v3044_v37 = vpop.f32.mrb[132].mxu1  ;;  %v3124_v24 = vpop.f32.mrb[132].mxu0 }
 0x20a   : > { %v2331_v57 = vadd.f32 %v2330_v51, %v2228_v25  ;;  %v2400_v53 = vadd.f32 %v2399_v29, %v2369_v62  ;;  %v3045_v12 = vpop.f32.mrb[133].mxu1  ;;  %v2244_v6 = vadd.f32 %v3124_v24, %v2083_v11  ;;  %v2235_v13 = vpop.f32.mrb[133].mxu0 }
 0x20b   : > { %v3046_v14 = vadd.f32 %v3045_v12, %v3044_v37  ;;  %v3047_v40 = vpop.f32.mrb[134].mxu1  ;;  %v2236_v15 = vadd.f32 %v2235_v13, %v4536_v10  ;;  %v3125_v28 = vpop.f32.mrb[134].mxu0 }
 0x20c   : > { %v2401_v38 = vadd.f32 %v2400_v53, %v2370_v59  ;;  %v2332_v17 = vadd.f32 %v2331_v57, %v2231_v1  ;;  %v3048_v21 = vpop.f32.mrb[135].mxu1  ;;  %2304 = vst [vmem:[%s4501_s17 + $0xb0] sm:$0xff] %v2244_v6  ;;  %v2247_v5 = vadd.f32 %v3125_v28, %v2086_v2  ;;  %v2238_v61 = vpop.f32.mrb[135].mxu0  ;;  %v2374_v2 = vmul.f32 %v2244_v6, %v2244_v6 }
 0x20d   : > { %v3049_v4 = vadd.f32 %v3048_v21, %v3047_v40  ;;  %v2099_v41 = vadd.f32 %v3046_v14, %v4465_v39  ;;  %2302 = vst [vmem:[%s4501_s17 + $0xa0] sm:$0xff] %v2236_v15  ;;  %v2372_v35 = vmul.f32 %v2236_v15, %v2236_v15  ;;  %v2239_v56 = vadd.f32 %v2238_v61, %v4542_v63 }
 0x20e   : > { %v2333_v11 = vadd.f32 %v2332_v17, %v2236_v15  ;;  %v2402_v54 = vadd.f32 %v2401_v38, %v2371_v34  ;;  %2305 = vst [vmem:[%s4501_s17 + $0xb8] sm:$0xff] %v2247_v5  ;;  %v2375_v63 = vmul.f32 %v2247_v5, %v2247_v5 }
 0x20f   : > { %v2102_v60 = vadd.f32 %v3049_v4, %v4471_v18  ;;  %2303 = vst [vmem:[%s4501_s17 + $0xa8] sm:$0xff] %v2239_v56  ;;  %v2373_v43 = vmul.f32 %v2239_v56, %v2239_v56 }
 0x210   : > { %v2403_v10 = vadd.f32 %v2402_v54, %v2372_v35  ;;  %v2334_v36 = vadd.f32 %v2333_v11, %v2239_v56 }
 0x211   : > { %v3050_v9 = vpop.f32.mrb[136].mxu1  ;;  %v3128_v33 = vpop.f32.mrb[136].mxu0 }
 0x212   : > { %v2335_v3 = vadd.f32 %v2334_v36, %v2244_v6  ;;  %v2404_v52 = vadd.f32 %v2403_v10, %v2373_v43  ;;  %v3051_v39 = vpop.f32.mrb[137].mxu1  ;;  %v2260_v49 = vadd.f32 %v3128_v33, %v2099_v41  ;;  %v2251_v25 = vpop.f32.mrb[137].mxu0 }
 0x213   : > { %v3052_v20 = vadd.f32 %v3051_v39, %v3050_v9  ;;  %v3053_v23 = vpop.f32.mrb[138].mxu1  ;;  %v2252_v18 = vadd.f32 %v2251_v25, %v2091_v47  ;;  %v3129_v55 = vpop.f32.mrb[138].mxu0 }
 0x214   : > { %v2405_v48 = vadd.f32 %v2404_v52, %v2374_v2  ;;  %v2336_v58 = vadd.f32 %v2335_v3, %v2247_v5  ;;  %v3054_v22 = vpop.f32.mrb[139].mxu1  ;;  %2308 = vst [vmem:[%s4501_s17 + $0xd0] sm:$0xff] %v2260_v49  ;;  %v2263_v46 = vadd.f32 %v3129_v55, %v2102_v60  ;;  %v2254_v50 = vpop.f32.mrb[139].mxu0  ;;  %v2378_v51 = vmul.f32 %v2260_v49, %v2260_v49 }
 0x215   : > { %v3055_v16 = vadd.f32 %v3054_v22, %v3053_v23  ;;  %v2107_v26 = vadd.f32 %v3052_v20, %v4478_v32  ;;  %2306 = vst [vmem:[%s4501_s17 + $0xc0] sm:$0xff] %v2252_v18  ;;  %v2376_v30 = vmul.f32 %v2252_v18, %v2252_v18  ;;  %v2255_v19 = vadd.f32 %v2254_v50, %v2094_v45 }
 0x216   : > { %v2337_v1 = vadd.f32 %v2336_v58, %v2252_v18  ;;  %v2406_v7 = vadd.f32 %v2405_v48, %v2375_v63  ;;  %2309 = vst [vmem:[%s4501_s17 + $0xd8] sm:$0xff] %v2263_v46  ;;  %v2379_v12 = vmul.f32 %v2263_v46, %v2263_v46 }
 0x217   : > { %v2110_v31 = vadd.f32 %v3055_v16, %v4484_v8  ;;  %2307 = vst [vmem:[%s4501_s17 + $0xc8] sm:$0xff] %v2255_v19  ;;  %v2377_v44 = vmul.f32 %v2255_v19, %v2255_v19 }
 0x218   : > { %v2407_v0 = vadd.f32 %v2406_v7, %v2376_v30  ;;  %v2338_v47 = vadd.f32 %v2337_v1, %v2255_v19 }
 0x219   : > { %v3056_v29 = vpop.f32.mrb[140].mxu1  ;;  %v3132_v59 = vpop.f32.mrb[140].mxu0 }
 0x21a   : > { %v2339_v62 = vadd.f32 %v2338_v47, %v2260_v49  ;;  %v2408_v37 = vadd.f32 %v2407_v0, %v2377_v44  ;;  %v3057_v57 = vpop.f32.mrb[141].mxu1  ;;  %v2267_v53 = vpop.f32.mrb[141].mxu0 }
 0x21b   : > { %v3058_v32 = vadd.f32 %v3057_v57, %v3056_v29  ;;  %v3059_v24 = vpop.f32.mrb[142].mxu1  ;;  %v2268_v45 = vadd.f32 %v2267_v53, %v2107_v26  ;;  %v3133_v8 = vpop.f32.mrb[142].mxu0 }
 0x21c   : > { %v2409_v6 = vadd.f32 %v2408_v37, %v2378_v51  ;;  %v2340_v14 = vadd.f32 %v2339_v62, %v2263_v46  ;;  %v3060_v13 = vpop.f32.mrb[143].mxu1  ;;  %v2270_v38 = vpop.f32.mrb[143].mxu0 }
 0x21d   : > { %v2115_v40 = vadd.f32 %v3058_v32, %v4490_v42  ;;  %v3061_v34 = vadd.f32 %v3060_v13, %v3059_v24  ;;  %2310 = vst [vmem:[%s4501_s17 + $0xe0] sm:$0xff] %v2268_v45  ;;  %v2380_v17 = vmul.f32 %v2268_v45, %v2268_v45  ;;  %v2271_v21 = vadd.f32 %v2270_v38, %v2110_v31 }
 0x21e   : > { %v2341_v15 = vadd.f32 %v2340_v14, %v2268_v45  ;;  %v2410_v28 = vadd.f32 %v2409_v6, %v2379_v12 }
 0x21f   : > { %v2276_v5 = vadd.f32 %v3132_v59, %v2115_v40  ;;  %v2118_v4 = vadd.f32 %v3061_v34, %v4496_v27  ;;  %2311 = vst [vmem:[%s4501_s17 + $0xe8] sm:$0xff] %v2271_v21  ;;  %v2381_v11 = vmul.f32 %v2271_v21, %v2271_v21 }
 0x220   : > { %v2411_v61 = vadd.f32 %v2410_v28, %v2380_v17  ;;  %v2342_v41 = vadd.f32 %v2341_v15, %v2271_v21 }
 0x221   : > { %2312 = vst [vmem:[%s4501_s17 + $0xf0] sm:$0xff] %v2276_v5  ;;  %v2382_v35 = vmul.f32 %v2276_v5, %v2276_v5  ;;  %v2279_v54 = vadd.f32 %v3133_v8, %v2118_v4 }
 0x222   : > { %v2343_v56 = vadd.f32 %v2342_v41, %v2276_v5  ;;  %v2412_v42 = vadd.f32 %v2411_v61, %v2381_v11 }
 0x223   : > { %2313 = vst [vmem:[%s4501_s17 + $0xf8] sm:$0xff] %v2279_v54  ;;  %v2383_v60 = vmul.f32 %v2279_v54, %v2279_v54 }
 0x224   : > { %v2344_v10 = vadd.f32 %v2343_v56, %v2279_v54  ;;  %v2413_v36 = vadd.f32 %v2412_v42, %v2382_v35 }
 0x226   : > { %v2345_v43 = vrot.slane %v2344_v10, 4  ;;  %v2414_v9 = vadd.f32 %v2413_v36, %v2383_v60 }
 0x228   : > { %v2346_v2 = vadd.f32 %v2345_v43, %v2344_v10  ;;  %v2415_v3 = vrot.slane %v2414_v9, 4 }
 0x22a   : > { %v2347_v27 = vrot.slane %v2346_v2, 2  ;;  %v2416_v52 = vadd.f32 %v2415_v3, %v2414_v9 }
 0x22c   : > { %v2348_v33 = vadd.f32 %v2347_v27, %v2346_v2  ;;  %v2417_v39 = vrot.slane %v2416_v52, 2 }
 0x22e   : > { %v2349_v49 = vrot.slane %v2348_v33, 1  ;;  %v2418_v20 = vadd.f32 %v2417_v39, %v2416_v52 }
 0x230   : > { %v2350_v25 = vadd.f32 %v2349_v49, %v2348_v33  ;;  %v2419_v23 = vrot.slane %v2418_v20, 1 }
 0x232   : > { %2351 = vst [vmem:[%s266_s19] sm:$0x1] %v2350_v25  ;;  %v2420_v63 = vadd.f32 %v2419_v23, %v2418_v20 }
 0x234   : > { %2421 = vst [vmem:[%s269_s25] sm:$0x1] %v2420_v63 }
 0x235 PF: > { %s17_s21 = sadd.s32 1, %s3240_s21  }
 0x236   : > { %p14_p5 = scmp.ge.s32.totalorder %s17_s21, 4  }
 0x238   :  { %16 = sbr.rel (!%p14_p5) target bundleno = 1 (0x1), region = 92 }

</bundles_post_ra>
